<compile_context>
chip_gen: v7x
topology: tpu7x:2x2x1
jax: 0.10.0
libtpu: 0.0.40
codegen_flags: <defaults>
</compile_context>

<pallas_src>
import functools
import math

import jax
import jax.numpy as jnp
from jax import lax
from jax.experimental import pallas as pl
from jax.experimental.pallas import tpu as pltpu


def _round_up(n, m):
    return ((n + m - 1) // m) * m


def painn_kernel(
    h_ref,          # [Np, Hp] bf16  node embeddings (fixed across interactions)
    dist_ref,       # [Ep, 1]  f32   edge distances (padded edges: 0)
    src_ref,        # [Ep, 1]  i32   edge_index[0]  (padded edges: -1)
    dstT_ref,       # [1, Ep]  i32   edge_index[1]  (padded edges: -1)
    offs_ref,       # [1, Gp]  f32   gaussian offsets
    nn_wt_ref,      # [1, Gp, Fp] bf16
    nn_b_ref,       # [1, 1, Fp]  f32
    in_wt_ref,      # [1, Hp, Fp] bf16
    in_b_ref,       # [1, 1, Fp]  f32
    out_wt_ref,     # [1, Fp, Hp] bf16
    out_b_ref,      # [1, 1, Hp]  f32
    lin_wt_ref,     # [1, Hp, Hp] bf16
    lin_b_ref,      # [1, 1, Hp]  f32
    x_ref,          # [Np, Hp] f32   accumulated output
    gauss_s,        # scratch [Ep, Gp] bf16   gaussian expansion
    c_s,            # scratch [Ep, 1]  f32    cosine cutoff
    src_oh_s,       # scratch [Ep, Np] bf16   gather one-hot
    dst_ohT_s,      # scratch [Np, Ep] bf16   scatter one-hot (transposed)
    *, cutoff, coeff,
):
    l = pl.program_id(0)

    # ---- l-invariant setup: compute once, reuse for l = 1..L-1 ----
    @pl.when(l == 0)
    def _():
        x_ref[...] = jnp.zeros_like(x_ref)
        dist = dist_ref[...]                                            # [Ep,1]
        gauss = jnp.exp(coeff * (dist - offs_ref[...]) ** 2)            # f32
        gauss_s[...] = gauss.astype(gauss_s.dtype)
        c_s[...] = 0.5 * (jnp.cos(dist * (math.pi / cutoff)) + 1.0)
        ep, np_ = src_oh_s.shape
        edge_node = lax.broadcasted_iota(jnp.int32, (ep, np_), 1)
        src_oh_s[...] = (edge_node == src_ref[...]).astype(
            jnp.float32).astype(src_oh_s.dtype)
        node_edge = lax.broadcasted_iota(jnp.int32, (np_, ep), 0)
        dst_ohT_s[...] = (node_edge == dstT_ref[...]).astype(
            jnp.float32).astype(dst_ohT_s.dtype)

    # ---- per-interaction work (bf16 MXU operands, f32 accumulation) ----
    # Filter weights W = (gauss @ nn_W + nn_b) * C                   [Ep, Fp]
    W = (jnp.dot(gauss_s[...], nn_wt_ref[0],
                 preferred_element_type=jnp.float32) + nn_b_ref[0]) * c_s[...]

    # h1 = h @ in_W + in_b                                           [Np, Fp]
    h1 = jnp.dot(h_ref[...], in_wt_ref[0],
                 preferred_element_type=jnp.float32) + in_b_ref[0]

    # Gather h1[src] via one-hot matmul                              [Ep, Fp]
    h_j = jnp.dot(src_oh_s[...], h1.astype(jnp.bfloat16),
                  preferred_element_type=jnp.float32)
    msg = h_j * W                                                    # [Ep, Fp]

    # Scatter-add over dst via transposed one-hot matmul             [Np, Fp]
    agg = jnp.dot(dst_ohT_s[...], msg.astype(jnp.bfloat16),
                  preferred_element_type=jnp.float32)

    # h2 = agg @ out_W + out_b                                       [Np, Hp]
    h2 = jnp.dot(agg.astype(jnp.bfloat16), out_wt_ref[0],
                 preferred_element_type=jnp.float32) + out_b_ref[0]
    # SiLU: x * sigmoid(x), reciprocal on the EUP
    h3 = h2 * pl.reciprocal(1.0 + jnp.exp(-h2), approx=True)
    # out = SiLU(h2) @ lin_W + lin_b                                 [Np, Hp]
    h4 = jnp.dot(h3.astype(jnp.bfloat16), lin_wt_ref[0],
                 preferred_element_type=jnp.float32) + lin_b_ref[0]

    x_ref[...] += h4


def prepare_params(params, *, cutoff, num_gaussians):
    """One-time weight prep: transpose to [L, in, out], pad lanes to 128, bf16."""
    L, F, G = params["nn_w"].shape                     # nn_w: [L, F, G]
    H = params["in_w"].shape[2]                        # in_w: [L, F, H]
    Hp, Fp, Gp = _round_up(H, 128), _round_up(F, 128), _round_up(G, 128)

    def pad_w(w, r, c):
        return jnp.pad(w, ((0, 0), (0, r - w.shape[1]), (0, c - w.shape[2])))

    nn_wt = pad_w(jnp.transpose(params["nn_w"], (0, 2, 1)), Gp, Fp).astype(jnp.bfloat16)
    in_wt = pad_w(jnp.transpose(params["in_w"], (0, 2, 1)), Hp, Fp).astype(jnp.bfloat16)
    out_wt = pad_w(jnp.transpose(params["out_w"], (0, 2, 1)), Fp, Hp).astype(jnp.bfloat16)
    lin_wt = pad_w(jnp.transpose(params["lin_w"], (0, 2, 1)), Hp, Hp).astype(jnp.bfloat16)

    def pad_b(b, c):
        return jnp.pad(b.reshape(L, 1, -1), ((0, 0), (0, 0), (0, c - b.shape[1])))

    nn_b = pad_b(params["nn_b"], Fp)
    in_b = pad_b(params["in_b"], Fp)
    out_b = pad_b(params["out_b"], Hp)
    lin_b = pad_b(params["lin_b"], Hp)

    offsets = jnp.linspace(0.0, cutoff, num_gaussians, dtype=jnp.float32)
    offsets = jnp.pad(offsets, (0, Gp - num_gaussians)).reshape(1, Gp)
    delta = cutoff / (num_gaussians - 1)
    coeff = -0.5 / (delta * delta)

    emb = jnp.pad(params["embedding"], ((0, 0), (0, Hp - H))).astype(jnp.bfloat16)

    return dict(embedding=emb, offsets=offsets, coeff=coeff,
                nn_wt=nn_wt, nn_b=nn_b, in_wt=in_wt, in_b=in_b,
                out_wt=out_wt, out_b=out_b, lin_wt=lin_wt, lin_b=lin_b,
                dims=dict(L=L, H=H, F=F, G=G, Hp=Hp, Fp=Fp, Gp=Gp))


def painn_encoder(atomic_numbers, edge_index, edge_attr, prep, *, cutoff):
    d = prep["dims"]
    L, H, Hp, Fp, Gp = d["L"], d["H"], d["Hp"], d["Fp"], d["Gp"]

    # Glue: embedding lookup (padding_idx=0 row is zero in the table).
    h = prep["embedding"][atomic_numbers]                       # [N, Hp] bf16
    N = h.shape[0]
    E = edge_attr.shape[0]
    Np, Ep = _round_up(N, 128), _round_up(E, 128)

    h_pad = jnp.pad(h, ((0, Np - N), (0, 0)))
    dist2d = jnp.pad(edge_attr.astype(jnp.float32).reshape(E, 1),
                     ((0, Ep - E), (0, 0)))
    # Padded edges get index -1 so they match no node in the one-hots.
    src2d = jnp.pad(edge_index[0].astype(jnp.int32).reshape(E, 1),
                    ((0, Ep - E), (0, 0)), constant_values=-1)
    dstT = jnp.pad(edge_index[1].astype(jnp.int32).reshape(1, E),
                   ((0, 0), (0, Ep - E)), constant_values=-1)

    kernel = functools.partial(painn_kernel, cutoff=float(cutoff),
                               coeff=float(prep["coeff"]))

    fixed = lambda shape: pl.BlockSpec(shape, lambda l: (0,) * len(shape))
    per_l = lambda shape: pl.BlockSpec(shape, lambda l: (l, 0, 0))

    x_pad = pl.pallas_call(
        kernel,
        out_shape=jax.ShapeDtypeStruct((Np, Hp), jnp.float32),
        grid_spec=pltpu.PrefetchScalarGridSpec(
            num_scalar_prefetch=0,
            grid=(L,),
            in_specs=[
                fixed((Np, Hp)),        # h (bf16)
                fixed((Ep, 1)),         # dist
                fixed((Ep, 1)),         # src
                fixed((1, Ep)),         # dst (transposed)
                fixed((1, Gp)),         # offsets
                per_l((1, Gp, Fp)),     # nn_wt
                per_l((1, 1, Fp)),      # nn_b
                per_l((1, Hp, Fp)),     # in_wt
                per_l((1, 1, Fp)),      # in_b
                per_l((1, Fp, Hp)),     # out_wt
                per_l((1, 1, Hp)),      # out_b
                per_l((1, Hp, Hp)),     # lin_wt
                per_l((1, 1, Hp)),      # lin_b
            ],
            out_specs=pl.BlockSpec((Np, Hp), lambda l: (0, 0)),
            scratch_shapes=[
                pltpu.VMEM((Ep, Gp), jnp.bfloat16),   # gauss (l-invariant)
                pltpu.VMEM((Ep, 1), jnp.float32),     # cosine cutoff
                pltpu.VMEM((Ep, Np), jnp.bfloat16),   # src one-hot (gather)
                pltpu.VMEM((Np, Ep), jnp.bfloat16),   # dst one-hot^T (scatter)
            ],
        ),
        compiler_params=pltpu.CompilerParams(
            dimension_semantics=("arbitrary",)),   # output accumulates over L
    )(h_pad, dist2d, src2d, dstT, prep["offsets"],
      prep["nn_wt"], prep["nn_b"], prep["in_wt"], prep["in_b"],
      prep["out_wt"], prep["out_b"], prep["lin_wt"], prep["lin_b"])

    return x_pad[:N, :H]


def painn_reference(atomic_numbers, edge_index, edge_attr, params, *,
                    cutoff, num_gaussians):
    h = params["embedding"][atomic_numbers]
    N, H = h.shape
    G = num_gaussians
    offsets = jnp.linspace(0.0, cutoff, G, dtype=jnp.float32)
    coeff = -0.5 / (cutoff / (G - 1)) ** 2
    gauss = jnp.exp(coeff * (edge_attr[:, None] - offsets[None, :]) ** 2)
    src, dst = edge_index[0], edge_index[1]
    x = jnp.zeros((N, H), jnp.float32)
    L = params["nn_w"].shape[0]
    for l in range(L):
        C = 0.5 * (jnp.cos(edge_attr * math.pi / cutoff) + 1.0)
        W = (gauss @ params["nn_w"][l].T + params["nn_b"][l]) * C[:, None]
        h1 = h @ params["in_w"][l].T + params["in_b"][l]
        msg = h1[src] * W
        agg = jnp.zeros((N, W.shape[1]), jnp.float32).at[dst].add(msg)
        h2 = agg @ params["out_w"][l].T + params["out_b"][l]
        h3 = jax.nn.silu(h2)
        h4 = h3 @ params["lin_w"][l].T + params["lin_b"][l]
        x = x + h4
    return x


def make_params(key, *, num_embeddings, hidden, num_filters, num_gaussians, L):
    ks = jax.random.split(key, 9)

    def lin(kw, kb, out_dim, in_dim):
        bound = 1.0 / math.sqrt(in_dim)
        w = jax.random.uniform(kw, (L, out_dim, in_dim), jnp.float32, -bound, bound)
        b = jax.random.uniform(kb, (L, out_dim), jnp.float32, -bound, bound)
        return w, b

    emb = 0.1 * jax.random.normal(ks[0], (num_embeddings, hidden), jnp.float32)
    emb = emb.at[0].set(0.0)  # padding_idx=0
    nn_w, nn_b = lin(ks[1], ks[2], num_filters, num_gaussians)
    in_w, in_b = lin(ks[3], ks[4], num_filters, hidden)
    out_w, out_b = lin(ks[5], ks[6], hidden, num_filters)
    lin_w, lin_b = lin(ks[7], ks[8], hidden, hidden)
    return dict(embedding=emb, nn_w=nn_w, nn_b=nn_b, in_w=in_w, in_b=in_b,
                out_w=out_w, out_b=out_b, lin_w=lin_w, lin_b=lin_b)


if __name__ == "__main__":
    # Small shapes: N=8 nodes, E=16 edges, hidden=32, filters=32, gaussians=16, 3 interactions.
    N, E, HIDDEN, FILTERS, GAUSS, L = 8, 16, 32, 32, 16, 3
    CUTOFF = 4.5

    root = jax.random.PRNGKey(0)
    kp, ka, ke, kd = jax.random.split(root, 4)
    params = make_params(kp, num_embeddings=100, hidden=HIDDEN,
                         num_filters=FILTERS, num_gaussians=GAUSS, L=L)

    atomic_numbers = jax.random.randint(ka, (N,), 1, 100, dtype=jnp.int32)
    edge_index = jax.random.randint(ke, (2, E), 0, N, dtype=jnp.int32)
    edge_attr = jax.random.uniform(kd, (E,), jnp.float32, 0.1, CUTOFF)

    # One-time weight preparation (transpose / pad / bf16) outside the hot path.
    prep = prepare_params(params, cutoff=CUTOFF, num_gaussians=GAUSS)

    out = painn_encoder(atomic_numbers, edge_index, edge_attr, prep, cutoff=CUTOFF)
    out = jax.block_until_ready(out)

    ref = painn_reference(atomic_numbers, edge_index, edge_attr, params,
                          cutoff=CUTOFF, num_gaussians=GAUSS)
    ref = jax.block_until_ready(ref)

    assert out.shape == (N, HIDDEN)
    err = jnp.max(jnp.abs(out - ref))
    # bf16 MXU operands (f32 accumulation) vs pure-f32 reference -> relaxed tol.
    assert jnp.allclose(out, ref, rtol=3e-2, atol=3e-2), f"max abs err {err}"
    print("KERNEL_OK")
</pallas_src>

<mosaic_0001>
module attributes {stable_mosaic.version = 11 : i64} {
  func.func @painn_kernel(%arg0: i32, %arg1: memref<128x128xbf16, #tpu.memory_space<vmem>>, %arg2: memref<128x1xf32, #tpu.memory_space<vmem>>, %arg3: memref<128x1xi32, #tpu.memory_space<vmem>>, %arg4: memref<1x128xi32, #tpu.memory_space<vmem>>, %arg5: memref<1x128xf32, #tpu.memory_space<vmem>>, %arg6: memref<1x128x128xbf16, #tpu.memory_space<vmem>>, %arg7: memref<1x1x128xf32, #tpu.memory_space<vmem>>, %arg8: memref<1x128x128xbf16, #tpu.memory_space<vmem>>, %arg9: memref<1x1x128xf32, #tpu.memory_space<vmem>>, %arg10: memref<1x128x128xbf16, #tpu.memory_space<vmem>>, %arg11: memref<1x1x128xf32, #tpu.memory_space<vmem>>, %arg12: memref<1x128x128xbf16, #tpu.memory_space<vmem>>, %arg13: memref<1x1x128xf32, #tpu.memory_space<vmem>>, %arg14: memref<128x128xf32, #tpu.memory_space<vmem>>, %arg15: memref<128x128xbf16, #tpu.memory_space<vmem>>, %arg16: memref<128x1xf32, #tpu.memory_space<vmem>>, %arg17: memref<128x128xbf16, #tpu.memory_space<vmem>>, %arg18: memref<128x128xbf16, #tpu.memory_space<vmem>>) attributes {dimension_semantics = [#tpu.dimension_semantics<arbitrary>], iteration_bounds = array<i64: 3>, scalar_prefetch = 0 : i64, scratch_operands = 4 : i64, tpu.core_type = #tpu.core_type<tc>, window_params = [{pipeline_mode = #tpu.pipeline_mode<synchronous>, transform_indices = @transform_0, window_bounds = array<i64: 128, 128>}, {pipeline_mode = #tpu.pipeline_mode<synchronous>, transform_indices = @transform_1, window_bounds = array<i64: 128, 1>}, {pipeline_mode = #tpu.pipeline_mode<synchronous>, transform_indices = @transform_2, window_bounds = array<i64: 128, 1>}, {pipeline_mode = #tpu.pipeline_mode<synchronous>, transform_indices = @transform_3, window_bounds = array<i64: 1, 128>}, {pipeline_mode = #tpu.pipeline_mode<synchronous>, transform_indices = @transform_4, window_bounds = array<i64: 1, 128>}, {transform_indices = @transform_5, window_bounds = array<i64: 1, 128, 128>}, {transform_indices = @transform_6, window_bounds = array<i64: 1, 1, 128>}, {transform_indices = @transform_7, window_bounds = array<i64: 1, 128, 128>}, {transform_indices = @transform_8, window_bounds = array<i64: 1, 1, 128>}, {transform_indices = @transform_9, window_bounds = array<i64: 1, 128, 128>}, {transform_indices = @transform_10, window_bounds = array<i64: 1, 1, 128>}, {transform_indices = @transform_11, window_bounds = array<i64: 1, 128, 128>}, {transform_indices = @transform_12, window_bounds = array<i64: 1, 1, 128>}, {pipeline_mode = #tpu.pipeline_mode<synchronous>, transform_indices = @transform_13, window_bounds = array<i64: 128, 128>}]} {
    %c0_i32 = arith.constant 0 : i32
    %0 = arith.cmpi eq, %arg0, %c0_i32 : i32
    %1 = arith.extui %0 : i1 to i32
    %c0_i32_0 = arith.constant 0 : i32
    %2 = arith.cmpi ne, %1, %c0_i32_0 : i32
    scf.if %2 {
      %cst_45 = arith.constant 0.000000e+00 : f32
      %55 = vector.broadcast %cst_45 : f32 to vector<128x128xf32>
      %c0_46 = arith.constant 0 : index
      %c0_47 = arith.constant 0 : index
      %56 = vector.load %arg14[%c0_46, %c0_47] : memref<128x128xf32, #tpu.memory_space<vmem>>, vector<128x128xf32>
      tpu.vector_store %arg14[%c0_46, %c0_47], %55 {strides = array<i32>} : memref<128x128xf32, #tpu.memory_space<vmem>>, vector<128x128xf32>,
      %c0_48 = arith.constant 0 : index
      %c0_49 = arith.constant 0 : index
      %57 = vector.load %arg2[%c0_48, %c0_49] : memref<128x1xf32, #tpu.memory_space<vmem>>, vector<128x1xf32>
      %c0_50 = arith.constant 0 : index
      %c0_51 = arith.constant 0 : index
      %58 = vector.load %arg5[%c0_50, %c0_51] : memref<1x128xf32, #tpu.memory_space<vmem>>, vector<1x128xf32>
      %59 = vector.broadcast %57 : vector<128x1xf32> to vector<128x128xf32>
      %60 = vector.broadcast %58 : vector<1x128xf32> to vector<128x128xf32>
      %61 = arith.subf %59, %60 : vector<128x128xf32>
      %62 = arith.mulf %61, %61 : vector<128x128xf32>
      %cst_52 = arith.constant -5.55555534 : f32
      %63 = vector.broadcast %cst_52 : f32 to vector<128x128xf32>
      %64 = arith.mulf %63, %62 : vector<128x128xf32>
      %65 = math.exp %64 : vector<128x128xf32>
      %66 = arith.truncf %65 : vector<128x128xf32> to vector<128x128xbf16>
      %c0_53 = arith.constant 0 : index
      %c0_54 = arith.constant 0 : index
      %67 = vector.load %arg15[%c0_53, %c0_54] : memref<128x128xbf16, #tpu.memory_space<vmem>>, vector<128x128xbf16>
      tpu.vector_store %arg15[%c0_53, %c0_54], %66 {strides = array<i32>} : memref<128x128xbf16, #tpu.memory_space<vmem>>, vector<128x128xbf16>,
      %cst_55 = arith.constant 0.69813168 : f32
      %68 = vector.broadcast %cst_55 : f32 to vector<128x1xf32>
      %69 = arith.mulf %57, %68 : vector<128x1xf32>
      %70 = math.cos %69 : vector<128x1xf32>
      %cst_56 = arith.constant 1.000000e+00 : f32
      %71 = vector.broadcast %cst_56 : f32 to vector<128x1xf32>
      %72 = arith.addf %70, %71 : vector<128x1xf32>
      %cst_57 = arith.constant 5.000000e-01 : f32
      %73 = vector.broadcast %cst_57 : f32 to vector<128x1xf32>
      %74 = arith.mulf %73, %72 : vector<128x1xf32>
      %c0_58 = arith.constant 0 : index
      %c0_59 = arith.constant 0 : index
      %75 = vector.load %arg16[%c0_58, %c0_59] : memref<128x1xf32, #tpu.memory_space<vmem>>, vector<128x1xf32>
      tpu.vector_store %arg16[%c0_58, %c0_59], %74 {strides = array<i32>} : memref<128x1xf32, #tpu.memory_space<vmem>>, vector<128x1xf32>,
      %76 = tpu.iota {dimensions = array<i32: 1>} : vector<128x128xi32>
      %c0_60 = arith.constant 0 : index
      %c0_61 = arith.constant 0 : index
      %77 = vector.load %arg3[%c0_60, %c0_61] : memref<128x1xi32, #tpu.memory_space<vmem>>, vector<128x1xi32>
      %78 = vector.broadcast %77 : vector<128x1xi32> to vector<128x128xi32>
      %79 = arith.cmpi eq, %76, %78 : vector<128x128xi32>
      %80 = arith.extui %79 : vector<128x128xi1> to vector<128x128xi32>
      %81 = arith.sitofp %80 : vector<128x128xi32> to vector<128x128xf32>
      %82 = arith.truncf %81 : vector<128x128xf32> to vector<128x128xbf16>
      %c0_62 = arith.constant 0 : index
      %c0_63 = arith.constant 0 : index
      %83 = vector.load %arg17[%c0_62, %c0_63] : memref<128x128xbf16, #tpu.memory_space<vmem>>, vector<128x128xbf16>
      tpu.vector_store %arg17[%c0_62, %c0_63], %82 {strides = array<i32>} : memref<128x128xbf16, #tpu.memory_space<vmem>>, vector<128x128xbf16>,
      %84 = tpu.iota {dimensions = array<i32: 0>} : vector<128x128xi32>
      %c0_64 = arith.constant 0 : index
      %c0_65 = arith.constant 0 : index
      %85 = vector.load %arg4[%c0_64, %c0_65] : memref<1x128xi32, #tpu.memory_space<vmem>>, vector<1x128xi32>
      %86 = vector.broadcast %85 : vector<1x128xi32> to vector<128x128xi32>
      %87 = arith.cmpi eq, %84, %86 : vector<128x128xi32>
      %88 = arith.extui %87 : vector<128x128xi1> to vector<128x128xi32>
      %89 = arith.sitofp %88 : vector<128x128xi32> to vector<128x128xf32>
      %90 = arith.truncf %89 : vector<128x128xf32> to vector<128x128xbf16>
      %c0_66 = arith.constant 0 : index
      %c0_67 = arith.constant 0 : index
      %91 = vector.load %arg18[%c0_66, %c0_67] : memref<128x128xbf16, #tpu.memory_space<vmem>>, vector<128x128xbf16>
      tpu.vector_store %arg18[%c0_66, %c0_67], %90 {strides = array<i32>} : memref<128x128xbf16, #tpu.memory_space<vmem>>, vector<128x128xbf16>,
    } else {
    }
    %c0 = arith.constant 0 : index
    %c0_1 = arith.constant 0 : index
    %3 = vector.load %arg15[%c0, %c0_1] : memref<128x128xbf16, #tpu.memory_space<vmem>>, vector<128x128xbf16>
    %c0_2 = arith.constant 0 : index
    %c0_3 = arith.constant 0 : index
    %c0_4 = arith.constant 0 : index
    %4 = vector.load %arg6[%c0_2, %c0_3, %c0_4] : memref<1x128x128xbf16, #tpu.memory_space<vmem>>, vector<1x128x128xbf16>
    %5 = vector.shape_cast %4 : vector<1x128x128xbf16> to vector<128x128xbf16>
    %cst = arith.constant dense<0.000000e+00> : vector<128x128xf32>
    %6 = tpu.matmul %3, %5, %cst {dimension_numbers = #tpu.dot_dimension_numbers<[1], [0], [0], [1], [0, 0, 1, 1], [], []>} : vector<128x128xbf16>, vector<128x128xbf16>, vector<128x128xf32> -> vector<128x128xf32>
    %c0_5 = arith.constant 0 : index
    %c0_6 = arith.constant 0 : index
    %c0_7 = arith.constant 0 : index
    %7 = vector.load %arg7[%c0_5, %c0_6, %c0_7] : memref<1x1x128xf32, #tpu.memory_space<vmem>>, vector<1x1x128xf32>
    %8 = vector.shape_cast %7 : vector<1x1x128xf32> to vector<1x128xf32>
    %9 = vector.broadcast %8 : vector<1x128xf32> to vector<128x128xf32>
    %10 = arith.addf %6, %9 : vector<128x128xf32>
    %c0_8 = arith.constant 0 : index
    %c0_9 = arith.constant 0 : index
    %11 = vector.load %arg16[%c0_8, %c0_9] : memref<128x1xf32, #tpu.memory_space<vmem>>, vector<128x1xf32>
    %12 = vector.broadcast %11 : vector<128x1xf32> to vector<128x128xf32>
    %13 = arith.mulf %10, %12 : vector<128x128xf32>
    %c0_10 = arith.constant 0 : index
    %c0_11 = arith.constant 0 : index
    %14 = vector.load %arg1[%c0_10, %c0_11] : memref<128x128xbf16, #tpu.memory_space<vmem>>, vector<128x128xbf16>
    %c0_12 = arith.constant 0 : index
    %c0_13 = arith.constant 0 : index
    %c0_14 = arith.constant 0 : index
    %15 = vector.load %arg8[%c0_12, %c0_13, %c0_14] : memref<1x128x128xbf16, #tpu.memory_space<vmem>>, vector<1x128x128xbf16>
    %16 = vector.shape_cast %15 : vector<1x128x128xbf16> to vector<128x128xbf16>
    %cst_15 = arith.constant dense<0.000000e+00> : vector<128x128xf32>
    %17 = tpu.matmul %14, %16, %cst_15 {dimension_numbers = #tpu.dot_dimension_numbers<[1], [0], [0], [1], [0, 0, 1, 1], [], []>} : vector<128x128xbf16>, vector<128x128xbf16>, vector<128x128xf32> -> vector<128x128xf32>
    %c0_16 = arith.constant 0 : index
    %c0_17 = arith.constant 0 : index
    %c0_18 = arith.constant 0 : index
    %18 = vector.load %arg9[%c0_16, %c0_17, %c0_18] : memref<1x1x128xf32, #tpu.memory_space<vmem>>, vector<1x1x128xf32>
    %19 = vector.shape_cast %18 : vector<1x1x128xf32> to vector<1x128xf32>
    %20 = vector.broadcast %19 : vector<1x128xf32> to vector<128x128xf32>
    %21 = arith.addf %17, %20 : vector<128x128xf32>
    %c0_19 = arith.constant 0 : index
    %c0_20 = arith.constant 0 : index
    %22 = vector.load %arg17[%c0_19, %c0_20] : memref<128x128xbf16, #tpu.memory_space<vmem>>, vector<128x128xbf16>
    %23 = arith.truncf %21 : vector<128x128xf32> to vector<128x128xbf16>
    %cst_21 = arith.constant dense<0.000000e+00> : vector<128x128xf32>
    %24 = tpu.matmul %22, %23, %cst_21 {dimension_numbers = #tpu.dot_dimension_numbers<[1], [0], [0], [1], [0, 0, 1, 1], [], []>} : vector<128x128xbf16>, vector<128x128xbf16>, vector<128x128xf32> -> vector<128x128xf32>
    %25 = arith.mulf %24, %13 : vector<128x128xf32>
    %c0_22 = arith.constant 0 : index
    %c0_23 = arith.constant 0 : index
    %26 = vector.load %arg18[%c0_22, %c0_23] : memref<128x128xbf16, #tpu.memory_space<vmem>>, vector<128x128xbf16>
    %27 = arith.truncf %25 : vector<128x128xf32> to vector<128x128xbf16>
    %cst_24 = arith.constant dense<0.000000e+00> : vector<128x128xf32>
    %28 = tpu.matmul %26, %27, %cst_24 {dimension_numbers = #tpu.dot_dimension_numbers<[1], [0], [0], [1], [0, 0, 1, 1], [], []>} : vector<128x128xbf16>, vector<128x128xbf16>, vector<128x128xf32> -> vector<128x128xf32>
    %29 = arith.truncf %28 : vector<128x128xf32> to vector<128x128xbf16>
    %c0_25 = arith.constant 0 : index
    %c0_26 = arith.constant 0 : index
    %c0_27 = arith.constant 0 : index
    %30 = vector.load %arg10[%c0_25, %c0_26, %c0_27] : memref<1x128x128xbf16, #tpu.memory_space<vmem>>, vector<1x128x128xbf16>
    %31 = vector.shape_cast %30 : vector<1x128x128xbf16> to vector<128x128xbf16>
    %cst_28 = arith.constant dense<0.000000e+00> : vector<128x128xf32>
    %32 = tpu.matmul %29, %31, %cst_28 {dimension_numbers = #tpu.dot_dimension_numbers<[1], [0], [0], [1], [0, 0, 1, 1], [], []>} : vector<128x128xbf16>, vector<128x128xbf16>, vector<128x128xf32> -> vector<128x128xf32>
    %c0_29 = arith.constant 0 : index
    %c0_30 = arith.constant 0 : index
    %c0_31 = arith.constant 0 : index
    %33 = vector.load %arg11[%c0_29, %c0_30, %c0_31] : memref<1x1x128xf32, #tpu.memory_space<vmem>>, vector<1x1x128xf32>
    %34 = vector.shape_cast %33 : vector<1x1x128xf32> to vector<1x128xf32>
    %35 = vector.broadcast %34 : vector<1x128xf32> to vector<128x128xf32>
    %36 = arith.addf %32, %35 : vector<128x128xf32>
    %cst_32 = arith.constant 0.000000e+00 : f32
    %37 = vector.broadcast %cst_32 : f32 to vector<128x128xf32>
    %38 = arith.subf %37, %36 : vector<128x128xf32>
    %39 = math.exp %38 : vector<128x128xf32>
    %cst_33 = arith.constant 1.000000e+00 : f32
    %40 = vector.broadcast %cst_33 : f32 to vector<128x128xf32>
    %41 = arith.addf %40, %39 : vector<128x128xf32>
    %42 = tpu.reciprocal %41 {approx = true} : vector<128x128xf32> -> vector<128x128xf32>
    %43 = arith.mulf %36, %42 : vector<128x128xf32>
    %44 = arith.truncf %43 : vector<128x128xf32> to vector<128x128xbf16>
    %c0_34 = arith.constant 0 : index
    %c0_35 = arith.constant 0 : index
    %c0_36 = arith.constant 0 : index
    %45 = vector.load %arg12[%c0_34, %c0_35, %c0_36] : memref<1x128x128xbf16, #tpu.memory_space<vmem>>, vector<1x128x128xbf16>
    %46 = vector.shape_cast %45 : vector<1x128x128xbf16> to vector<128x128xbf16>
    %cst_37 = arith.constant dense<0.000000e+00> : vector<128x128xf32>
    %47 = tpu.matmul %44, %46, %cst_37 {dimension_numbers = #tpu.dot_dimension_numbers<[1], [0], [0], [1], [0, 0, 1, 1], [], []>} : vector<128x128xbf16>, vector<128x128xbf16>, vector<128x128xf32> -> vector<128x128xf32>
    %c0_38 = arith.constant 0 : index
    %c0_39 = arith.constant 0 : index
    %c0_40 = arith.constant 0 : index
    %48 = vector.load %arg13[%c0_38, %c0_39, %c0_40] : memref<1x1x128xf32, #tpu.memory_space<vmem>>, vector<1x1x128xf32>
    %49 = vector.shape_cast %48 : vector<1x1x128xf32> to vector<1x128xf32>
    %50 = vector.broadcast %49 : vector<1x128xf32> to vector<128x128xf32>
    %51 = arith.addf %47, %50 : vector<128x128xf32>
    %c0_41 = arith.constant 0 : index
    %c0_42 = arith.constant 0 : index
    %52 = vector.load %arg14[%c0_41, %c0_42] : memref<128x128xf32, #tpu.memory_space<vmem>>, vector<128x128xf32>
    %53 = arith.addf %52, %51 : vector<128x128xf32>
    %c0_43 = arith.constant 0 : index
    %c0_44 = arith.constant 0 : index
    %54 = vector.load %arg14[%c0_43, %c0_44] : memref<128x128xf32, #tpu.memory_space<vmem>>, vector<128x128xf32>
    tpu.vector_store %arg14[%c0_43, %c0_44], %53 {strides = array<i32>} : memref<128x128xf32, #tpu.memory_space<vmem>>, vector<128x128xf32>,
    return
  }
  func.func @transform_0(%arg0: i32) -> (i32, i32) {
    %c0_i32 = arith.constant 0 : i32
    %c0_i32_0 = arith.constant 0 : i32
    %c0_i32_1 = arith.constant 0 : i32
    return %c0_i32, %c0_i32_0 : i32, i32
  }
  func.func @transform_1(%arg0: i32) -> (i32, i32) {
    %c0_i32 = arith.constant 0 : i32
    %c0_i32_0 = arith.constant 0 : i32
    %c0_i32_1 = arith.constant 0 : i32
    return %c0_i32, %c0_i32_0 : i32, i32
  }
  func.func @transform_2(%arg0: i32) -> (i32, i32) {
    %c0_i32 = arith.constant 0 : i32
    %c0_i32_0 = arith.constant 0 : i32
    %c0_i32_1 = arith.constant 0 : i32
    return %c0_i32, %c0_i32_0 : i32, i32
  }
  func.func @transform_3(%arg0: i32) -> (i32, i32) {
    %c0_i32 = arith.constant 0 : i32
    %c0_i32_0 = arith.constant 0 : i32
    %c0_i32_1 = arith.constant 0 : i32
    return %c0_i32, %c0_i32_0 : i32, i32
  }
  func.func @transform_4(%arg0: i32) -> (i32, i32) {
    %c0_i32 = arith.constant 0 : i32
    %c0_i32_0 = arith.constant 0 : i32
    %c0_i32_1 = arith.constant 0 : i32
    return %c0_i32, %c0_i32_0 : i32, i32
  }
  func.func @transform_5(%arg0: i32) -> (i32, i32, i32) {
    %c0_i32 = arith.constant 0 : i32
    %c0_i32_0 = arith.constant 0 : i32
    %c0_i32_1 = arith.constant 0 : i32
    return %arg0, %c0_i32, %c0_i32_0 : i32, i32, i32
  }
  func.func @transform_6(%arg0: i32) -> (i32, i32, i32) {
    %c0_i32 = arith.constant 0 : i32
    %c0_i32_0 = arith.constant 0 : i32
    %c0_i32_1 = arith.constant 0 : i32
    return %arg0, %c0_i32, %c0_i32_0 : i32, i32, i32
  }
  func.func @transform_7(%arg0: i32) -> (i32, i32, i32) {
    %c0_i32 = arith.constant 0 : i32
    %c0_i32_0 = arith.constant 0 : i32
    %c0_i32_1 = arith.constant 0 : i32
    return %arg0, %c0_i32, %c0_i32_0 : i32, i32, i32
  }
  func.func @transform_8(%arg0: i32) -> (i32, i32, i32) {
    %c0_i32 = arith.constant 0 : i32
    %c0_i32_0 = arith.constant 0 : i32
    %c0_i32_1 = arith.constant 0 : i32
    return %arg0, %c0_i32, %c0_i32_0 : i32, i32, i32
  }
  func.func @transform_9(%arg0: i32) -> (i32, i32, i32) {
    %c0_i32 = arith.constant 0 : i32
    %c0_i32_0 = arith.constant 0 : i32
    %c0_i32_1 = arith.constant 0 : i32
    return %arg0, %c0_i32, %c0_i32_0 : i32, i32, i32
  }
  func.func @transform_10(%arg0: i32) -> (i32, i32, i32) {
    %c0_i32 = arith.constant 0 : i32
    %c0_i32_0 = arith.constant 0 : i32
    %c0_i32_1 = arith.constant 0 : i32
    return %arg0, %c0_i32, %c0_i32_0 : i32, i32, i32
  }
  func.func @transform_11(%arg0: i32) -> (i32, i32, i32) {
    %c0_i32 = arith.constant 0 : i32
    %c0_i32_0 = arith.constant 0 : i32
    %c0_i32_1 = arith.constant 0 : i32
    return %arg0, %c0_i32, %c0_i32_0 : i32, i32, i32
  }
  func.func @transform_12(%arg0: i32) -> (i32, i32, i32) {
    %c0_i32 = arith.constant 0 : i32
    %c0_i32_0 = arith.constant 0 : i32
    %c0_i32_1 = arith.constant 0 : i32
    return %arg0, %c0_i32, %c0_i32_0 : i32, i32, i32
  }
  func.func @transform_13(%arg0: i32) -> (i32, i32) {
    %c0_i32 = arith.constant 0 : i32
    %c0_i32_0 = arith.constant 0 : i32
    %c0_i32_1 = arith.constant 0 : i32
    return %c0_i32, %c0_i32_0 : i32, i32
  }
}

</mosaic_0001>

<bundles_post_ra>
// kernel: tpu_custom_call.1
= control target key start
LH: loop header
LB: loop body
LE: loop exit
PB: predicated region body
PF: predicated region fallthrough
CT: control target
= control target key end

     0   :  { %s7411_s0 = inlined_call_operand.vmem [shape: bf16[128,128], index: 0, kind: input, shape index: {}]   ;;  %s7412_s1 = inlined_call_operand.vmem [shape: f32[128,1], index: 1, kind: input, shape index: {}]   ;;  %s7413_s2 = inlined_call_operand.vmem [shape: s32[128,1], index: 2, kind: input, shape index: {}]   ;;  %s7414_s3 = inlined_call_operand.vmem [shape: s32[1,128], index: 3, kind: input, shape index: {}]   ;;  %s7415_s4 = inlined_call_operand.vmem [shape: f32[1,128], index: 4, kind: input, shape index: {}]   ;;  %s7416_s5 = inlined_call_operand.vmem [shape: bf16[3,128,128], index: 5, kind: input, shape index: {}]   ;;  %s7417_s6 = inlined_call_operand.vmem [shape: f32[3,1,128], index: 6, kind: input, shape index: {}]   ;;  %s7418_s7 = inlined_call_operand.hbm [shape: bf16[3,128,128], index: 7, kind: input, shape index: {}]   ;;  %s7419_s8 = inlined_call_operand.vmem [shape: f32[3,1,128], index: 8, kind: input, shape index: {}]   ;;  %s7420_s9 = inlined_call_operand.hbm [shape: bf16[3,128,128], index: 9, kind: input, shape index: {}]   ;;  %s7421_s10 = inlined_call_operand.vmem [shape: f32[3,1,128], index: 10, kind: input, shape index: {}]   ;;  %s7422_s11 = inlined_call_operand.hbm [shape: bf16[3,128,128], index: 11, kind: input, shape index: {}]   ;;  %s7423_s12 = inlined_call_operand.vmem [shape: f32[3,1,128], index: 12, kind: input, shape index: {}]   ;;  %s7424_s13 = inlined_call_operand.hbm [shape: f32[128,128], index: 13, kind: output, shape index: {}]  }
   0x1   :  { %7437 = sst [smem:[#allocation18_spill]] %s7411_s0 }
   0x2   :  { %7438 = sst [smem:[#allocation19_spill]] %s7413_s2 }
   0x3   :  { %7439 = sst [smem:[#allocation20_spill]] %s7414_s3 }
   0x4   :  { %7440 = sst [smem:[#allocation21_spill]] %s7415_s4 }
   0x5   :  { %7441 = sst [smem:[#allocation22_spill]] %s7418_s7 }
   0x6   :  { %7442 = sst [smem:[#allocation23_spill]] %s7420_s9 }
   0x7   :  { %7443 = sst [smem:[#allocation24_spill]] %s7424_s13 }
   0x8   :  { %18 = vsyncpa [#allocation7], 0 }
   0x9   :  { %20 = vsyncpa [#allocation7 + $0x1], 0 }
   0xa   :  { %21 = vsyncpa [#allocation10], 0 }
   0xb   :  { %23 = vsyncpa [#allocation10 + $0x1], 0 }
   0xc   :  { %24 = vsyncpa [#allocation8], 0  ;;  %s5207_s25 = smov 0   ;;  %s5209_s26 = smov 0  }
   0xd   :  { %s5211_s27 = smov 0   ;;  %s5213_s28 = smov 0  }
   0xe LB: > { %s5226_s29 = sadd.s32 4294967295, %s5118_s28   ;;  %s5229_s30 = sadd.s32 1, %s5118_s28   ;;  %s5118_s28 = sphi %s5213_s28, %s7499_s28   ;;  %s5114_s27 = sphi %s5211_s27, %s7503_s27   ;;  %s5110_s26 = sphi %s5209_s26, %s7502_s26   ;;  %s5106_s25 = sphi %s5207_s25, %s7501_s25  }
   0xf   : > { %7444 = sst [smem:[#allocation16_spill]] %s5229_s30  ;;  %s191_s14 = ssub.s32 %s5118_s28, %s5229_s30 }
  0x10   : > { %s194_s15 = sadd.s32 1, %s5114_s27  ;;  %p192_p0 = scmp.eq.s32.totalorder %s191_s14, 0 }
  0x11   : > { %p201_p1 = scmp.ne.s32.totalorder %s5114_s27, %s5110_s26  ;;  %p202_p2 = scmp.eq.s32.totalorder %s5118_s28, 0 }
  0x12   : > { %p207_p3 = scmp.ne.s32.totalorder %s5110_s26, %s5106_s25  ;;  %p208_p5 = scmp.eq.s32.totalorder %s5226_s29, 0 }
  0x13   : > { %s5239_s16 = scalar_select %p192_p0, %s5114_s27, %s194_s15  }
  0x14   : > { %p203_p4 = por %p202_p2, %p201_p1  ;;  %p4698_p6 = scmp.lt.s32.totalorder %s5118_s28, 3 }
  0x15   : > { %7445 = sst [smem:[#allocation17_spill]] %s5239_s16  ;;  %p5243_p7 = por %p208_p5, %p207_p3 }
  0x16   : > { %s7425_s18 = sand.u32 1, %s5114_s27   ;;  %s5253_s20 = sshll.u32 %s5118_s28, 10 }
  0x17   : > { %s7446_s17 = scalar_select %p5243_p7, 1, 0 }
  0x18   : > { %s5250_s19 = sshll.u32 %s7425_s18, 6  ;;  %p5255_p8 = pnand %p4698_p6, %p203_p4 }
  0x19   : > { %s438_s22 = sand.u32 1, %s5118_s28   ;;  %s7448_s9 = sld [smem:[#allocation23_spill]] }
  0x1a   : > { %s442_s14 = scalar_lea.vmem [#allocation9], %s5250_s19  ;;  %s5271_s18 = scalar_lea.sflag [#allocation10], %s438_s22 }
  0x1b   : > { %s449_s15 = sshll.u32 %s442_s14, 4  ;;  %p5277_p12 = pneg %p5255_p8  ;;  %s5268_s15 = int_to_ptr.vmem [resolvable:$true] %s449_s15 }
  0x1f   : > { %s5264_s25 = scalar_lea.hbm %s7448_s9, %s5253_s20  ;;  %s4965_s14 = scalar_lea.hbm %s7448_s9, 3072 }
  0x20   : > { %s4960_s16 = scalar_lea.hbm %s5264_s25, 1024  ;;  %p4966_p1 = scmp.lt.u32.totalorder %s5264_s25, %s7448_s9 }
  0x21   : > { %p4961_p11 = scmp.ne.s32.totalorder %s5264_s25, %s4960_s16  ;;  %p4967_p2 = scmp.lt.u32.totalorder %s4965_s14, %s4960_s16 }
  0x22   : > { %p4969_p4 = scmp.lt.u32.totalorder %s4960_s16, %s5264_s25 }
  0x23   : > { %p4963_p13 = pnand %p5277_p12, %p4961_p11  ;;  %p4968_p3 = por %p4967_p2, %p4966_p1 }
  0x25   : > { %p4964_p0 = pneg %p4963_p13  ;;  %p4970_p5 = por %p4969_p4, %p4968_p3 }
  0x27   : > { %p4971_p6 = pnand %p4970_p5, %p4964_p0 }
  0x29   : > { %4974 = shalt.err (!%p4971_p6)
}
  0x2a   : > { %s4975_s22 = scalar_lea.vmem %s5268_s15, 1024  ;;  %s5120_s23 = smov [#allocation9]  }
  0x2b   : > { %p4976_p11 = scmp.ne.s32.totalorder %s5268_s15, %s4975_s22  ;;  %s4980_s24 = sshll.u32 %s5120_s23, 4  ;;  %s4981_s24 = int_to_ptr.vmem [resolvable:$false] %s4980_s24 }
  0x2c   : > { %s4982_s0 = scalar_lea.vmem %s4981_s24, 2048  ;;  %p4983_p10 = scmp.lt.s32.totalorder %s5268_s15, %s4981_s24 }
  0x2d   : > { %p4978_p13 = pnand %p4976_p11, %p5277_p12  ;;  %p4984_p7 = scmp.lt.s32.totalorder %s4982_s0, %s4975_s22 }
  0x2f   : > { %p4979_p9 = pneg %p4978_p13  ;;  %p4985_p1 = por %p4984_p7, %p4983_p10 }
  0x31   : > { %p4986_p2 = pnand %p4985_p1, %p4979_p9 }
  0x33   : > { %4989 = shalt.err (!%p4986_p2)
}
  0x34   : > { %s7431_s13 = smov 64   ;;  %s7433_s16 = smov 4  }
  0x35   : > { %4694 = dma.hbm_to_vmem [thread:$0]  (!%p5255_p8), %s5264_s25, 1024, %s5268_s15, %s5271_s18, %s7431_s13, %s7431_s13, %s7433_s16  }
  0x36   : > { %p7450_p7 = scmp.lt.s32.totalorder %s5118_s28, 4  ;;  %p7451_p9 = scmp.ge.s32.totalorder %s5118_s28, 1 }
  0x37   : > { %s7453_s7 = sld [smem:[#allocation22_spill]]  ;;  %s415_s0 = scalar_lea.vmem [#allocation6], %s5250_s19 }
  0x38   : > { %p5308_p10 = pnand %p7451_p9, %p7450_p7  ;;  %s422_s9 = sshll.u32 %s415_s0, 4  ;;  %s5319_s9 = int_to_ptr.vmem [resolvable:$true] %s422_s9 }
  0x39   : > { %s5325_s28 = scalar_lea.hbm %s7422_s11, %s5253_s20  ;;  %s7454_s13 = sand.u32 1, %s5114_s27  }
  0x3a   : > { %s7452_s14 = scalar_select %p5308_p10, 1, 0 }
  0x3b   : > { %s5329_s16 = scalar_lea.sflag [#allocation7], %s7454_s13 }
  0x3d   : > { %s5316_s24 = scalar_lea.hbm %s7453_s7, %s5253_s20  ;;  %s4995_s4 = scalar_lea.hbm %s7453_s7, 3072 }
  0x3e   : > { %s4990_s3 = scalar_lea.hbm %s5316_s24, 1024  ;;  %p4996_p5 = scmp.lt.u32.totalorder %s5316_s24, %s7453_s7 }
  0x3f   : > { %p4991_p0 = scmp.ne.s32.totalorder %s5316_s24, %s4990_s3  ;;  %p4997_p6 = scmp.lt.u32.totalorder %s4995_s4, %s4990_s3 }
  0x40   : > { %p4999_p13 = scmp.lt.u32.totalorder %s4990_s3, %s5316_s24 }
  0x41   : > { %p4993_p3 = pnand %p4991_p0, %p5277_p12  ;;  %p4998_p11 = por %p4997_p6, %p4996_p5 }
  0x43   : > { %p4994_p4 = pneg %p4993_p3  ;;  %p5000_p1 = por %p4999_p13, %p4998_p11 }
  0x45   : > { %p5001_p2 = pnand %p5000_p1, %p4994_p4 }
  0x47   : > { %5004 = shalt.err (!%p5001_p2)
}
  0x48   : > { %s5005_s20 = scalar_lea.vmem %s5319_s9, 1024  ;;  %s5123_s13 = smov [#allocation6]  }
  0x49   : > { %p5006_p7 = scmp.ne.s32.totalorder %s5319_s9, %s5005_s20  ;;  %s5010_s25 = sshll.u32 %s5123_s13, 4  ;;  %s5011_s25 = int_to_ptr.vmem [resolvable:$false] %s5010_s25 }
  0x4a   : > { %s5012_s2 = scalar_lea.vmem %s5011_s25, 2048  ;;  %p5013_p3 = scmp.lt.s32.totalorder %s5319_s9, %s5011_s25 }
  0x4b   : > { %p5008_p9 = pnand %p5006_p7, %p5277_p12  ;;  %p5014_p10 = scmp.lt.s32.totalorder %s5012_s2, %s5005_s20 }
  0x4d   : > { %p5009_p0 = pneg %p5008_p9  ;;  %p5015_p5 = por %p5014_p10, %p5013_p3 }
  0x4f   : > { %p5016_p6 = pnand %p5015_p5, %p5009_p0 }
  0x51   : > { %5019 = shalt.err (!%p5016_p6)
}
  0x52   : > { %s7455_s3 = smov 4   ;;  %s7456_s4 = smov 64  }
  0x53   : > { %4691 = dma.hbm_to_vmem [thread:$0]  (!%p5255_p8), %s5316_s24, 1024, %s5319_s9, %s5329_s16, %s7456_s4, %s7456_s4, %s7455_s3  }
  0x54   : > { %s469_s15 = scalar_lea.vmem [#allocation11], %s5250_s19  ;;  %s5020_s23 = scalar_lea.hbm %s5325_s28, 1024 }
  0x55   : > { %s476_s22 = sshll.u32 %s469_s15, 4  ;;  %p5021_p10 = scmp.ne.s32.totalorder %s5325_s28, %s5020_s23  ;;  %s5357_s22 = int_to_ptr.vmem [resolvable:$true] %s476_s22 }
  0x56   : > { %s5025_s13 = scalar_lea.hbm %s7422_s11, 3072  ;;  %p5026_p13 = scmp.lt.u32.totalorder %s5325_s28, %s7422_s11 }
  0x57   : > { %p5023_p4 = pnand %p5021_p10, %p5277_p12  ;;  %p5027_p1 = scmp.lt.u32.totalorder %s5025_s13, %s5020_s23 }
  0x58   : > { %p5029_p7 = scmp.lt.u32.totalorder %s5020_s23, %s5325_s28 }
  0x59   : > { %p5024_p11 = pneg %p5023_p4  ;;  %p5028_p2 = por %p5027_p1, %p5026_p13 }
  0x5b   : > { %p5030_p9 = por %p5029_p7, %p5028_p2 }
  0x5d   : > { %p5031_p0 = pnand %p5030_p9, %p5024_p11 }
  0x5f   : > { %5034 = shalt.err (!%p5031_p0)
}
  0x60   : > { %s5035_s9 = scalar_lea.vmem %s5357_s22, 1024  ;;  %s5124_s19 = smov [#allocation11]  }
  0x61   : > { %p5036_p3 = scmp.ne.s32.totalorder %s5357_s22, %s5035_s9  ;;  %s5040_s16 = sshll.u32 %s5124_s19, 4  ;;  %s5041_s16 = int_to_ptr.vmem [resolvable:$false] %s5040_s16 }
  0x62   : > { %s5042_s24 = scalar_lea.vmem %s5041_s16, 2048  ;;  %p5043_p10 = scmp.lt.s32.totalorder %s5357_s22, %s5041_s16 }
  0x63   : > { %p5038_p5 = pnand %p5036_p3, %p5277_p12  ;;  %p5044_p4 = scmp.lt.s32.totalorder %s5042_s24, %s5035_s9 }
  0x65   : > { %p5039_p6 = pneg %p5038_p5  ;;  %p5045_p13 = por %p5044_p4, %p5043_p10 }
  0x67   : > { %p5046_p1 = pnand %p5045_p13, %p5039_p6 }
  0x69   : > { %5049 = shalt.err (!%p5046_p1)
}
  0x6a   : > { %4697 = dma.hbm_to_vmem [thread:$0]  (!%p5255_p8), %s5325_s28, 1024, %s5357_s22, %s5271_s18, %s7456_s4, %s7456_s4, %s7455_s3  }
  0x6b   : > { %p7457_p12 = scmp.ne.s32.totalorder %s7452_s14, 0 }
  0x6c   : > { %s496_s30 = sand.u32 (!%p7457_p12), 1, %s5110_s26   ;;  %p7458_p11 = scmp.ne.s32.totalorder (!%p7457_p12), %s7446_s17, 0 }
  0x6d   : > { %494 = sbr.rel (%p7457_p12) target bundleno = 1849 (0x739), region = 72  ;;  %s4170_s15 = sshll.u32 (!%p7457_p12), %s496_s30, 6 }
  0x6e   : > { %s497_s23 = scalar_lea.sflag (!%p7457_p12), [#allocation7], %s496_s30  ;;  %s5387_s0 = scalar_lea.vmem (!%p7457_p12), [#allocation6], %s4170_s15 }
  0x74   : > { %5093 = dma.done.wait (%p7458_p11), %s497_s23, 1024  }
  0x75   : > { %5095 = vsyncadd (%p7458_p11), %s497_s23, 4294966272  ;;  %s505_s21 = sand.u32 1, %s5226_s29   ;;  %s5394_s18 = scalar_lea.vmem [#allocation9], %s4170_s15 }
  0x76   : > { %s506_s20 = scalar_lea.sflag [#allocation10], %s505_s21 }
  0x77   : > { %5097 = dma.done.wait (%p7458_p11), %s506_s20, 2048  }
  0x78   : > { %5099 = vsyncadd (%p7458_p11), %s506_s20, 4294965248  ;;  %p583_p8 = scmp.lt.s32.totalorder %s5226_s29, 2  ;;  %s5426_s7 = scalar_lea.vmem [#allocation11], %s4170_s15 }
  0x79   : > { %p4175_p2 = scmp.ne.s32.totalorder %s5226_s29, 0 }
  0x7a   : > { %s5402_s14 = scalar_select %p583_p8, %s5226_s29, 2 }
  0x7b   : > { %604 = sbr.rel (%p4175_p2) target bundleno = 580 (0x244), region = 88  ;;  %v623_v0 = vld [vmem:[%s7412_s1 + $0x10] sm:$0xff] (!%p4175_p2)  ;;  %v5125_v1 = vmov (!%p4175_p2), 0   ;;  %v621_v3 = vld [vmem:[%s7412_s1] sm:$0xff] (!%p4175_p2)  ;;  %v624_v5 = vld [vmem:[%s7412_s1 + $0x18] sm:$0xff] (!%p4175_p2)  ;;  %s7469_s3 = sld [smem:[#allocation19_spill]] (!%p4175_p2) }
  0x7c   : > { %s4325_s28 = sshll.u32 %s5402_s14, 6  ;;  %s590_s22 = scalar_lea.vmem %s7417_s6, %s5402_s14  ;;  %4748 = vset.pattern.permute.xlu1 (!%p4175_p2), %v5125_v1  ;;  %4747 = vset.pattern.permute.xlu0 (!%p4175_p2), %v5125_v1  ;;  %v5432_v2 = vmul.f32 (!%p4175_p2), 0.6981317, %v623_v0  ;;  %v5437_v4 = vmul.f32 (!%p4175_p2), 0.6981317, %v621_v3  ;;  %v5447_v8 = vld [vmem:[%s7412_s1 + $0x8] sm:$0xff] (!%p4175_p2) }
  0x7d   : > { %s5412_s17 = scalar_lea.vmem %s7416_s5, %s4325_s28  ;;  %s593_s19 = scalar_lea.vmem %s7419_s8, %s5402_s14  ;;  %650 = vperm.xlu1 (!%p4175_p2), %4748, %v623_v0   ;;  %640 = vperm.xlu0 (!%p4175_p2), %4747, %v621_v3   ;;  %v5459_v15 = vld [vmem:[%s7412_s1 + $0x28] sm:$0xff] (!%p4175_p2)  ;;  %v5461_v17 = vmul.f32 (!%p4175_p2), 0.6981317, %v624_v5  ;;  %v5466_v18 = vld [vmem:[%s7412_s1 + $0x20] sm:$0xff] (!%p4175_p2)  ;;  %v5474_v25 = vld [vmem:[%s7412_s1 + $0x38] sm:$0xff] (!%p4175_p2) }
  0x7e   : > { %s596_s30 = scalar_lea.vmem %s7421_s10, %s5402_s14  ;;  %s599_s20 = scalar_lea.vmem %s7423_s12, %s5402_s14  ;;  %v1042_v6 = vand.u32 (!%p4175_p2), 2147483647, %v5432_v2  ;;  %v1045_v7 = vand.u32 (!%p4175_p2), 2139095040, %v5432_v2  ;;  %v836_v9 = vand.u32 (!%p4175_p2), 2147483647, %v5437_v4  ;;  %v839_v10 = vand.u32 (!%p4175_p2), 2139095040, %v5437_v4 }
  0x7f   : > { %v1148_v24 = vand.u32 (!%p4175_p2), 2139095040, %v5461_v17  ;;  %v627_v26 = vld [vmem:[%s7412_s1 + $0x30] sm:$0xff] (!%p4175_p2)  ;;  %v1145_v36 = vand.u32 (!%p4175_p2), 2147483647, %v5461_v17  ;;  %v630_v37 = vld [vmem:[%s7412_s1 + $0x48] sm:$0xff] (!%p4175_p2)  ;;  %v629_v45 = vld [vmem:[%s7412_s1 + $0x40] sm:$0xff] (!%p4175_p2) }
  0x80   : > { %v1046_v11 = vshrl.u32 (!%p4175_p2), %v1045_v7, 23  ;;  %v1049_v12 = vand.u32 (!%p4175_p2), 8388607, %v1042_v6  ;;  %v840_v13 = vshrl.u32 (!%p4175_p2), %v839_v10, 23  ;;  %v843_v14 = vand.u32 (!%p4175_p2), 8388607, %v836_v9 }
  0x81   : > { %655 = vperm.xlu1 (!%p4175_p2), %4748, %v624_v5   ;;  %645 = vperm.xlu0 (!%p4175_p2), %4747, %v5447_v8   ;;  %v1149_v28 = vshrl.u32 (!%p4175_p2), %v1148_v24, 23  ;;  %v5126_v39 = vmov (!%p4175_p2), 683565275   ;;  %v5127_v41 = vmov (!%p4175_p2), 2475754826   ;;  %v632_v58 = vld [vmem:[%s7412_s1 + $0x58] sm:$0xff] (!%p4175_p2) }
  0x82   : > { %v4185_v16 = vadd.s32 4294967169, %v1046_v11  ;;  %v4177_v19 = vadd.s32 4294967169, %v840_v13  ;;  %v1050_v20 = vor.u32 8388608, %v1049_v12  ;;  %v844_v22 = vor.u32 8388608, %v843_v14  ;;  %s7486_s25 = sld [smem:[#allocation21_spill]]  ;;  %s7493_s16 = sld [smem:[#allocation20_spill]] }
  0x83   : > { %v5128_v43 = vmov 2131351028   ;;  %v5129_v46 = vmov 2102212464   ;;  %v5130_v48 = vmov 920167782  }
  0x84   : > { %v1052_v21 = vadd.s32 1, %v4185_v16  ;;  %v846_v23 = vadd.s32 1, %v4177_v19  ;;  %v5481_v31 = vshll.u32 %v1050_v20, 8  ;;  %v5488_v35 = vshll.u32 %v844_v22, 8  ;;  %v631_v16 = vld [vmem:[%s7412_s1 + $0x50] sm:$0xff] }
  0x85   : > { %665 = vperm.xlu1 %4748, %v5459_v15   ;;  %660 = vperm.xlu0 %4747, %v5466_v18   ;;  %v5503_v50 = vadd.s32 4294967169, %v1149_v28  ;;  %v5131_v56 = vmov 1326507024   ;;  %vm1044_vm13 = vcmp.lt.s32.totalorder %v5432_v2, 0 }
  0x86   : > { %vm1053_vm0 = vcmp.gt.s32.totalorder %v1052_v21, 0  ;;  %vm847_vm1 = vcmp.gt.s32.totalorder %v846_v23, 0 }
  0x87   : > { %v1054_v27 = vsel %vm1053_vm0, %v1052_v21, 0  ;;  %v848_v32 = vsel %vm847_vm1, %v846_v23, 0 }
  0x88   : > { %v5479_v29 = vshrl.u32 %v1054_v27, 5  ;;  %v1056_v30 = vand.u32 31, %v1054_v27  ;;  %v5484_v33 = vshrl.u32 %v848_v32, 5  ;;  %v5486_v34 = vand.u32 31, %v848_v32 }
  0x89   : > { %675 = vperm.xlu1 %4748, %v5474_v25   ;;  %670 = vperm.xlu0 %4747, %v627_v26  }
  0x8a   : > { %v1057_v38 = vsub.s32 32, %v1056_v30  ;;  %v1059_v40 = vshll.u32 %v5126_v39, %v1056_v30  ;;  %v1062_v42 = vshll.u32 %v5127_v41, %v1056_v30  ;;  %v1065_v44 = vshll.u32 %v5128_v43, %v1056_v30 }
  0x8b   : > { %v1068_v47 = vshll.u32 %v5129_v46, %v1056_v30  ;;  %v1071_v49 = vshll.u32 %v5130_v48, %v1056_v30  ;;  %vm1074_vm2 = vcmp.lt.s32.totalorder %v5479_v29, 1  ;;  %vm1075_vm3 = vcmp.lt.s32.totalorder %v5479_v29, 2 }
  0x8c   : > { %v1058_v51 = vshrl.u32 %v5126_v39, %v1057_v38  ;;  %v1060_v52 = vshrl.u32 %v5127_v41, %v1057_v38  ;;  %v1063_v53 = vshrl.u32 %v5128_v43, %v1057_v38  ;;  %v1066_v54 = vshrl.u32 %v5129_v46, %v1057_v38 }
  0x8d   : > { %685 = vperm.xlu1 %4748, %v630_v37   ;;  %v1069_v55 = vshrl.u32 %v5130_v48, %v1057_v38  ;;  %v1072_v57 = vshrl.u32 %v5131_v56, %v1057_v38  ;;  %vm1077_vm4 = vcmp.lt.s32.totalorder %v5479_v29, 4  ;;  %680 = vperm.xlu0 %4747, %v629_v45   ;;  %v851_v62 = vsub.s32 32, %v5486_v34 }
  0x8e   : > { %v1061_v59 = vor.u32 %v1060_v52, %v1059_v40  ;;  %v1064_v60 = vor.u32 %v1063_v53, %v1062_v42  ;;  %v1067_v61 = vor.u32 %v1066_v54, %v1065_v44  ;;  %vm1076_vm5 = vcmp.lt.s32.totalorder %v5479_v29, 3 }
  0x8f   : > { %v1070_v63 = vor.u32 %v1069_v55, %v1068_v47  ;;  %v1073_v0 = vor.u32 %v1072_v57, %v1071_v49  ;;  %v853_v1 = vshll.u32 %v5126_v39, %v5486_v34  ;;  %v856_v14 = vshll.u32 %v5127_v41, %v5486_v34 }
  0x90   : > { %v1078_v3 = vsel %vm1074_vm2, %v1058_v51, %v1061_v59  ;;  %v1079_v5 = vsel %vm1077_vm4, %v1067_v61, 2102212464  ;;  %v1082_v7 = vsel %vm1074_vm2, %v1061_v59, %v1064_v60  ;;  %v1086_v10 = vsel %vm1074_vm2, %v1064_v60, %v1067_v61 }
  0x91   : > { %695 = vperm.xlu1 %4748, %v632_v58   ;;  %v1080_v11 = vsel %vm1076_vm5, %v1064_v60, %v1079_v5  ;;  %v1083_v12 = vsel %vm1077_vm4, %v1070_v63, 920167782  ;;  %v1087_v13 = vsel %vm1077_vm4, %v1073_v0, 1326507024  ;;  %v852_v21 = vshrl.u32 %v5126_v39, %v851_v62  ;;  %690 = vperm.xlu0 %4747, %v631_v16  }
  0x92   : > { %v1084_v19 = vsel %vm1076_vm5, %v1067_v61, %v1083_v12  ;;  %v1088_v20 = vsel %vm1076_vm5, %v1070_v63, %v1087_v13  ;;  %v854_v22 = vshrl.u32 %v5127_v41, %v851_v62  ;;  %v1081_v23 = vsel %vm1075_vm3, %v1078_v3, %v1080_v11 }
  0x93   : > { %v1085_v24 = vsel %vm1075_vm3, %v1082_v7, %v1084_v19  ;;  %v1089_v26 = vsel %vm1075_vm3, %v1086_v10, %v1088_v20  ;;  %v857_v27 = vshrl.u32 %v5128_v43, %v851_v62  ;;  %v859_v42 = vshll.u32 %v5128_v43, %v5486_v34 }
  0x94   : > { %v5547_v28 = vmul.u32.u64.low %v5481_v31, %v1089_v26  ;;  %v5548_v30 = vmul.u32.u64.high %v5481_v31, %v1089_v26, %v5547_v28  ;;  %v5551_v32 = vmul.u32.u64.low %v5481_v31, %v1085_v24  ;;  %v5552_v37 = vmul.u32.u64.high %v5481_v31, %v1085_v24, %v5551_v32 }
  0x95   : > { %v855_v38 = vor.u32 %v854_v22, %v853_v1  ;;  %v858_v40 = vor.u32 %v857_v27, %v856_v14  ;;  %v860_v44 = vshrl.u32 %v5129_v46, %v851_v62  ;;  %v862_v29 = vshll.u32 %v5129_v46, %v5486_v34 }
  0x96   : > { %v863_v45 = vshrl.u32 %v5130_v48, %v851_v62  ;;  %v865_v47 = vshll.u32 %v5130_v48, %v5486_v34  ;;  %v866_v49 = vshrl.u32 %v5131_v56, %v851_v62  ;;  %v1097_v51 = vmul.u32 %v5481_v31, %v1081_v23 }
  0x97   : > { %v861_v52 = vor.u32 %v860_v44, %v859_v42  ;;  %vm868_vm6 = vcmp.lt.s32.totalorder %v5484_v33, 1  ;;  %vm869_vm7 = vcmp.lt.s32.totalorder %v5484_v33, 2  ;;  %vm1099_vm8 = vc.u32 %v5548_v30, %v5551_v32 }
  0x98   : > { %v1100_v53 = vadd.s32 1, %v5552_v37  ;;  %v864_v54 = vor.u32 %v863_v45, %v862_v29  ;;  %vm870_vm9 = vcmp.lt.s32.totalorder %v5484_v33, 3  ;;  %v867_v55 = vor.u32 %v866_v49, %v865_v47 }
  0x99   : > { %vm871_vm10 = vcmp.lt.s32.totalorder %v5484_v33, 4  ;;  %v872_v34 = vsel %vm868_vm6, %v852_v21, %v855_v38  ;;  %v876_v57 = vsel %vm868_vm6, %v855_v38, %v858_v40  ;;  %v880_v60 = vsel %vm868_vm6, %v858_v40, %v861_v52 }
  0x9a   : > { %v1101_v31 = vsel %vm1099_vm8, %v1100_v53, %v5552_v37  ;;  %v873_v58 = vsel %vm871_vm10, %v861_v52, 2102212464  ;;  %v877_v59 = vsel %vm871_vm10, %v864_v54, 920167782  ;;  %v881_v0 = vsel %vm871_vm10, %v867_v55, 1326507024 }
  0x9b   : > { %v1102_v61 = vadd.s32 %v1101_v31, %v1097_v51  ;;  %v874_v62 = vsel %vm870_vm9, %v858_v40, %v873_v58  ;;  %v878_v63 = vsel %vm870_vm9, %v861_v52, %v877_v59  ;;  %v882_v5 = vsel %vm870_vm9, %v864_v54, %v881_v0 }
  0x9c   : > { %v875_v1 = vsel %vm869_vm7, %v872_v34, %v874_v62  ;;  %v879_v3 = vsel %vm869_vm7, %v876_v57, %v878_v63  ;;  %v1155_v7 = vadd.s32 1, %v5503_v50  ;;  %v883_v11 = vsel %vm869_vm7, %v880_v60, %v882_v5 }
  0x9d   : > { %v1103_v10 = vadd.s32 536870912, %v1102_v61  ;;  %v5581_v12 = vmul.u32.u64.low %v5488_v35, %v879_v3  ;;  %v5582_v13 = vmul.u32.u64.high %v5488_v35, %v879_v3, %v5581_v12  ;;  %v891_v21 = vmul.u32 %v5488_v35, %v875_v1 }
  0x9e   : > { %v5586_v14 = vmul.u32.u64.low %v5488_v35, %v883_v11  ;;  %v5587_v16 = vmul.u32.u64.high %v5488_v35, %v883_v11, %v5586_v14  ;;  %vm1156_vm11 = vcmp.gt.s32.totalorder %v1155_v7, 0  ;;  %v5594_v50 = vand.u32 8388607, %v1145_v36 }
  0x9f   : > { %v5589_v19 = vshrl.u32 %v1103_v10, 30  ;;  %v1157_v20 = vsel %vm1156_vm11, %v1155_v7, 0  ;;  %v894_v23 = vadd.s32 1, %v5582_v13  ;;  %v5605_v37 = vmul.f32 0.6981317, %v5447_v8 }
  0xa0   : > { %v1159_v33 = vand.u32 31, %v1157_v20  ;;  %vm893_vm12 = vc.u32 %v5587_v16, %v5581_v12  ;;  %v1153_v35 = vor.u32 8388608, %v5594_v50  ;;  %v1098_v8 = vadd.s32 %v5551_v32, %v5548_v30  ;;  %v634_v50 = vld [vmem:[%s7412_s1 + $0x68] sm:$0xff] }
  0xa1   : > { %v1105_v22 = vshll.u32 %v5589_v19, 30  ;;  %v895_v27 = vsel %vm893_vm12, %v894_v23, %v5582_v13  ;;  %v1158_v52 = vshrl.u32 %v1157_v20, 5  ;;  %v1128_v54 = vsub.s32 4, %v5589_v19  ;;  %705 = vperm.xlu1 %4748, %v634_v50  }
  0xa2   : > { %v1160_v24 = vsub.s32 32, %v1159_v33  ;;  %v896_v28 = vadd.s32 %v895_v27, %v891_v21  ;;  %v1162_v40 = vshll.u32 %v5126_v39, %v1159_v33  ;;  %v1165_v44 = vshll.u32 %v5127_v41, %v1159_v33 }
  0xa3   : > { %v5600_v26 = vsub.s32 %v1102_v61, %v1105_v22  ;;  %v1168_v47 = vshll.u32 %v5128_v43, %v1159_v33  ;;  %v1171_v53 = vshll.u32 %v5129_v46, %v1159_v33  ;;  %v942_v57 = vand.u32 2139095040, %v5605_v37 }
  0xa4   : > { %v1163_v42 = vshrl.u32 %v5127_v41, %v1160_v24  ;;  %v897_v29 = vadd.s32 536870912, %v896_v28  ;;  %v1166_v45 = vshrl.u32 %v5128_v43, %v1160_v24  ;;  %v1169_v49 = vshrl.u32 %v5129_v46, %v1160_v24 }
  0xa5   : > { %v1108_v38 = vsub.s32 0, %v5600_v26  ;;  %v1172_v34 = vshrl.u32 %v5130_v48, %v1160_v24  ;;  %v1161_v58 = vshrl.u32 %v5126_v39, %v1160_v24  ;;  %v1174_v59 = vshll.u32 %v5130_v48, %v1159_v33 }
  0xa6   : > { %v5620_v55 = vshrl.u32 %v897_v29, 30  ;;  %v1175_v30 = vshrl.u32 %v5131_v56, %v1160_v24  ;;  %v1164_v60 = vor.u32 %v1163_v42, %v1162_v40  ;;  %v1167_v61 = vor.u32 %v1166_v45, %v1165_v44 }
  0xa7   : > { %v4186_v51 = vmin.u32 %v1108_v38, %v5600_v26  ;;  %v1170_v62 = vor.u32 %v1169_v49, %v1168_v47  ;;  %v1173_v0 = vor.u32 %v1172_v34, %v1171_v53  ;;  %vm1177_vm14 = vcmp.lt.s32.totalorder %v1158_v52, 1 }
  0xa8   : > { %v899_v32 = vshll.u32 %v5620_v55, 30  ;;  %vm1180_vm15 = vcmp.lt.s32.totalorder %v1158_v52, 4  ;;  %vm1178_vm0 = vcmp.lt.s32.totalorder %v1158_v52, 2  ;;  %v943_v5 = vshrl.u32 %v942_v57, 23 }
  0xa9   : > { %v1110_v31 = vclz %v4186_v51  ;;  %v1182_v3 = vsel %vm1180_vm15, %v1170_v62, 2102212464  ;;  %v1176_v7 = vor.u32 %v1175_v30, %v1174_v59  ;;  %vm1179_vm2 = vcmp.lt.s32.totalorder %v1158_v52, 3 }
  0xaa   : > { %v5628_v1 = vsub.s32 %v896_v28, %v899_v32  ;;  %v1181_v10 = vsel %vm1177_vm14, %v1161_v58, %v1164_v60  ;;  %vm5634_vm3 = vcmp.le.f32.partialorder %v1042_v6, 0.7853982  ;;  %v1183_v20 = vsel %vm1179_vm2, %v1167_v61, %v1182_v3 }
  0xab   : > { %v4187_v63 = vadd.s32 4294967294, %v1110_v31  ;;  %v1185_v21 = vsel %vm1177_vm14, %v1164_v60, %v1167_v61  ;;  %v1186_v6 = vsel %vm1180_vm15, %v1173_v0, 920167782  ;;  %v1129_v24 = vsel %vm1044_vm13, %v1128_v54, %v5589_v19 }
  0xac   : > { %v902_v14 = vsub.s32 0, %v5628_v1  ;;  %vm838_vm4 = vcmp.lt.s32.totalorder %v5437_v4, 0  ;;  %v922_v28 = vsub.s32 4, %v5620_v55  ;;  %v1193_v38 = vshll.u32 %v1153_v35, 8 }
  0xad   : > { %vm4188_vm1 = vcmp.lt.s32.totalorder %v4187_v63, 0  ;;  %v1187_v44 = vsel %vm1179_vm2, %v1170_v62, %v1186_v6  ;;  %v1184_v45 = vsel %vm1178_vm0, %v1181_v10, %v1183_v20  ;;  %v1190_v19 = vsel %vm1180_vm15, %v1176_v7, 1326507024 }
  0xae   : > { %v1113_v13 = vsel %vm4188_vm1, 0, %v4187_v63  ;;  %v4178_v27 = vmin.u32 %v902_v14, %v5628_v1  ;;  %v1188_v47 = vsel %vm1178_vm0, %v1185_v21, %v1187_v44  ;;  %v1191_v53 = vsel %vm1179_vm2, %v1173_v0, %v1190_v19 }
  0xaf   : > { %v1114_v33 = vsub.s32 32, %v1113_v13  ;;  %v1115_v22 = vshll.u32 %v5600_v26, %v1113_v13  ;;  %v1118_v23 = vsub.s32 4294967266, %v1113_v13  ;;  %v1189_v26 = vsel %vm1177_vm14, %v1167_v61, %v1170_v62 }
  0xb0   : > { %v904_v29 = vclz %v4178_v27  ;;  %v4181_v54 = vadd.s32 4294967169, %v943_v5  ;;  %v1192_v35 = vsel %vm1178_vm0, %v1189_v26, %v1191_v53  ;;  %v892_v32 = vadd.s32 %v5581_v12, %v5587_v16 }
  0xb1   : > { %v1116_v40 = vshrl.u32 %v1098_v8, %v1114_v33  ;;  %v1119_v42 = vadd.s32 127, %v1118_v23  ;;  %v5659_v8 = vmul.u32.u64.low %v1193_v38, %v1188_v47  ;;  %v5660_v57 = vmul.u32.u64.high %v1193_v38, %v1188_v47, %v5659_v8 }
  0xb2   : > { %v4179_v34 = vadd.s32 4294967294, %v904_v29  ;;  %v5663_v59 = vmul.u32.u64.low %v1193_v38, %v1192_v35  ;;  %v5664_v30 = vmul.u32.u64.high %v1193_v38, %v1192_v35, %v5663_v59  ;;  %v939_v60 = vand.u32 2147483647, %v5605_v37 }
  0xb3   : > { %v1117_v49 = vor.u32 %v1116_v40, %v1115_v22  ;;  %v1120_v51 = vshll.u32 %v1119_v42, 23  ;;  %v949_v61 = vadd.s32 1, %v4181_v54  ;;  %v1131_v52 = vsel %vm5634_vm3, 0, %v1129_v24 }
  0xb4   : > { %vm4180_vm5 = vcmp.lt.s32.totalorder %v4179_v34, 0  ;;  %v1200_v0 = vmul.u32 %v1193_v38, %v1184_v45  ;;  %v1203_v10 = vadd.s32 1, %v5660_v57  ;;  %v923_v12 = vsel %vm838_vm4, %v922_v28, %v5620_v55 }
  0xb5   : > { %v1121_v31 = vor.u32 4788187, %v1120_v51  ;;  %v1124_v58 = vcvt.s32.f32 %v1117_v49  ;;  %v907_v63 = vsel %vm4180_vm5, 0, %v4179_v34  ;;  %vm1202_vm6 = vc.u32 %v5664_v30, %v5659_v8 }
  0xb6   : > { %v908_v3 = vsub.s32 32, %v907_v63  ;;  %v909_v5 = vshll.u32 %v5628_v1, %v907_v63  ;;  %v912_v7 = vsub.s32 4294967266, %v907_v63  ;;  %vm950_vm7 = vcmp.gt.s32.totalorder %v949_v61, 0 }
  0xb7   : > { %v1122_v62 = vand.u32 2147483647, %v1121_v31  ;;  %v1204_v20 = vsel %vm1202_vm6, %v1203_v10, %v5660_v57  ;;  %v951_v21 = vsel %vm950_vm7, %v949_v61, 0  ;;  %vm5681_vm8 = vcmp.le.f32.partialorder %v836_v9, 0.7853982 }
  0xb8   : > { %v910_v16 = vshrl.u32 %v892_v32, %v908_v3  ;;  %v913_v14 = vadd.s32 127, %v912_v7  ;;  %v1205_v33 = vadd.s32 %v1204_v20, %v1200_v0  ;;  %v953_v22 = vand.u32 31, %v951_v21 }
  0xb9   : > { %v1125_v13 = vmul.f32 %v1124_v58, %v1122_v62  ;;  %v925_v6 = vsel %vm5681_vm8, 0, %v923_v12  ;;  %v5688_v24 = vmul.f32 0.6981317, %v5459_v15  ;;  %v5692_v28 = vand.u32 3, %v1131_v52 }
  0xba   : > { %v911_v23 = vor.u32 %v910_v16, %v909_v5  ;;  %v914_v55 = vshll.u32 %v913_v14, 23  ;;  %v1206_v38 = vadd.s32 536870912, %v1205_v33  ;;  %v954_v9 = vsub.s32 32, %v953_v22  ;;  %v633_v14 = vld [vmem:[%s7412_s1 + $0x60] sm:$0xff] }
  0xbb   : > { %v1126_v50 = vxor.u32 2147483648, %v1125_v13  ;;  %v946_v26 = vand.u32 8388607, %v939_v60  ;;  %v5699_v29 = vand.u32 3, %v925_v6  ;;  %v956_v45 = vshll.u32 %v5126_v39, %v953_v22  ;;  %700 = vperm.xlu0 %4747, %v633_v14  }
  0xbc   : > { %v915_v42 = vor.u32 4788187, %v914_v55  ;;  %v918_v44 = vcvt.s32.f32 %v911_v23  ;;  %v5701_v15 = vshrl.u32 %v1206_v38, 30  ;;  %v957_v19 = vshrl.u32 %v5127_v41, %v954_v9 }
  0xbd   : > { %v1127_v27 = vsel %vm1044_vm13, %v1126_v50, %v1125_v13  ;;  %v959_v49 = vshll.u32 %v5127_v41, %v953_v22  ;;  %vm1140_vm9 = vcmp.eq.s32.totalorder %v5692_v28, 2  ;;  %v960_v51 = vshrl.u32 %v5128_v43, %v954_v9 }
  0xbe   : > { %v1130_v40 = vsel %vm5634_vm3, %v5432_v2, %v1127_v27  ;;  %v916_v47 = vand.u32 2147483647, %v915_v42  ;;  %v1208_v11 = vshll.u32 %v5701_v15, 30  ;;  %v962_v53 = vshll.u32 %v5128_v43, %v953_v22 }
  0xbf   : > { %4749 = vcosq.f32 %v1130_v40  ;;  %v963_v54 = vshrl.u32 %v5129_v46, %v954_v9  ;;  %vm1137_vm10 = vcmp.eq.s32.totalorder %v5692_v28, 0  ;;  %v952_v35 = vshrl.u32 %v951_v21, 5 }
  0xc0   : > { %4751 = vsinq.f32 %v1130_v40  ;;  %v919_v34 = vmul.f32 %v918_v44, %v916_v47  ;;  %v965_v57 = vshll.u32 %v5129_v46, %v953_v22  ;;  %v966_v31 = vshrl.u32 %v5130_v48, %v954_v9 }
  0xc1   : > { %vm1136_vm11 = vcmp.lt.s32.totalorder %v5692_v28, 2  ;;  %v5715_v58 = vsub.s32 %v1205_v33, %v1208_v11  ;;  %v947_v59 = vor.u32 8388608, %v946_v26  ;;  %v968_v32 = vshll.u32 %v5130_v48, %v953_v22 }
  0xc2   : > { %v1354_v61 = vand.u32 2139095040, %v5688_v24  ;;  %vm1134_vm12 = vweird.f32 %v5432_v2  ;;  %v920_v62 = vxor.u32 2147483648, %v919_v34  ;;  %v1201_v52 = vadd.s32 %v5659_v8, %v5664_v30 }
  0xc3   : > { %v955_v63 = vshrl.u32 %v5126_v39, %v954_v9  ;;  %v969_v0 = vshrl.u32 %v5131_v56, %v954_v9  ;;  %v1211_v3 = vsub.s32 0, %v5715_v58  ;;  %v958_v5 = vor.u32 %v957_v19, %v956_v45 }
  0xc4   : > { %v961_v7 = vor.u32 %v960_v51, %v959_v49  ;;  %v964_v10 = vor.u32 %v963_v54, %v962_v53  ;;  %v921_v13 = vsel %vm838_vm4, %v920_v62, %v919_v34  ;;  %v967_v12 = vor.u32 %v966_v31, %v965_v57 }
  0xc5   : > { %vm971_vm13 = vcmp.lt.s32.totalorder %v952_v35, 1  ;;  %vm972_vm14 = vcmp.lt.s32.totalorder %v952_v35, 2  ;;  %v924_v16 = vsel %vm5681_vm8, %v5437_v4, %v921_v13  ;;  %v4190_v8 = vmin.u32 %v1211_v3, %v5715_v58 }
  0xc6   : > { %v970_v30 = vor.u32 %v969_v0, %v968_v32  ;;  %vm974_vm15 = vcmp.lt.s32.totalorder %v952_v35, 4  ;;  %4753 = vcosq.f32 %v924_v16  ;;  %vm973_vm0 = vcmp.lt.s32.totalorder %v952_v35, 3 }
  0xc7   : > { %v975_v20 = vsel %vm971_vm13, %v955_v63, %v958_v5  ;;  %v976_v21 = vsel %vm974_vm15, %v964_v10, 2102212464  ;;  %vm7436_vm1 = vcmask 7168   ;;  %4755 = vsinq.f32 %v924_v16 }
  0xc8   : > { %v1213_v1 = vclz %v4190_v8  ;;  %v977_v33 = vsel %vm973_vm0, %v961_v7, %v976_v21  ;;  %v979_v22 = vsel %vm971_vm13, %v958_v5, %v961_v7  ;;  %v980_v6 = vsel %vm974_vm15, %v967_v12, 920167782 }
  0xc9   : > { %v4750_v50 = vpop.eup %4749  ;;  %v983_v27 = vsel %vm971_vm13, %v961_v7, %v964_v10  ;;  %v987_v38 = vshll.u32 %v947_v59, 8  ;;  %v981_v42 = vsel %vm973_vm0, %v964_v10, %v980_v6  ;;  %v984_v44 = vsel %vm974_vm15, %v970_v30, 1326507024 }
  0xca   : > { %v4752_v23 = vpop.eup %4751  ;;  %v1141_v55 = vxor.u32 2147483648, %v4750_v50  ;;  %v4191_v40 = vadd.s32 4294967294, %v1213_v1  ;;  %v978_v45 = vsel %vm972_vm14, %v975_v20, %v977_v33  ;;  %v982_v47 = vsel %vm972_vm14, %v979_v22, %v981_v42 }
  0xcb   : > { %v1138_v9 = vxor.u32 2147483648, %v4752_v23  ;;  %v985_v19 = vsel %vm973_vm0, %v967_v12, %v984_v44  ;;  %vm928_vm2 = vweird.f32 %v5437_v4  ;;  %v1355_v51 = vshrl.u32 %v1354_v61, 23 }
  0xcc   : > { %v1142_v26 = vsel %vm1140_vm9, %v1141_v55, %v4752_v23  ;;  %vm4192_vm3 = vcmp.lt.s32.totalorder %v4191_v40, 0  ;;  %v986_v11 = vsel %vm972_vm14, %v983_v27, %v985_v19  ;;  %vm931_vm4 = vcmp.eq.s32.totalorder %v5699_v29, 0 }
  0xcd   : > { %v1139_v49 = vsel %vm1137_vm10, %v4750_v50, %v1138_v9  ;;  %v1216_v54 = vsel %vm4192_vm3, 0, %v4191_v40  ;;  %v5753_v34 = vmul.u32.u64.low %v987_v38, %v986_v11  ;;  %v5754_v57 = vmul.u32.u64.high %v987_v38, %v986_v11, %v5753_v34 }
  0xce   : > { %v1143_v53 = vsel %vm1136_vm11, %v1139_v49, %v1142_v26  ;;  %v1217_v59 = vsub.s32 32, %v1216_v54  ;;  %v1218_v32 = vshll.u32 %v5715_v58, %v1216_v54  ;;  %v1221_v62 = vsub.s32 4294967266, %v1216_v54 }
  0xcf   : > { %v1144_v31 = vsel %vm1134_vm12, nan, %v1143_v53  ;;  %v5759_v0 = vmul.u32.u64.low %v987_v38, %v982_v47  ;;  %v5760_v3 = vmul.u32.u64.high %v987_v38, %v982_v47, %v5759_v0  ;;  %v4197_v35 = vadd.s32 4294967169, %v1355_v51 }
  0xd0   : > { %v2486_v63 = vadd.f32 1.0, %v1144_v31  ;;  %vm934_vm5 = vcmp.eq.s32.totalorder %v5699_v29, 2  ;;  %v1219_v28 = vshrl.u32 %v1201_v52, %v1217_v59  ;;  %v1222_v61 = vadd.s32 127, %v1221_v62  ;;  %v4754_v5 = vpop.eup %4753 }
  0xd1   : > { %vm1147_vm6 = vcmp.lt.s32.totalorder %v5461_v17, 0  ;;  %v994_v2 = vmul.u32 %v987_v38, %v978_v45  ;;  %v1351_v58 = vand.u32 2147483647, %v5688_v24  ;;  %v1361_v10 = vadd.s32 1, %v4197_v35  ;;  %v4756_v13 = vpop.eup %4755 }
  0xd2   : > { %v2502_v7 = vmul.f32 0.5, %v2486_v63  ;;  %v935_v12 = vxor.u32 2147483648, %v4754_v5  ;;  %vm5769_vm7 = vcmp.le.f32.partialorder %v1145_v36, 0.7853982  ;;  %v1220_v8 = vor.u32 %v1219_v28, %v1218_v32 }
  0xd3   : > { %v1223_v30 = vshll.u32 %v1222_v61, 23  ;;  %vm996_vm8 = vc.u32 %v5754_v57, %v5759_v0  ;;  %vm930_vm9 = vcmp.lt.s32.totalorder %v5699_v29, 2  ;;  %v932_v52 = vxor.u32 2147483648, %v4756_v13 }
  0xd4   : > { %2519 = vst.msk [vmem:[#allocation3 + $0x10] sm:$0xff] %vm7436_vm1, %v2502_v7  ;;  %v997_v14 = vadd.s32 1, %v5760_v3  ;;  %vm1362_vm10 = vcmp.gt.s32.totalorder %v1361_v10, 0  ;;  %v936_v20 = vsel %vm934_vm5, %v935_v12, %v4756_v13  ;;  %v1227_v21 = vcvt.s32.f32 %v1220_v8 }
  0xd5   : > { %v1224_v36 = vor.u32 4788187, %v1223_v30  ;;  %v1363_v50 = vsel %vm1362_vm10, %v1361_v10, 0  ;;  %v933_v1 = vsel %vm931_vm4, %v4754_v5, %v932_v52  ;;  %v1231_v33 = vsub.s32 4, %v5701_v15 }
  0xd6   : > { %v998_v22 = vsel %vm996_vm8, %v997_v14, %v5760_v3  ;;  %v1365_v23 = vand.u32 31, %v1363_v50  ;;  %v937_v55 = vsel %vm930_vm9, %v933_v1, %v936_v20  ;;  %v1358_v38 = vand.u32 8388607, %v1351_v58 }
  0xd7   : > { %v1225_v6 = vand.u32 2147483647, %v1224_v36  ;;  %v999_v27 = vadd.s32 %v998_v22, %v994_v2  ;;  %v938_v9 = vsel %vm928_vm2, nan, %v937_v55  ;;  %v1364_v40 = vshrl.u32 %v1363_v50, 5 }
  0xd8   : > { %v1366_v42 = vsub.s32 32, %v1365_v23  ;;  %v1368_v44 = vshll.u32 %v5126_v39, %v1365_v23  ;;  %v2484_v29 = vadd.f32 1.0, %v938_v9  ;;  %v1371_v47 = vshll.u32 %v5127_v41, %v1365_v23 }
  0xd9   : > { %v1228_v26 = vmul.f32 %v1227_v21, %v1225_v6  ;;  %v1000_v45 = vadd.s32 536870912, %v999_v27  ;;  %v1374_v11 = vshll.u32 %v5128_v43, %v1365_v23  ;;  %v1377_v34 = vshll.u32 %v5129_v46, %v1365_v23 }
  0xda   : > { %v1369_v19 = vshrl.u32 %v5127_v41, %v1366_v42  ;;  %v1372_v49 = vshrl.u32 %v5128_v43, %v1366_v42  ;;  %v1375_v51 = vshrl.u32 %v5129_v46, %v1366_v42  ;;  %v2500_v53 = vmul.f32 0.5, %v2484_v29 }
  0xdb   : > { %v1229_v4 = vxor.u32 2147483648, %v1228_v26  ;;  %v5794_v54 = vshrl.u32 %v1000_v45, 30  ;;  %v1232_v31 = vsel %vm1147_vm6, %v1231_v33, %v5701_v15  ;;  %v1359_v59 = vor.u32 8388608, %v1358_v38 }
  0xdc   : > { %v1367_v32 = vshrl.u32 %v5126_v39, %v1366_v42  ;;  %v1378_v62 = vshrl.u32 %v5130_v48, %v1366_v42  ;;  %2517 = vst.msk [vmem:[#allocation3] sm:$0xff] %vm7436_vm1, %v2500_v53  ;;  %v1370_v35 = vor.u32 %v1369_v19, %v1368_v44  ;;  %v1380_v28 = vshll.u32 %v5130_v48, %v1365_v23 }
  0xdd   : > { %v1230_v63 = vsel %vm1147_vm6, %v1229_v4, %v1228_v26  ;;  %v1002_v3 = vshll.u32 %v5794_v54, 30  ;;  %v1373_v15 = vor.u32 %v1372_v49, %v1371_v47  ;;  %v1381_v7 = vshrl.u32 %v5131_v56, %v1366_v42 }
  0xde   : > { %v1233_v61 = vsel %vm5769_vm7, %v5461_v17, %v1230_v63  ;;  %v1379_v5 = vor.u32 %v1378_v62, %v1377_v34  ;;  %v1376_v10 = vor.u32 %v1375_v51, %v1374_v11  ;;  %vm1383_vm11 = vcmp.lt.s32.totalorder %v1364_v40, 1 }
  0xdf   : > { %4757 = vcosq.f32 %v1233_v61  ;;  %v5811_v2 = vsub.s32 %v999_v27, %v1002_v3  ;;  %v1234_v13 = vsel %vm5769_vm7, 0, %v1232_v31  ;;  %v1382_v12 = vor.u32 %v1381_v7, %v1380_v28 }
  0xe0   : > { %4759 = vsinq.f32 %v1233_v61  ;;  %vm1385_vm12 = vcmp.lt.s32.totalorder %v1364_v40, 3  ;;  %vm1386_vm13 = vcmp.lt.s32.totalorder %v1364_v40, 4  ;;  %v1399_v30 = vshll.u32 %v1359_v59, 8 }
  0xe1   : > { %v1005_v8 = vsub.s32 0, %v5811_v2  ;;  %vm1384_vm14 = vcmp.lt.s32.totalorder %v1364_v40, 2  ;;  %v1388_v52 = vsel %vm1386_vm13, %v1376_v10, 2102212464  ;;  %v1391_v14 = vsel %vm1383_vm11, %v1370_v35, %v1373_v15 }
  0xe2   : > { %v1392_v20 = vsel %vm1386_vm13, %v1379_v5, 920167782  ;;  %v1387_v21 = vsel %vm1383_vm11, %v1367_v32, %v1370_v35  ;;  %v1395_v50 = vsel %vm1383_vm11, %v1373_v15, %v1376_v10  ;;  %v5818_v1 = vmul.f32 0.6981317, %v5466_v18  ;;  %v636_v18 = vld [vmem:[%s7412_s1 + $0x78] sm:$0xff] }
  0xe3   : > { %v4182_v36 = vmin.u32 %v1005_v8, %v5811_v2  ;;  %v1238_v16 = vand.u32 3, %v1234_v13  ;;  %v1389_v33 = vsel %vm1385_vm12, %v1373_v15, %v1388_v52  ;;  %v1393_v22 = vsel %vm1385_vm12, %v1376_v10, %v1392_v20  ;;  %715 = vperm.xlu1 %4748, %v636_v18  }
  0xe4   : > { %v1396_v23 = vsel %vm1386_vm13, %v1382_v12, 1326507024  ;;  %v1394_v6 = vsel %vm1384_vm14, %v1391_v14, %v1393_v22  ;;  %v1390_v38 = vsel %vm1384_vm14, %v1387_v21, %v1389_v33  ;;  %vm1237_vm15 = vweird.f32 %v5461_v17 }
  0xe5   : > { %v1007_v55 = vclz %v4182_v36  ;;  %v1397_v27 = vsel %vm1385_vm12, %v1379_v5, %v1396_v23  ;;  %v5826_v42 = vmul.u32.u64.low %v1399_v30, %v1394_v6  ;;  %v5827_v44 = vmul.u32.u64.high %v1399_v30, %v1394_v6, %v5826_v42 }
  0xe6   : > { %v1398_v9 = vsel %vm1384_vm14, %v1395_v50, %v1397_v27  ;;  %vm1239_vm0 = vcmp.lt.s32.totalorder %v1238_v16, 2  ;;  %vm1240_vm2 = vcmp.eq.s32.totalorder %v1238_v16, 0  ;;  %vm1243_vm3 = vcmp.eq.s32.totalorder %v1238_v16, 2 }
  0xe7   : > { %v4183_v29 = vadd.s32 4294967294, %v1007_v55  ;;  %v5834_v26 = vmul.u32.u64.low %v1399_v30, %v1398_v9  ;;  %v5835_v45 = vmul.u32.u64.high %v1399_v30, %v1398_v9, %v5834_v26  ;;  %v1251_v40 = vand.u32 2139095040, %v5818_v1 }
  0xe8   : > { %v995_v19 = vadd.s32 %v5759_v0, %v5754_v57  ;;  %v1025_v49 = vsub.s32 4, %v5794_v54  ;;  %v1406_v11 = vmul.u32 %v1399_v30, %v1390_v38  ;;  %v1409_v34 = vadd.s32 1, %v5827_v44 }
  0xe9   : > { %v4758_v47 = vpop.eup %4757  ;;  %vm4184_vm4 = vcmp.lt.s32.totalorder %v4183_v29, 0  ;;  %v1252_v31 = vshrl.u32 %v1251_v40, 23  ;;  %vm1408_vm5 = vc.u32 %v5835_v45, %v5826_v42  ;;  %v1248_v57 = vand.u32 2147483647, %v5818_v1 }
  0xea   : > { %v4760_v51 = vpop.eup %4759  ;;  %v1244_v53 = vxor.u32 2147483648, %v4758_v47  ;;  %v1010_v4 = vsel %vm4184_vm4, 0, %v4183_v29  ;;  %v1410_v15 = vsel %vm1408_vm5, %v1409_v34, %v5827_v44  ;;  %vm941_vm6 = vcmp.lt.s32.totalorder %v5605_v37, 0 }
  0xeb   : > { %v1241_v59 = vxor.u32 2147483648, %v4760_v51  ;;  %v1011_v32 = vsub.s32 32, %v1010_v4  ;;  %v1012_v62 = vshll.u32 %v5811_v2, %v1010_v4  ;;  %v1015_v63 = vsub.s32 4294967266, %v1010_v4 }
  0xec   : > { %v1245_v3 = vsel %vm1243_vm3, %v1244_v53, %v4760_v51  ;;  %v4193_v0 = vadd.s32 4294967169, %v1252_v31  ;;  %v1411_v7 = vadd.s32 %v1410_v15, %v1406_v11  ;;  %v1026_v8 = vsel %vm941_vm6, %v1025_v49, %v5794_v54  ;;  %v635_v15 = vld [vmem:[%s7412_s1 + $0x70] sm:$0xff] }
  0xed   : > { %v1242_v35 = vsel %vm1240_vm2, %v4758_v47, %v1241_v59  ;;  %v1013_v28 = vshrl.u32 %v995_v19, %v1011_v32  ;;  %v1016_v61 = vadd.s32 127, %v1015_v63  ;;  %v1255_v14 = vand.u32 8388607, %v1248_v57  ;;  %710 = vperm.xlu0 %4747, %v635_v15  }
  0xee   : > { %v1246_v5 = vsel %vm1239_vm0, %v1242_v35, %v1245_v3  ;;  %v1258_v2 = vadd.s32 1, %v4193_v0  ;;  %v1412_v52 = vadd.s32 536870912, %v1411_v7  ;;  %vm5860_vm8 = vcmp.le.f32.partialorder %v939_v60, 0.7853982 }
  0xef   : > { %v1247_v10 = vsel %vm1237_vm15, nan, %v1246_v5  ;;  %v1014_v13 = vor.u32 %v1013_v28, %v1012_v62  ;;  %v1017_v12 = vshll.u32 %v1016_v61, 23  ;;  %v1028_v16 = vsel %vm5860_vm8, 0, %v1026_v8 }
  0xf0   : > { %v2487_v30 = vadd.f32 1.0, %v1247_v10  ;;  %vm1259_vm7 = vcmp.gt.s32.totalorder %v1258_v2, 0  ;;  %v5866_v54 = vshrl.u32 %v1412_v52, 30  ;;  %v1256_v55 = vor.u32 8388608, %v1255_v14 }
  0xf1   : > { %v1018_v17 = vor.u32 4788187, %v1017_v12  ;;  %v1021_v36 = vcvt.s32.f32 %v1014_v13  ;;  %v1260_v21 = vsel %vm1259_vm7, %v1258_v2, 0  ;;  %v5870_v27 = vand.u32 3, %v1028_v16 }
  0xf2   : > { %v2503_v50 = vmul.f32 0.5, %v2487_v30  ;;  %v1262_v33 = vand.u32 31, %v1260_v21  ;;  %v1414_v23 = vshll.u32 %v5866_v54, 30  ;;  %v5874_v9 = vmul.f32 0.6981317, %v5474_v25 }
  0xf3   : > { %v1019_v22 = vand.u32 2147483647, %v1018_v17  ;;  %v1261_v51 = vshrl.u32 %v1260_v21, 5  ;;  %v5886_v53 = vshll.u32 %v1256_v55, 8  ;;  %vm1353_vm13 = vcmp.lt.s32.totalorder %v5688_v24, 0 }
  0xf4   : > { %2520 = vst.msk [vmem:[#allocation3 + $0x18] sm:$0xff] %vm7436_vm1, %v2503_v50  ;;  %v1263_v60 = vsub.s32 32, %v1262_v33  ;;  %v1265_v38 = vshll.u32 %v5126_v39, %v1262_v33  ;;  %v5876_v44 = vsub.s32 %v1411_v7, %v1414_v23  ;;  %v1268_v29 = vshll.u32 %v5127_v41, %v1262_v33 }
  0xf5   : > { %v1022_v6 = vmul.f32 %v1021_v36, %v1019_v22  ;;  %v1271_v26 = vshll.u32 %v5128_v43, %v1262_v33  ;;  %v1274_v49 = vshll.u32 %v5129_v46, %v1262_v33  ;;  %v1277_v31 = vshll.u32 %v5130_v48, %v1262_v33 }
  0xf6   : > { %v1266_v18 = vshrl.u32 %v5127_v41, %v1263_v60  ;;  %v1269_v47 = vshrl.u32 %v5128_v43, %v1263_v60  ;;  %v1272_v19 = vshrl.u32 %v5129_v46, %v1263_v60  ;;  %v1417_v11 = vsub.s32 0, %v5876_v44 }
  0xf7   : > { %v1023_v40 = vxor.u32 2147483648, %v1022_v6  ;;  %v1275_v25 = vshrl.u32 %v5130_v48, %v1263_v60  ;;  %v1264_v34 = vshrl.u32 %v5126_v39, %v1263_v60  ;;  %v1560_v59 = vand.u32 2139095040, %v5874_v9 }
  0xf8   : > { %v4198_v62 = vmin.u32 %v1417_v11, %v5876_v44  ;;  %v1267_v63 = vor.u32 %v1266_v18, %v1265_v38  ;;  %v1270_v3 = vor.u32 %v1269_v47, %v1268_v29  ;;  %v1273_v0 = vor.u32 %v1272_v19, %v1271_v26 }
  0xf9   : > { %v1024_v4 = vsel %vm941_vm6, %v1023_v40, %v1022_v6  ;;  %v1276_v35 = vor.u32 %v1275_v25, %v1274_v49  ;;  %v1278_v28 = vshrl.u32 %v5131_v56, %v1263_v60  ;;  %vm1280_vm9 = vcmp.lt.s32.totalorder %v1261_v51, 1 }
  0xfa   : > { %v1027_v32 = vsel %vm5860_vm8, %v5605_v37, %v1024_v4  ;;  %v1419_v61 = vclz %v4198_v62  ;;  %vm1281_vm10 = vcmp.lt.s32.totalorder %v1261_v51, 2  ;;  %vm1282_vm11 = vcmp.lt.s32.totalorder %v1261_v51, 3 }
  0xfb   : > { %4761 = vcosq.f32 %v1027_v32  ;;  %v1279_v5 = vor.u32 %v1278_v28, %v1277_v31  ;;  %vm1283_vm12 = vcmp.lt.s32.totalorder %v1261_v51, 4  ;;  %v1284_v7 = vsel %vm1280_vm9, %v1264_v34, %v1267_v63 }
  0xfc   : > { %4763 = vsinq.f32 %v1027_v32  ;;  %v4199_v2 = vadd.s32 4294967294, %v1419_v61  ;;  %v1285_v10 = vsel %vm1283_vm12, %v1273_v0, 2102212464  ;;  %v1288_v13 = vsel %vm1280_vm9, %v1267_v63, %v1270_v3 }
  0xfd   : > { %v1289_v12 = vsel %vm1283_vm12, %v1276_v35, 920167782  ;;  %v1286_v8 = vsel %vm1282_vm11, %v1270_v3, %v1285_v10  ;;  %v1292_v52 = vsel %vm1280_vm9, %v1270_v3, %v1273_v0  ;;  %v1293_v14 = vsel %vm1283_vm12, %v1279_v5, 1326507024 }
  0xfe   : > { %v1290_v30 = vsel %vm1282_vm11, %v1273_v0, %v1289_v12  ;;  %vm1031_vm14 = vweird.f32 %v5605_v37  ;;  %v1407_v20 = vadd.s32 %v5826_v42, %v5835_v45  ;;  %vm4200_vm15 = vcmp.lt.s32.totalorder %v4199_v2, 0 }
  0xff   : > { %v1291_v17 = vsel %vm1281_vm10, %v1288_v13, %v1290_v30  ;;  %v1294_v36 = vsel %vm1282_vm11, %v1276_v35, %v1293_v14  ;;  %v1422_v21 = vsel %vm4200_vm15, 0, %v4199_v2  ;;  %v1287_v60 = vsel %vm1281_vm10, %v1284_v7, %v1286_v8 }
 0x100   : > { %v1295_v50 = vsel %vm1281_vm10, %v1292_v52, %v1294_v36  ;;  %v5911_v16 = vmul.u32.u64.low %v5886_v53, %v1291_v17  ;;  %v5912_v33 = vmul.u32.u64.high %v5886_v53, %v1291_v17, %v5911_v16  ;;  %v1423_v22 = vsub.s32 32, %v1422_v21 }
 0x101   : > { %v1424_v23 = vshll.u32 %v5876_v44, %v1422_v21  ;;  %v1427_v55 = vsub.s32 4294967266, %v1422_v21  ;;  %v1437_v42 = vsub.s32 4, %v5866_v54  ;;  %v1561_v38 = vshrl.u32 %v1560_v59, 23 }
 0x102   : > { %v5919_v45 = vmul.u32.u64.low %v5886_v53, %v1295_v50  ;;  %v5920_v6 = vmul.u32.u64.high %v5886_v53, %v1295_v50, %v5919_v45  ;;  %vm1033_vm0 = vcmp.lt.s32.totalorder %v5870_v27, 2  ;;  %vm1034_vm2 = vcmp.eq.s32.totalorder %v5870_v27, 0 }
 0x103   : > { %v1425_v18 = vshrl.u32 %v1407_v20, %v1423_v22  ;;  %v1428_v29 = vadd.s32 127, %v1427_v55  ;;  %vm1037_vm3 = vcmp.eq.s32.totalorder %v5870_v27, 2  ;;  %v1303_v44 = vmul.u32 %v5886_v53, %v1287_v60  ;;  %v4845_v27 = vld [vmem:[%s7412_s1 + $0x30] sm:$0xff] }
 0x104   : > { %v1306_v40 = vadd.s32 1, %v5912_v33  ;;  %v4205_v47 = vadd.s32 4294967169, %v1561_v38  ;;  %v1557_v25 = vand.u32 2147483647, %v5874_v9  ;;  %v1438_v34 = vsel %vm1353_vm13, %v1437_v42, %v5866_v54 }
 0x105   : > { %v4762_v26 = vpop.eup %4761  ;;  %v1426_v11 = vor.u32 %v1425_v18, %v1424_v23  ;;  %v1429_v51 = vshll.u32 %v1428_v29, 23  ;;  %vm1305_vm4 = vc.u32 %v5920_v6, %v5911_v16  ;;  %vm5938_vm5 = vcmp.le.f32.partialorder %v1351_v58, 0.7853982 }
 0x106   : > { %v4764_v19 = vpop.eup %4763  ;;  %v1038_v49 = vxor.u32 2147483648, %v4762_v26  ;;  %v1567_v31 = vadd.s32 1, %v4205_v47  ;;  %v1307_v62 = vsel %vm1305_vm4, %v1306_v40, %v5912_v33  ;;  %v1440_v28 = vsel %vm5938_vm5, 0, %v1438_v34 }
 0x107   : > { %v1035_v4 = vxor.u32 2147483648, %v4764_v19  ;;  %v1430_v53 = vor.u32 4788187, %v1429_v51  ;;  %v1433_v32 = vcvt.s32.f32 %v1426_v11  ;;  %v1308_v0 = vadd.s32 %v1307_v62, %v1303_v44 }
 0x108   : > { %v1039_v59 = vsel %vm1037_vm3, %v1038_v49, %v4764_v19  ;;  %vm1568_vm6 = vcmp.gt.s32.totalorder %v1567_v31, 0  ;;  %v1564_v10 = vand.u32 8388607, %v1557_v25  ;;  %v5953_v13 = vmul.f32 0.6981317, %v4845_v27 }
 0x109   : > { %v1036_v63 = vsel %vm1034_vm2, %v4762_v26, %v1035_v4  ;;  %v1431_v35 = vand.u32 2147483647, %v1430_v53  ;;  %v1569_v61 = vsel %vm1568_vm6, %v1567_v31, 0  ;;  %v1309_v5 = vadd.s32 536870912, %v1308_v0 }
 0x10a   : > { %v1040_v54 = vsel %vm1033_vm0, %v1036_v63, %v1039_v59  ;;  %v1571_v7 = vand.u32 31, %v1569_v61  ;;  %v5955_v12 = vand.u32 3, %v1440_v28  ;;  %v1570_v30 = vshrl.u32 %v1569_v61, 5 }
 0x10b   : > { %v1041_v15 = vsel %vm1031_vm14, nan, %v1040_v54  ;;  %v1434_v58 = vmul.f32 %v1433_v32, %v1431_v35  ;;  %v5957_v8 = vshrl.u32 %v1309_v5, 30  ;;  %v1565_v38 = vor.u32 8388608, %v1564_v10 }
 0x10c   : > { %v2485_v2 = vadd.f32 1.0, %v1041_v15  ;;  %v1572_v37 = vsub.s32 32, %v1571_v7  ;;  %v1574_v20 = vshll.u32 %v5126_v39, %v1571_v7  ;;  %v1577_v17 = vshll.u32 %v5127_v41, %v1571_v7 }
 0x10d   : > { %v1435_v14 = vxor.u32 2147483648, %v1434_v58  ;;  %v1311_v36 = vshll.u32 %v5957_v8, 30  ;;  %v1580_v50 = vshll.u32 %v5128_v43, %v1571_v7  ;;  %v1583_v33 = vshll.u32 %v5129_v46, %v1571_v7 }
 0x10e   : > { %v2501_v52 = vmul.f32 0.5, %v2485_v2  ;;  %v1575_v21 = vshrl.u32 %v5127_v41, %v1572_v37  ;;  %v1578_v23 = vshrl.u32 %v5128_v43, %v1572_v37  ;;  %v1581_v55 = vshrl.u32 %v5129_v46, %v1572_v37 }
 0x10f   : > { %v1436_v22 = vsel %vm1353_vm13, %v1435_v14, %v1434_v58  ;;  %v1584_v60 = vshrl.u32 %v5130_v48, %v1572_v37  ;;  %v5974_v45 = vsub.s32 %v1308_v0, %v1311_v36  ;;  %v1457_v18 = vand.u32 2139095040, %v5953_v13 }
 0x110   : > { %2518 = vst.msk [vmem:[#allocation3 + $0x8] sm:$0xff] %vm7436_vm1, %v2501_v52  ;;  %v1439_v42 = vsel %vm5938_vm5, %v5688_v24, %v1436_v22  ;;  %v1573_v29 = vshrl.u32 %v5126_v39, %v1572_v37  ;;  %v1576_v26 = vor.u32 %v1575_v21, %v1574_v20  ;;  %v1579_v40 = vor.u32 %v1578_v23, %v1577_v17 }
 0x111   : > { %4765 = vcosq.f32 %v1439_v42  ;;  %v1314_v44 = vsub.s32 0, %v5974_v45  ;;  %v1585_v47 = vor.u32 %v1584_v60, %v1583_v33  ;;  %v1582_v19 = vor.u32 %v1581_v55, %v1580_v50  ;;  %v2536_v60 = vld [vmem:[%s7469_s3 + $0x8] sm:$0xff] }
 0x112   : > { %4767 = vsinq.f32 %v1439_v42  ;;  %v1586_v49 = vshll.u32 %v5130_v48, %v1571_v7  ;;  %v1587_v11 = vshrl.u32 %v5131_v56, %v1572_v37  ;;  %vm1589_vm7 = vcmp.lt.s32.totalorder %v1570_v30, 1  ;;  %2555 = vperm.xlu1 %4748, %v2536_v60   ;;  %v2541_v60 = vld [vmem:[%s7469_s3 + $0x30] sm:$0xff] }
 0x113   : > { %vm1446_vm8 = vcmp.eq.s32.totalorder %v5955_v12, 0  ;;  %v4194_v51 = vmin.u32 %v1314_v44, %v5974_v45  ;;  %vm1590_vm9 = vcmp.lt.s32.totalorder %v1570_v30, 2  ;;  %v5983_v4 = vshll.u32 %v1565_v38, 8 }
 0x114   : > { %v1458_v34 = vshrl.u32 %v1457_v18, 23  ;;  %vm1445_vm10 = vcmp.lt.s32.totalorder %v5955_v12, 2  ;;  %v1588_v31 = vor.u32 %v1587_v11, %v1586_v49  ;;  %vm1591_vm11 = vcmp.lt.s32.totalorder %v1570_v30, 3 }
 0x115   : > { %vm1592_vm12 = vcmp.lt.s32.totalorder %v1570_v30, 4  ;;  %v1593_v59 = vsel %vm1589_vm7, %v1573_v29, %v1576_v26  ;;  %vm1443_vm13 = vweird.f32 %v5688_v24  ;;  %v1316_v53 = vclz %v4194_v51 }
 0x116   : > { %v1594_v32 = vsel %vm1592_vm12, %v1582_v19, 2102212464  ;;  %v1597_v62 = vsel %vm1589_vm7, %v1576_v26, %v1579_v40  ;;  %v1598_v63 = vsel %vm1592_vm12, %v1585_v47, 920167782  ;;  %v1601_v54 = vsel %vm1589_vm7, %v1579_v40, %v1582_v19  ;;  %v2535_v26 = vld [vmem:[%s7469_s3] sm:$0xff] }
 0x117   : > { %v1595_v3 = vsel %vm1591_vm11, %v1579_v40, %v1594_v32  ;;  %v1599_v0 = vsel %vm1591_vm11, %v1582_v19, %v1598_v63  ;;  %v1602_v35 = vsel %vm1592_vm12, %v1588_v31, 1326507024  ;;  %vm1250_vm14 = vcmp.lt.s32.totalorder %v5818_v1, 0  ;;  %2552 = vperm.xlu0 %4747, %v2535_v26  }
 0x118   : > { %v1304_v28 = vadd.s32 %v5911_v16, %v5920_v6  ;;  %v4195_v61 = vadd.s32 4294967294, %v1316_v53  ;;  %v1600_v15 = vsel %vm1590_vm9, %v1597_v62, %v1599_v0  ;;  %v1603_v5 = vsel %vm1591_vm11, %v1585_v47, %v1602_v35 }
 0x119   : > { %v1596_v7 = vsel %vm1590_vm9, %v1593_v59, %v1595_v3  ;;  %v1604_v2 = vsel %vm1590_vm9, %v1601_v54, %v1603_v5  ;;  %v6000_v58 = vmul.u32.u64.low %v5983_v4, %v1600_v15  ;;  %v6001_v10 = vmul.u32.u64.high %v5983_v4, %v1600_v15, %v6000_v58  ;;  %v2538_v59 = vld [vmem:[%s7469_s3 + $0x18] sm:$0xff]  ;;  %v2540_v5 = vld [vmem:[%s7469_s3 + $0x28] sm:$0xff] }
 0x11a   : > { %vm4196_vm15 = vcmp.lt.s32.totalorder %v4195_v61, 0  ;;  %v6005_v27 = vmul.u32.u64.low %v5983_v4, %v1604_v2  ;;  %v6006_v37 = vmul.u32.u64.high %v5983_v4, %v1604_v2, %v6005_v27  ;;  %v4201_v16 = vadd.s32 4294967169, %v1458_v34  ;;  %2561 = vperm.xlu1 %4748, %v2538_v59  }
 0x11b   : > { %v4766_v6 = vpop.eup %4765  ;;  %vm1449_vm0 = vcmp.eq.s32.totalorder %v5955_v12, 2  ;;  %v1319_v52 = vsel %vm4196_vm15, 0, %v4195_v61  ;;  %v1334_v14 = vsub.s32 4, %v5957_v8  ;;  %v1454_v30 = vand.u32 2147483647, %v5953_v13  ;;  %v2537_v12 = vld [vmem:[%s7469_s3 + $0x10] sm:$0xff] }
 0x11c   : > { %v4768_v20 = vpop.eup %4767  ;;  %v1450_v17 = vxor.u32 2147483648, %v4766_v6  ;;  %v1320_v36 = vsub.s32 32, %v1319_v52  ;;  %v1321_v21 = vshll.u32 %v5974_v45, %v1319_v52  ;;  %v1324_v50 = vsub.s32 4294967266, %v1319_v52  ;;  %v4846_v45 = vld [vmem:[%s7412_s1 + $0x48] sm:$0xff]  ;;  %2558 = vperm.xlu0 %4747, %v2537_v12  }
 0x11d   : > { %v1447_v33 = vxor.u32 2147483648, %v4768_v20  ;;  %v1612_v22 = vmul.u32 %v5983_v4, %v1596_v7  ;;  %v1615_v23 = vadd.s32 1, %v6001_v10  ;;  %v1464_v55 = vadd.s32 1, %v4201_v16  ;;  %v2539_v7 = vld [vmem:[%s7469_s3 + $0x20] sm:$0xff] }
 0x11e   : > { %v1451_v42 = vsel %vm1449_vm0, %v1450_v17, %v4768_v20  ;;  %v1322_v38 = vshrl.u32 %v1304_v28, %v1320_v36  ;;  %v1325_v18 = vadd.s32 127, %v1324_v50  ;;  %v6022_v29 = vmul.f32 0.6981317, %v4846_v45  ;;  %2567 = vperm.xlu1 %4748, %v2540_v5   ;;  %v2546_v5 = vld [vmem:[%s7469_s3 + $0x58] sm:$0xff] }
 0x11f   : > { %v1448_v44 = vsel %vm1446_vm8, %v4766_v6, %v1447_v33  ;;  %vm1614_vm2 = vc.u32 %v6006_v37, %v6000_v58  ;;  %v6033_v40 = vand.u32 8388607, %v1454_v30  ;;  %vm1465_vm3 = vcmp.gt.s32.totalorder %v1464_v55, 0 }
 0x120   : > { %v1452_v47 = vsel %vm1445_vm10, %v1448_v44, %v1451_v42  ;;  %v1323_v19 = vor.u32 %v1322_v38, %v1321_v21  ;;  %v1326_v49 = vshll.u32 %v1325_v18, 23  ;;  %v1616_v11 = vsel %vm1614_vm2, %v1615_v23, %v6001_v10  ;;  %2564 = vperm.xlu0 %4747, %v2539_v7   ;;  %v2545_v7 = vld [vmem:[%s7469_s3 + $0x50] sm:$0xff] }
 0x121   : > { %v1453_v51 = vsel %vm1443_vm13, nan, %v1452_v47  ;;  %v1335_v4 = vsel %vm1250_vm14, %v1334_v14, %v5957_v8  ;;  %v1617_v34 = vadd.s32 %v1616_v11, %v1612_v22  ;;  %v1466_v31 = vsel %vm1465_vm3, %v1464_v55, 0  ;;  %v2542_v55 = vld [vmem:[%s7469_s3 + $0x38] sm:$0xff] }
 0x122   : > { %v2489_v53 = vadd.f32 1.0, %v1453_v51  ;;  %v1327_v32 = vor.u32 4788187, %v1326_v49  ;;  %v1330_v62 = vcvt.s32.f32 %v1323_v19  ;;  %vm6051_vm4 = vcmp.le.f32.partialorder %v1248_v57, 0.7853982  ;;  %2573 = vperm.xlu1 %4748, %v2542_v55  }
 0x123   : > { %v1618_v8 = vadd.s32 536870912, %v1617_v34  ;;  %v1468_v63 = vand.u32 31, %v1466_v31  ;;  %v1337_v54 = vsel %vm6051_vm4, 0, %v1335_v4  ;;  %v1462_v35 = vor.u32 8388608, %v6033_v40  ;;  %v2544_v4 = vld [vmem:[%s7469_s3 + $0x48] sm:$0xff] }
 0x124   : > { %v2505_v3 = vmul.f32 0.5, %v2489_v53  ;;  %v1328_v0 = vand.u32 2147483647, %v1327_v32  ;;  %v6060_v61 = vshrl.u32 %v1466_v31, 5  ;;  %v1766_v57 = vand.u32 2139095040, %v6022_v29  ;;  %2570 = vperm.xlu0 %4747, %v2541_v60  }
 0x125   : > { %v6058_v28 = vshrl.u32 %v1618_v8, 30  ;;  %v1469_v15 = vsub.s32 32, %v1468_v63  ;;  %v1471_v10 = vshll.u32 %v5126_v39, %v1468_v63  ;;  %v1474_v27 = vshll.u32 %v5127_v41, %v1468_v63 }
 0x126   : > { %2522 = vst.msk [vmem:[#allocation3 + $0x28] sm:$0xff] %vm7436_vm1, %v2505_v3  ;;  %v1331_v2 = vmul.f32 %v1330_v62, %v1328_v0  ;;  %v1477_v16 = vshll.u32 %v5128_v43, %v1468_v63  ;;  %v1480_v14 = vshll.u32 %v5129_v46, %v1468_v63  ;;  %v1483_v20 = vshll.u32 %v5130_v48, %v1468_v63 }
 0x127   : > { %v1620_v6 = vshll.u32 %v6058_v28, 30  ;;  %v1472_v52 = vshrl.u32 %v5127_v41, %v1469_v15  ;;  %v1475_v36 = vshrl.u32 %v5128_v43, %v1469_v15  ;;  %v1478_v21 = vshrl.u32 %v5129_v46, %v1469_v15  ;;  %2579 = vperm.xlu1 %4748, %v2544_v4  }
 0x128   : > { %v1332_v17 = vxor.u32 2147483648, %v1331_v2  ;;  %v1481_v50 = vshrl.u32 %v5130_v48, %v1469_v15  ;;  %v6080_v33 = vand.u32 3, %v1337_v54  ;;  %v1484_v23 = vshrl.u32 %v5131_v56, %v1469_v15 }
 0x129   : > { %v6082_v22 = vsub.s32 %v1617_v34, %v1620_v6  ;;  %vm1486_vm5 = vcmp.lt.s32.totalorder %v6060_v61, 1  ;;  %v1470_v38 = vshrl.u32 %v5126_v39, %v1469_v15  ;;  %v1473_v18 = vor.u32 %v1472_v52, %v1471_v10  ;;  %v2543_v34 = vld [vmem:[%s7469_s3 + $0x40] sm:$0xff] }
 0x12a   : > { %v1333_v42 = vsel %vm1250_vm14, %v1332_v17, %v1331_v2  ;;  %v1476_v45 = vor.u32 %v1475_v36, %v1474_v27  ;;  %v1479_v40 = vor.u32 %v1478_v21, %v1477_v16  ;;  %v1482_v47 = vor.u32 %v1481_v50, %v1480_v14  ;;  %2576 = vperm.xlu0 %4747, %v2543_v34   ;;  %v2548_v17 = vld [vmem:[%s7469_s3 + $0x68] sm:$0xff]  ;;  %v2547_v36 = vld [vmem:[%s7469_s3 + $0x60] sm:$0xff] }
 0x12b   : > { %v1336_v26 = vsel %vm6051_vm4, %v5818_v1, %v1333_v42  ;;  %v1623_v44 = vsub.s32 0, %v6082_v22  ;;  %v1485_v19 = vor.u32 %v1484_v23, %v1483_v20  ;;  %vm1489_vm6 = vcmp.lt.s32.totalorder %v6060_v61, 4  ;;  %2585 = vperm.xlu1 %4748, %v2546_v5  }
 0x12c   : > { %4769 = vcosq.f32 %v1336_v26  ;;  %v1767_v49 = vshrl.u32 %v1766_v57, 23  ;;  %vm1488_vm7 = vcmp.lt.s32.totalorder %v6060_v61, 3  ;;  %v6102_v51 = vshll.u32 %v1462_v35, 8 }
 0x12d   : > { %4771 = vsinq.f32 %v1336_v26  ;;  %v4206_v11 = vmin.u32 %v1623_v44, %v6082_v22  ;;  %vm1487_vm8 = vcmp.lt.s32.totalorder %v6060_v61, 2  ;;  %v1490_v31 = vsel %vm1486_vm5, %v1470_v38, %v1473_v18 }
 0x12e   : > { %v1491_v59 = vsel %vm1489_vm6, %v1479_v40, 2102212464  ;;  %v1494_v12 = vsel %vm1486_vm5, %v1473_v18, %v1476_v45  ;;  %v1495_v62 = vsel %vm1489_vm6, %v1482_v47, 920167782  ;;  %v1498_v24 = vsel %vm1486_vm5, %v1476_v45, %v1479_v40  ;;  %2582 = vperm.xlu0 %4747, %v2545_v7  }
 0x12f   : > { %v1625_v53 = vclz %v4206_v11  ;;  %v1492_v32 = vsel %vm1488_vm7, %v1476_v45, %v1491_v59  ;;  %v1496_v8 = vsel %vm1488_vm7, %v1479_v40, %v1495_v62  ;;  %v1499_v63 = vsel %vm1489_vm6, %v1485_v19, 1326507024  ;;  %2591 = vperm.xlu1 %4748, %v2548_v17   ;;  %v2550_v11 = vld [vmem:[%s7469_s3 + $0x78] sm:$0xff] }
 0x130   : > { %v1763_v3 = vand.u32 2147483647, %v6022_v29  ;;  %v4213_v0 = vadd.s32 4294967169, %v1767_v49  ;;  %v1613_v54 = vadd.s32 %v6000_v58, %v6006_v37  ;;  %v1497_v15 = vsel %vm1487_vm8, %v1494_v12, %v1496_v8 }
 0x131   : > { %v4207_v35 = vadd.s32 4294967294, %v1625_v53  ;;  %v1500_v57 = vsel %vm1488_vm7, %v1482_v47, %v1499_v63  ;;  %v1493_v2 = vsel %vm1487_vm8, %v1490_v31, %v1492_v32  ;;  %vm1340_vm10 = vweird.f32 %v5818_v1 }
 0x132   : > { %v1501_v58 = vsel %vm1487_vm8, %v1498_v24, %v1500_v57  ;;  %v6145_v37 = vmul.u32.u64.low %v6102_v51, %v1497_v15  ;;  %v6146_v10 = vmul.u32.u64.high %v6102_v51, %v1497_v15, %v6145_v37  ;;  %v1773_v6 = vadd.s32 1, %v4213_v0  ;;  %2588 = vperm.xlu0 %4747, %v2547_v36  }
 0x133   : > { %vm4208_vm9 = vcmp.lt.s32.totalorder %v4207_v35, 0  ;;  %v6150_v27 = vmul.u32.u64.low %v6102_v51, %v1501_v58  ;;  %v6151_v16 = vmul.u32.u64.high %v6102_v51, %v1501_v58, %v6150_v27  ;;  %vm1343_vm11 = vcmp.eq.s32.totalorder %v6080_v33, 0  ;;  %2597 = vperm.xlu1 %4748, %v2550_v11  }
 0x134   : > { %v1628_v52 = vsel %vm4208_vm9, 0, %v4207_v35  ;;  %vm1774_vm12 = vcmp.gt.s32.totalorder %v1773_v6, 0  ;;  %vm1346_vm13 = vcmp.eq.s32.totalorder %v6080_v33, 2  ;;  %v1509_v50 = vmul.u32 %v6102_v51, %v1493_v2  ;;  %v2549_v51 = vld [vmem:[%s7469_s3 + $0x70] sm:$0xff] }
 0x135   : > { %v1629_v61 = vsub.s32 32, %v1628_v52  ;;  %v1630_v14 = vshll.u32 %v6082_v22, %v1628_v52  ;;  %v1633_v20 = vsub.s32 4294967266, %v1628_v52  ;;  %v1512_v23 = vadd.s32 1, %v6146_v10 }
 0x136   : > { %v4770_v21 = vpop.eup %4769  ;;  %v1775_v55 = vsel %vm1774_vm12, %v1773_v6, 0  ;;  %vm1559_vm14 = vcmp.lt.s32.totalorder %v5874_v9, 0  ;;  %v1770_v18 = vand.u32 8388607, %v1763_v3  ;;  %vm1342_vm15 = vcmp.lt.s32.totalorder %v6080_v33, 2  ;;  %2594 = vperm.xlu0 %4747, %v2549_v51  }
 0x137   : > { %v4772_v22 = vpop.eup %4771  ;;  %v1347_v60 = vxor.u32 2147483648, %v4770_v21  ;;  %v1631_v42 = vshrl.u32 %v1613_v54, %v1629_v61  ;;  %v1634_v38 = vadd.s32 127, %v1633_v20  ;;  %vm1511_vm0 = vc.u32 %v6151_v16, %v6145_v37 }
 0x138   : > { %v1344_v45 = vxor.u32 2147483648, %v4772_v22  ;;  %v1777_v26 = vand.u32 31, %v1775_v55  ;;  %vm6175_vm2 = vcmp.le.f32.partialorder %v1557_v25, 0.7853982  ;;  %v1513_v49 = vsel %vm1511_vm0, %v1512_v23, %v6146_v10 }
 0x139   : > { %v1348_v44 = vsel %vm1346_vm13, %v1347_v60, %v4772_v22  ;;  %v1632_v47 = vor.u32 %v1631_v42, %v1630_v14  ;;  %v1635_v19 = vshll.u32 %v1634_v38, 23  ;;  %v1643_v25 = vsub.s32 4, %v6058_v28 }
 0x13a   : > { %v1345_v4 = vsel %vm1343_vm11, %v4770_v21, %v1344_v45  ;;  %v1514_v34 = vadd.s32 %v1513_v49, %v1509_v50  ;;  %v1778_v31 = vsub.s32 32, %v1777_v26  ;;  %v1771_v32 = vor.u32 8388608, %v1770_v18 }
 0x13b   : > { %v1349_v59 = vsel %vm1342_vm15, %v1345_v4, %v1348_v44  ;;  %v1636_v12 = vor.u32 4788187, %v1635_v19  ;;  %v1639_v53 = vcvt.s32.f32 %v1632_v47  ;;  %v1780_v8 = vshll.u32 %v5126_v39, %v1777_v26  ;;  %v4847_v44 = vld [vmem:[%s7412_s1 + $0x40] sm:$0xff] }
 0x13c   : > { %v1350_v62 = vsel %vm1340_vm10, nan, %v1349_v59  ;;  %v1515_v24 = vadd.s32 536870912, %v1514_v34  ;;  %v1781_v63 = vshrl.u32 %v5127_v41, %v1778_v31  ;;  %v1783_v35 = vshll.u32 %v5127_v41, %v1777_v26 }
 0x13d   : > { %v2488_v0 = vadd.f32 1.0, %v1350_v62  ;;  %v1637_v54 = vand.u32 2147483647, %v1636_v12  ;;  %v1784_v15 = vshrl.u32 %v5128_v43, %v1778_v31  ;;  %v1776_v57 = vshrl.u32 %v1775_v55, 5 }
 0x13e   : > { %v6197_v33 = vshrl.u32 %v1515_v24, 30  ;;  %v1786_v5 = vshll.u32 %v5128_v43, %v1777_v26  ;;  %v1789_v7 = vshll.u32 %v5129_v46, %v1777_v26  ;;  %v1787_v58 = vshrl.u32 %v5129_v46, %v1778_v31 }
 0x13f   : > { %v2504_v1 = vmul.f32 0.5, %v2488_v0  ;;  %v1640_v2 = vmul.f32 %v1639_v53, %v1637_v54  ;;  %v1790_v10 = vshrl.u32 %v5130_v48, %v1778_v31  ;;  %v1644_v27 = vsel %vm1559_vm14, %v1643_v25, %v6058_v28 }
 0x140   : > { %v1517_v6 = vshll.u32 %v6197_v33, 30  ;;  %v1782_v52 = vor.u32 %v1781_v63, %v1780_v8  ;;  %v1792_v61 = vshll.u32 %v5130_v48, %v1777_v26  ;;  %v1785_v20 = vor.u32 %v1784_v15, %v1783_v35 }
 0x141   : > { %2521 = vst.msk [vmem:[#allocation3 + $0x20] sm:$0xff] %vm7436_vm1, %v2504_v1  ;;  %v1641_v14 = vxor.u32 2147483648, %v1640_v2  ;;  %v1791_v17 = vor.u32 %v1790_v10, %v1789_v7  ;;  %v1793_v36 = vshrl.u32 %v5131_v56, %v1778_v31  ;;  %v1779_v50 = vshrl.u32 %v5126_v39, %v1778_v31 }
 0x142   : > { %v6210_v21 = vsub.s32 %v1514_v34, %v1517_v6  ;;  %vm1795_vm3 = vcmp.lt.s32.totalorder %v1776_v57, 1  ;;  %v6213_v23 = vshll.u32 %v1771_v32, 8  ;;  %v1788_v55 = vor.u32 %v1787_v58, %v1786_v5 }
 0x143   : > { %v1642_v28 = vsel %vm1559_vm14, %v1641_v14, %v1640_v2  ;;  %vm1796_vm4 = vcmp.lt.s32.totalorder %v1776_v57, 2  ;;  %vm1798_vm5 = vcmp.lt.s32.totalorder %v1776_v57, 4  ;;  %v1794_v42 = vor.u32 %v1793_v36, %v1792_v61 }
 0x144   : > { %v1645_v22 = vsel %vm6175_vm2, %v5874_v9, %v1642_v28  ;;  %v1520_v60 = vsub.s32 0, %v6210_v21  ;;  %vm1797_vm6 = vcmp.lt.s32.totalorder %v1776_v57, 3  ;;  %v1800_v38 = vsel %vm1798_vm5, %v1788_v55, 2102212464 }
 0x145   : > { %4773 = vcosq.f32 %v1645_v22  ;;  %v1803_v18 = vsel %vm1795_vm3, %v1782_v52, %v1785_v20  ;;  %v1804_v45 = vsel %vm1798_vm5, %v1791_v17, 920167782  ;;  %vm1456_vm7 = vcmp.lt.s32.totalorder %v5953_v13, 0 }
 0x146   : > { %4775 = vsinq.f32 %v1645_v22  ;;  %v4202_v26 = vmin.u32 %v1520_v60, %v6210_v21  ;;  %v6229_v47 = vmul.f32 0.6981317, %v4847_v44  ;;  %v1799_v19 = vsel %vm1795_vm3, %v1779_v50, %v1782_v52 }
 0x147   : > { %v1801_v49 = vsel %vm1797_vm6, %v1785_v20, %v1800_v38  ;;  %v1805_v11 = vsel %vm1797_vm6, %v1788_v55, %v1804_v45  ;;  %v1807_v51 = vsel %vm1795_vm3, %v1785_v20, %v1788_v55  ;;  %v1646_v4 = vsel %vm6175_vm2, 0, %v1644_v27 }
 0x148   : > { %v1522_v25 = vclz %v4202_v26  ;;  %v1806_v34 = vsel %vm1796_vm4, %v1803_v18, %v1805_v11  ;;  %v1808_v31 = vsel %vm1798_vm5, %v1794_v42, 1326507024  ;;  %v1540_v59 = vsub.s32 4, %v6197_v33  ;;  %v4848_v42 = vld [vmem:[%s7412_s1 + $0x58] sm:$0xff] }
 0x149   : > { %v1809_v12 = vsel %vm1797_vm6, %v1791_v17, %v1808_v31  ;;  %v6242_v53 = vmul.u32.u64.low %v6213_v23, %v1806_v34  ;;  %v6243_v32 = vmul.u32.u64.high %v6213_v23, %v1806_v34, %v6242_v53  ;;  %vm1649_vm8 = vweird.f32 %v5874_v9 }
 0x14a   : > { %v4203_v62 = vadd.s32 4294967294, %v1522_v25  ;;  %v1802_v40 = vsel %vm1796_vm4, %v1799_v19, %v1801_v49  ;;  %v1810_v24 = vsel %vm1796_vm4, %v1807_v51, %v1809_v12  ;;  %v1663_v8 = vand.u32 2139095040, %v6229_v47 }
 0x14b   : > { %v1650_v63 = vand.u32 3, %v1646_v4  ;;  %vm6252_vm9 = vcmp.le.f32.partialorder %v1454_v30, 0.7853982  ;;  %v6257_v54 = vmul.u32.u64.low %v6213_v23, %v1810_v24  ;;  %v6258_v35 = vmul.u32.u64.high %v6213_v23, %v1810_v24, %v6257_v54 }
 0x14c   : > { %v1510_v15 = vadd.s32 %v6145_v37, %v6151_v16  ;;  %vm4204_vm10 = vcmp.lt.s32.totalorder %v4203_v62, 0  ;;  %v1660_v57 = vand.u32 2147483647, %v6229_v47  ;;  %v1664_v5 = vshrl.u32 %v1663_v8, 23 }
 0x14d   : > { %v1525_v7 = vsel %vm4204_vm10, 0, %v4203_v62  ;;  %v1541_v1 = vsel %vm1456_vm7, %v1540_v59, %v6197_v33  ;;  %v1818_v30 = vmul.u32 %v6213_v23, %v1802_v40  ;;  %v1821_v2 = vadd.s32 1, %v6243_v32 }
 0x14e   : > { %v1526_v58 = vsub.s32 32, %v1525_v7  ;;  %v1527_v10 = vshll.u32 %v6210_v21, %v1525_v7  ;;  %v1530_v27 = vsub.s32 4294967266, %v1525_v7  ;;  %v4209_v6 = vadd.s32 4294967169, %v1664_v5 }
 0x14f   : > { %v4774_v52 = vpop.eup %4773  ;;  %vm1651_vm11 = vcmp.lt.s32.totalorder %v1650_v63, 2  ;;  %vm1652_vm12 = vcmp.eq.s32.totalorder %v1650_v63, 0  ;;  %vm1655_vm13 = vcmp.eq.s32.totalorder %v1650_v63, 2  ;;  %vm1820_vm14 = vc.u32 %v6258_v35, %v6242_v53 }
 0x150   : > { %v4776_v37 = vpop.eup %4775  ;;  %v1656_v16 = vxor.u32 2147483648, %v4774_v52  ;;  %v1528_v61 = vshrl.u32 %v1510_v15, %v1526_v58  ;;  %v1531_v33 = vadd.s32 127, %v1530_v27  ;;  %v1822_v14 = vsel %vm1820_vm14, %v1821_v2, %v6243_v32 }
 0x151   : > { %v1653_v20 = vxor.u32 2147483648, %v4776_v37  ;;  %v1543_v17 = vsel %vm6252_vm9, 0, %v1541_v1  ;;  %v1823_v36 = vadd.s32 %v1822_v14, %v1818_v30  ;;  %v1670_v21 = vadd.s32 1, %v4209_v6 }
 0x152   : > { %v1657_v50 = vsel %vm1655_vm13, %v1656_v16, %v4776_v37  ;;  %v1529_v23 = vor.u32 %v1528_v61, %v1527_v10  ;;  %v1532_v28 = vshll.u32 %v1531_v33, 23  ;;  %v6276_v55 = vand.u32 8388607, %v1660_v57 }
 0x153   : > { %v1654_v22 = vsel %vm1652_vm12, %v4774_v52, %v1653_v20  ;;  %v1824_v60 = vadd.s32 536870912, %v1823_v36  ;;  %vm1671_vm15 = vcmp.gt.s32.totalorder %v1670_v21, 0  ;;  %v6282_v38 = vmul.f32 0.6981317, %v4848_v42 }
 0x154   : > { %v1658_v18 = vsel %vm1651_vm11, %v1654_v22, %v1657_v50  ;;  %v1533_v45 = vor.u32 4788187, %v1532_v28  ;;  %v1536_v26 = vcvt.s32.f32 %v1529_v23  ;;  %v1672_v44 = vsel %vm1671_vm15, %v1670_v21, 0 }
 0x155   : > { %v1659_v19 = vsel %vm1649_vm8, nan, %v1658_v18  ;;  %v6287_v49 = vshrl.u32 %v1824_v60, 30  ;;  %v1674_v11 = vand.u32 31, %v1672_v44  ;;  %v6289_v25 = vand.u32 3, %v1543_v17 }
 0x156   : > { %v2491_v51 = vadd.f32 1.0, %v1659_v19  ;;  %v1534_v4 = vand.u32 2147483647, %v1533_v45  ;;  %v1668_v32 = vor.u32 8388608, %v6276_v55  ;;  %v1972_v62 = vand.u32 2139095040, %v6282_v38 }
 0x157   : > { %v1826_v34 = vshll.u32 %v6287_v49, 30  ;;  %v1675_v31 = vsub.s32 32, %v1674_v11  ;;  %v1677_v9 = vshll.u32 %v5126_v39, %v1674_v11  ;;  %v1680_v8 = vshll.u32 %v5127_v41, %v1674_v11 }
 0x158   : > { %v2507_v59 = vmul.f32 0.5, %v2491_v51  ;;  %v1537_v12 = vmul.f32 %v1536_v26, %v1534_v4  ;;  %v1683_v15 = vshll.u32 %v5128_v43, %v1674_v11  ;;  %v1819_v7 = vadd.s32 %v6242_v53, %v6258_v35 }
 0x159   : > { %v6294_v40 = vsub.s32 %v1823_v36, %v1826_v34  ;;  %v1678_v24 = vshrl.u32 %v5127_v41, %v1675_v31  ;;  %v1681_v54 = vshrl.u32 %v5128_v43, %v1675_v31  ;;  %v1684_v5 = vshrl.u32 %v5129_v46, %v1675_v31 }
 0x15a   : > { %2524 = vst.msk [vmem:[#allocation3 + $0x38] sm:$0xff] %vm7436_vm1, %v2507_v59  ;;  %v1538_v63 = vxor.u32 2147483648, %v1537_v12  ;;  %v1673_v30 = vshrl.u32 %v1672_v44, 5  ;;  %v1686_v2 = vshll.u32 %v5129_v46, %v1674_v11  ;;  %v1676_v10 = vshrl.u32 %v5126_v39, %v1675_v31 }
 0x15b   : > { %v1829_v1 = vsub.s32 0, %v6294_v40  ;;  %v1687_v27 = vshrl.u32 %v5130_v48, %v1675_v31  ;;  %v1973_v6 = vshrl.u32 %v1972_v62, 23  ;;  %v1679_v53 = vor.u32 %v1678_v24, %v1677_v9 }
 0x15c   : > { %v1539_v58 = vsel %vm1456_vm7, %v1538_v63, %v1537_v12  ;;  %v1682_v35 = vor.u32 %v1681_v54, %v1680_v8  ;;  %v1685_v16 = vor.u32 %v1684_v5, %v1683_v15  ;;  %v1689_v33 = vshll.u32 %v5130_v48, %v1674_v11 }
 0x15d   : > { %v1542_v52 = vsel %vm6252_vm9, %v5953_v13, %v1539_v58  ;;  %v4214_v37 = vmin.u32 %v1829_v1, %v6294_v40  ;;  %v1688_v61 = vor.u32 %v1687_v27, %v1686_v2  ;;  %v1690_v20 = vshrl.u32 %v5131_v56, %v1675_v31  ;;  %v4849_v58 = vld [vmem:[%s7412_s1 + $0x50] sm:$0xff] }
 0x15e   : > { %4777 = vcosq.f32 %v1542_v52  ;;  %vm1692_vm0 = vcmp.lt.s32.totalorder %v1673_v30, 1  ;;  %vm1693_vm2 = vcmp.lt.s32.totalorder %v1673_v30, 2  ;;  %vm1694_vm3 = vcmp.lt.s32.totalorder %v1673_v30, 3 }
 0x15f   : > { %4779 = vsinq.f32 %v1542_v52  ;;  %v1831_v14 = vclz %v4214_v37  ;;  %vm1695_vm4 = vcmp.lt.s32.totalorder %v1673_v30, 4  ;;  %v1696_v17 = vsel %vm1692_vm0, %v1676_v10, %v1679_v53 }
 0x160   : > { %v1691_v36 = vor.u32 %v1690_v20, %v1689_v33  ;;  %v1697_v21 = vsel %vm1695_vm4, %v1685_v16, 2102212464  ;;  %v1700_v50 = vsel %vm1692_vm0, %v1679_v53, %v1682_v35  ;;  %v1701_v28 = vsel %vm1695_vm4, %v1688_v61, 920167782 }
 0x161   : > { %v4215_v0 = vadd.s32 4294967294, %v1831_v14  ;;  %v1698_v23 = vsel %vm1694_vm3, %v1682_v35, %v1697_v21  ;;  %v1704_v55 = vsel %vm1692_vm0, %v1682_v35, %v1685_v16  ;;  %v1708_v22 = vshll.u32 %v1668_v32, 8 }
 0x162   : > { %vm1546_vm5 = vweird.f32 %v5953_v13  ;;  %v1702_v60 = vsel %vm1694_vm3, %v1685_v16, %v1701_v28  ;;  %v1705_v42 = vsel %vm1695_vm4, %v1691_v36, 1326507024  ;;  %v4221_v18 = vadd.s32 4294967169, %v1973_v6 }
 0x163   : > { %vm4216_vm6 = vcmp.lt.s32.totalorder %v4215_v0, 0  ;;  %v1699_v26 = vsel %vm1693_vm2, %v1696_v17, %v1698_v23  ;;  %v1703_v44 = vsel %vm1693_vm2, %v1700_v50, %v1702_v60  ;;  %v1706_v19 = vsel %vm1694_vm3, %v1688_v61, %v1705_v42 }
 0x164   : > { %v1834_v45 = vsel %vm4216_vm6, 0, %v4215_v0  ;;  %v1707_v34 = vsel %vm1693_vm2, %v1704_v55, %v1706_v19  ;;  %v6328_v12 = vmul.u32.u64.low %v1708_v22, %v1703_v44  ;;  %v6329_v32 = vmul.u32.u64.high %v1708_v22, %v1703_v44, %v6328_v12 }
 0x165   : > { %v1835_v11 = vsub.s32 32, %v1834_v45  ;;  %v1836_v51 = vshll.u32 %v6294_v40, %v1834_v45  ;;  %v1839_v4 = vsub.s32 4294967266, %v1834_v45  ;;  %vm1548_vm7 = vcmp.lt.s32.totalorder %v6289_v25, 2 }
 0x166   : > { %v6325_v31 = vmul.u32.u64.low %v1708_v22, %v1707_v34  ;;  %v6326_v59 = vmul.u32.u64.high %v1708_v22, %v1707_v34, %v6325_v31  ;;  %v1979_v24 = vadd.s32 1, %v4221_v18  ;;  %vm1549_vm8 = vcmp.eq.s32.totalorder %v6289_v25, 0 }
 0x167   : > { %v1837_v62 = vshrl.u32 %v1819_v7, %v1835_v11  ;;  %v1840_v9 = vadd.s32 127, %v1839_v4  ;;  %vm1552_vm9 = vcmp.eq.s32.totalorder %v6289_v25, 2  ;;  %vm1765_vm10 = vcmp.lt.s32.totalorder %v6022_v29, 0 }
 0x168   : > { %v4778_v8 = vpop.eup %4777  ;;  %v1715_v40 = vmul.u32 %v1708_v22, %v1699_v26  ;;  %v1969_v63 = vand.u32 2147483647, %v6282_v38  ;;  %vm6339_vm11 = vcmp.le.f32.partialorder %v1763_v3, 0.7853982  ;;  %vm1980_vm12 = vcmp.gt.s32.totalorder %v1979_v24, 0 }
 0x169   : > { %v4780_v54 = vpop.eup %4779  ;;  %v1553_v15 = vxor.u32 2147483648, %v4778_v8  ;;  %v1838_v7 = vor.u32 %v1837_v62, %v1836_v51  ;;  %v1841_v1 = vshll.u32 %v1840_v9, 23  ;;  %vm1717_vm13 = vc.u32 %v6326_v59, %v6328_v12 }
 0x16a   : > { %v1550_v30 = vxor.u32 2147483648, %v4780_v54  ;;  %v1718_v2 = vadd.s32 1, %v6329_v32  ;;  %v6349_v10 = vmul.f32 0.6981317, %v4849_v58  ;;  %v1981_v52 = vsel %vm1980_vm12, %v1979_v24, 0 }
 0x16b   : > { %v1554_v3 = vsel %vm1552_vm9, %v1553_v15, %v4780_v54  ;;  %v1842_v27 = vor.u32 4788187, %v1841_v1  ;;  %v1845_v6 = vcvt.s32.f32 %v1838_v7  ;;  %v1976_v35 = vand.u32 8388607, %v1969_v63 }
 0x16c   : > { %v1551_v37 = vsel %vm1549_vm8, %v4778_v8, %v1550_v30  ;;  %v1719_v53 = vsel %vm1717_vm13, %v1718_v2, %v6329_v32  ;;  %v1983_v16 = vand.u32 31, %v1981_v52  ;;  %v1849_v14 = vsub.s32 4, %v6287_v49 }
 0x16d   : > { %v1555_v61 = vsel %vm1548_vm7, %v1551_v37, %v1554_v3  ;;  %v1843_v33 = vand.u32 2147483647, %v1842_v27  ;;  %v1720_v20 = vadd.s32 %v1719_v53, %v1715_v40  ;;  %v1982_v0 = vshrl.u32 %v1981_v52, 5 }
 0x16e   : > { %v1556_v17 = vsel %vm1546_vm5, nan, %v1555_v61  ;;  %v1984_v36 = vsub.s32 32, %v1983_v16  ;;  %v1986_v21 = vshll.u32 %v5126_v39, %v1983_v16  ;;  %v1989_v55 = vshll.u32 %v5127_v41, %v1983_v16 }
 0x16f   : > { %v2490_v50 = vadd.f32 1.0, %v1556_v17  ;;  %v1846_v23 = vmul.f32 %v1845_v6, %v1843_v33  ;;  %v1721_v28 = vadd.s32 536870912, %v1720_v20  ;;  %v1992_v60 = vshll.u32 %v5128_v43, %v1983_v16 }
 0x170   : > { %v1987_v22 = vshrl.u32 %v5127_v41, %v1984_v36  ;;  %v1990_v25 = vshrl.u32 %v5128_v43, %v1984_v36  ;;  %v1993_v42 = vshrl.u32 %v5129_v46, %v1984_v36  ;;  %v1995_v26 = vshll.u32 %v5129_v46, %v1983_v16 }
 0x171   : > { %v2506_v18 = vmul.f32 0.5, %v2490_v50  ;;  %v1847_v13 = vxor.u32 2147483648, %v1846_v23  ;;  %v6369_v45 = vshrl.u32 %v1721_v28, 30  ;;  %v1850_v44 = vsel %vm1765_vm10, %v1849_v14, %v6287_v49  ;;  %v4850_v14 = vld [vmem:[%s7412_s1 + $0x68] sm:$0xff] }
 0x172   : > { %v1977_v19 = vor.u32 8388608, %v1976_v35  ;;  %v1985_v11 = vshrl.u32 %v5126_v39, %v1984_v36  ;;  %v1996_v51 = vshrl.u32 %v5130_v48, %v1984_v36  ;;  %v1988_v31 = vor.u32 %v1987_v22, %v1986_v21 }
 0x173   : > { %2523 = vst.msk [vmem:[#allocation3 + $0x30] sm:$0xff] %vm7436_vm1, %v2506_v18  ;;  %v1848_v4 = vsel %vm1765_vm10, %v1847_v13, %v1846_v23  ;;  %v1723_v34 = vshll.u32 %v6369_v45, 30  ;;  %v1998_v32 = vshll.u32 %v5130_v48, %v1983_v16  ;;  %v1991_v49 = vor.u32 %v1990_v25, %v1989_v55 }
 0x174   : > { %v1851_v62 = vsel %vm6339_vm11, %v6022_v29, %v1848_v4  ;;  %v1997_v9 = vor.u32 %v1996_v51, %v1995_v26  ;;  %v1999_v24 = vshrl.u32 %v5131_v56, %v1984_v36  ;;  %v1994_v40 = vor.u32 %v1993_v42, %v1992_v60 }
 0x175   : > { %4781 = vcosq.f32 %v1851_v62  ;;  %v6386_v8 = vsub.s32 %v1720_v20, %v1723_v34  ;;  %vm2001_vm14 = vcmp.lt.s32.totalorder %v1982_v0, 1  ;;  %v1852_v54 = vsel %vm6339_vm11, 0, %v1850_v44 }
 0x176   : > { %4783 = vsinq.f32 %v1851_v62  ;;  %v2000_v15 = vor.u32 %v1999_v24, %v1998_v32  ;;  %vm2003_vm15 = vcmp.lt.s32.totalorder %v1982_v0, 3  ;;  %vm2004_vm0 = vcmp.lt.s32.totalorder %v1982_v0, 4 }
 0x177   : > { %v1726_v7 = vsub.s32 0, %v6386_v8  ;;  %v2017_v1 = vshll.u32 %v1977_v19, 8  ;;  %vm2002_vm2 = vcmp.lt.s32.totalorder %v1982_v0, 2  ;;  %v2006_v30 = vsel %vm2004_vm0, %v1994_v40, 2102212464 }
 0x178   : > { %v2009_v2 = vsel %vm2001_vm14, %v1988_v31, %v1991_v49  ;;  %v2010_v58 = vsel %vm2004_vm0, %v1997_v9, 920167782  ;;  %vm1662_vm3 = vcmp.lt.s32.totalorder %v6229_v47, 0  ;;  %v2005_v27 = vsel %vm2001_vm14, %v1985_v11, %v1988_v31 }
 0x179   : > { %v4210_v3 = vmin.u32 %v1726_v7, %v6386_v8  ;;  %v2013_v6 = vsel %vm2001_vm14, %v1991_v49, %v1994_v40  ;;  %v1869_v5 = vand.u32 2139095040, %v6349_v10  ;;  %vm1855_vm4 = vweird.f32 %v6022_v29 }
 0x17a   : > { %v1856_v52 = vand.u32 3, %v1852_v54  ;;  %v2007_v37 = vsel %vm2003_vm15, %v1991_v49, %v2006_v30  ;;  %v2011_v53 = vsel %vm2003_vm15, %v1994_v40, %v2010_v58  ;;  %v2014_v35 = vsel %vm2004_vm0, %v2000_v15, 1326507024 }
 0x17b   : > { %v1728_v16 = vclz %v4210_v3  ;;  %v2012_v61 = vsel %vm2002_vm2, %v2009_v2, %v2011_v53  ;;  %v2015_v33 = vsel %vm2003_vm15, %v1997_v9, %v2014_v35  ;;  %v6402_v20 = vmul.f32 0.6981317, %v4850_v14 }
 0x17c   : > { %v2008_v17 = vsel %vm2002_vm2, %v2005_v27, %v2007_v37  ;;  %v2016_v36 = vsel %vm2002_vm2, %v2013_v6, %v2015_v33  ;;  %v6406_v21 = vmul.u32.u64.low %v2017_v1, %v2012_v61  ;;  %v6407_v50 = vmul.u32.u64.high %v2017_v1, %v2012_v61, %v6406_v21 }
 0x17d   : > { %v4211_v23 = vadd.s32 4294967294, %v1728_v16  ;;  %v6410_v28 = vmul.u32.u64.low %v2017_v1, %v2016_v36  ;;  %v6411_v55 = vmul.u32.u64.high %v2017_v1, %v2016_v36, %v6410_v28  ;;  %v1870_v22 = vshrl.u32 %v1869_v5, 23 }
 0x17e   : > { %vm1857_vm5 = vcmp.lt.s32.totalorder %v1856_v52, 2  ;;  %vm1858_vm6 = vcmp.eq.s32.totalorder %v1856_v52, 0  ;;  %vm1861_vm7 = vcmp.eq.s32.totalorder %v1856_v52, 2  ;;  %v1746_v25 = vsub.s32 4, %v6369_v45 }
 0x17f   : > { %v4782_v60 = vpop.eup %4781  ;;  %v1716_v42 = vadd.s32 %v6328_v12, %v6326_v59  ;;  %vm4212_vm8 = vcmp.lt.s32.totalorder %v4211_v23, 0  ;;  %v1866_v0 = vand.u32 2147483647, %v6349_v10  ;;  %v4217_v18 = vadd.s32 4294967169, %v1870_v22 }
 0x180   : > { %v4784_v13 = vpop.eup %4783  ;;  %v1862_v26 = vxor.u32 2147483648, %v4782_v60  ;;  %v1731_v44 = vsel %vm4212_vm8, 0, %v4211_v23  ;;  %v2024_v19 = vmul.u32 %v2017_v1, %v2008_v17  ;;  %v2027_v11 = vadd.s32 1, %v6407_v50 }
 0x181   : > { %v1859_v51 = vxor.u32 2147483648, %v4784_v13  ;;  %v1732_v4 = vsub.s32 32, %v1731_v44  ;;  %v1733_v34 = vshll.u32 %v6386_v8, %v1731_v44  ;;  %v1736_v31 = vsub.s32 4294967266, %v1731_v44 }
 0x182   : > { %v1863_v32 = vsel %vm1861_vm7, %v1862_v26, %v4784_v13  ;;  %v1747_v59 = vsel %vm1662_vm3, %v1746_v25, %v6369_v45  ;;  %vm2026_vm9 = vc.u32 %v6411_v55, %v6406_v21  ;;  %v1876_v12 = vadd.s32 1, %v4217_v18 }
 0x183   : > { %v1860_v62 = vsel %vm1858_vm6, %v4782_v60, %v1859_v51  ;;  %v1734_v49 = vshrl.u32 %v1716_v42, %v1732_v4  ;;  %v1737_v9 = vadd.s32 127, %v1736_v31  ;;  %v2028_v24 = vsel %vm2026_vm9, %v2027_v11, %v6407_v50 }
 0x184   : > { %v1864_v40 = vsel %vm1857_vm5, %v1860_v62, %v1863_v32  ;;  %v2029_v8 = vadd.s32 %v2028_v24, %v2024_v19  ;;  %v1873_v54 = vand.u32 8388607, %v1866_v0  ;;  %vm1877_vm10 = vcmp.gt.s32.totalorder %v1876_v12, 0 }
 0x185   : > { %v1865_v45 = vsel %vm1855_vm4, nan, %v1864_v40  ;;  %v1735_v15 = vor.u32 %v1734_v49, %v1733_v34  ;;  %v1738_v7 = vshll.u32 %v1737_v9, 23  ;;  %v1878_v1 = vsel %vm1877_vm10, %v1876_v12, 0 }
 0x186   : > { %v2493_v30 = vadd.f32 1.0, %v1865_v45  ;;  %vm6434_vm11 = vcmp.le.f32.partialorder %v1660_v57, 0.7853982  ;;  %v2030_v58 = vadd.s32 536870912, %v2029_v8  ;;  %v1880_v3 = vand.u32 31, %v1878_v1 }
 0x187   : > { %v1739_v27 = vor.u32 4788187, %v1738_v7  ;;  %v1742_v6 = vcvt.s32.f32 %v1735_v15  ;;  %v1749_v5 = vsel %vm6434_vm11, 0, %v1747_v59  ;;  %v2178_v53 = vand.u32 2139095040, %v6402_v20 }
 0x188   : > { %v2509_v52 = vmul.f32 0.5, %v2493_v30  ;;  %v6440_v29 = vshrl.u32 %v2030_v58, 30  ;;  %v1881_v37 = vsub.s32 32, %v1880_v3  ;;  %v1874_v16 = vor.u32 8388608, %v1873_v54 }
 0x189   : > { %v1740_v35 = vand.u32 2147483647, %v1739_v27  ;;  %v1883_v57 = vshll.u32 %v5126_v39, %v1880_v3  ;;  %v1886_v61 = vshll.u32 %v5127_v41, %v1880_v3  ;;  %v1889_v17 = vshll.u32 %v5128_v43, %v1880_v3 }
 0x18a   : > { %2526 = vst.msk [vmem:[#allocation3 + $0x48] sm:$0xff] %vm7436_vm1, %v2509_v52  ;;  %v2032_v33 = vshll.u32 %v6440_v29, 30  ;;  %v1884_v14 = vshrl.u32 %v5127_v41, %v1881_v37  ;;  %v1892_v36 = vshll.u32 %v5129_v46, %v1880_v3  ;;  %v1887_v23 = vshrl.u32 %v5128_v43, %v1881_v37 }
 0x18b   : > { %v1743_v50 = vmul.f32 %v1742_v6, %v1740_v35  ;;  %v1890_v28 = vshrl.u32 %v5129_v46, %v1881_v37  ;;  %v1893_v22 = vshrl.u32 %v5130_v48, %v1881_v37  ;;  %v6453_v25 = vand.u32 3, %v1749_v5 }
 0x18c   : > { %v6455_v60 = vsub.s32 %v2029_v8, %v2032_v33  ;;  %v1879_v42 = vshrl.u32 %v1878_v1, 5  ;;  %v1895_v13 = vshll.u32 %v5130_v48, %v1880_v3  ;;  %v6458_v26 = vshll.u32 %v1874_v16, 8 }
 0x18d   : > { %v1744_v18 = vxor.u32 2147483648, %v1743_v50  ;;  %v2179_v44 = vshrl.u32 %v2178_v53, 23  ;;  %v1882_v11 = vshrl.u32 %v5126_v39, %v1881_v37  ;;  %v1885_v51 = vor.u32 %v1884_v14, %v1883_v57 }
 0x18e   : > { %v2035_v19 = vsub.s32 0, %v6455_v60  ;;  %v1896_v4 = vshrl.u32 %v5131_v56, %v1881_v37  ;;  %v1888_v31 = vor.u32 %v1887_v23, %v1886_v61  ;;  %v1891_v32 = vor.u32 %v1890_v28, %v1889_v17 }
 0x18f   : > { %v1745_v34 = vsel %vm1662_vm3, %v1744_v18, %v1743_v50  ;;  %v1894_v59 = vor.u32 %v1893_v22, %v1892_v36  ;;  %vm1898_vm12 = vcmp.lt.s32.totalorder %v1879_v42, 1  ;;  %vm1899_vm13 = vcmp.lt.s32.totalorder %v1879_v42, 2 }
 0x190   : > { %v1748_v12 = vsel %vm6434_vm11, %v6229_v47, %v1745_v34  ;;  %v4222_v62 = vmin.u32 %v2035_v19, %v6455_v60  ;;  %v1897_v49 = vor.u32 %v1896_v4, %v1895_v13  ;;  %vm1900_vm14 = vcmp.lt.s32.totalorder %v1879_v42, 3 }
 0x191   : > { %4785 = vcosq.f32 %v1748_v12  ;;  %vm1901_vm15 = vcmp.lt.s32.totalorder %v1879_v42, 4  ;;  %v1902_v24 = vsel %vm1898_vm12, %v1882_v11, %v1885_v51  ;;  %v1906_v54 = vsel %vm1898_vm12, %v1885_v51, %v1888_v31 }
 0x192   : > { %4787 = vsinq.f32 %v1748_v12  ;;  %v2037_v9 = vclz %v4222_v62  ;;  %v1903_v40 = vsel %vm1901_vm15, %v1891_v32, 2102212464  ;;  %v1907_v45 = vsel %vm1901_vm15, %v1894_v59, 920167782 }
 0x193   : > { %v1904_v8 = vsel %vm1900_vm14, %v1888_v31, %v1903_v40  ;;  %v1910_v15 = vsel %vm1898_vm12, %v1888_v31, %v1891_v32  ;;  %v2025_v7 = vadd.s32 %v6406_v21, %v6411_v55  ;;  %v1908_v30 = vsel %vm1900_vm14, %v1891_v32, %v1907_v45 }
 0x194   : > { %v4223_v1 = vadd.s32 4294967294, %v2037_v9  ;;  %v1911_v2 = vsel %vm1901_vm15, %v1897_v49, 1326507024  ;;  %v1905_v58 = vsel %vm1899_vm13, %v1902_v24, %v1904_v8  ;;  %v1909_v3 = vsel %vm1899_vm13, %v1906_v54, %v1908_v30 }
 0x195   : > { %v1912_v27 = vsel %vm1900_vm14, %v1894_v59, %v1911_v2  ;;  %v4229_v6 = vadd.s32 4294967169, %v2179_v44  ;;  %v6478_v52 = vmul.u32.u64.low %v6458_v26, %v1909_v3  ;;  %v6479_v37 = vmul.u32.u64.high %v6458_v26, %v1909_v3, %v6478_v52 }
 0x196   : > { %vm4224_vm0 = vcmp.lt.s32.totalorder %v4223_v1, 0  ;;  %v1913_v5 = vsel %vm1899_vm13, %v1910_v15, %v1912_v27  ;;  %vm1752_vm2 = vweird.f32 %v6229_v47  ;;  %vm1755_vm3 = vcmp.eq.s32.totalorder %v6453_v25, 0 }
 0x197   : > { %v2040_v21 = vsel %vm4224_vm0, 0, %v4223_v1  ;;  %v6484_v55 = vmul.u32.u64.low %v6458_v26, %v1913_v5  ;;  %v6485_v53 = vmul.u32.u64.high %v6458_v26, %v1913_v5, %v6484_v55  ;;  %v2185_v61 = vadd.s32 1, %v4229_v6 }
 0x198   : > { %v2041_v35 = vsub.s32 32, %v2040_v21  ;;  %v2042_v16 = vshll.u32 %v6455_v60, %v2040_v21  ;;  %v2045_v57 = vsub.s32 4294967266, %v2040_v21  ;;  %vm1971_vm4 = vcmp.lt.s32.totalorder %v6282_v38, 0 }
 0x199   : > { %v2055_v33 = vsub.s32 4, %v6440_v29  ;;  %v1921_v14 = vmul.u32 %v6458_v26, %v1905_v58  ;;  %v1924_v50 = vadd.s32 1, %v6479_v37  ;;  %vm2186_vm5 = vcmp.gt.s32.totalorder %v2185_v61, 0 }
 0x19a   : > { %v2043_v17 = vshrl.u32 %v2025_v7, %v2041_v35  ;;  %v2046_v36 = vadd.s32 127, %v2045_v57  ;;  %vm1758_vm6 = vcmp.eq.s32.totalorder %v6453_v25, 2  ;;  %vm1923_vm7 = vc.u32 %v6485_v53, %v6478_v52 }
 0x19b   : > { %v4786_v23 = vpop.eup %4785  ;;  %v2175_v28 = vand.u32 2147483647, %v6402_v20  ;;  %v2187_v22 = vsel %vm2186_vm5, %v2185_v61, 0  ;;  %v1925_v26 = vsel %vm1923_vm7, %v1924_v50, %v6479_v37  ;;  %vm1754_vm8 = vcmp.lt.s32.totalorder %v6453_v25, 2 }
 0x19c   : > { %v4788_v60 = vpop.eup %4787  ;;  %v1759_v42 = vxor.u32 2147483648, %v4786_v23  ;;  %v2044_v18 = vor.u32 %v2043_v17, %v2042_v16  ;;  %v2047_v13 = vshll.u32 %v2046_v36, 23  ;;  %v1926_v19 = vadd.s32 %v1925_v26, %v1921_v14 }
 0x19d   : > { %v1756_v44 = vxor.u32 2147483648, %v4788_v60  ;;  %v2189_v11 = vand.u32 31, %v2187_v22  ;;  %v2056_v31 = vsel %vm1971_vm4, %v2055_v33, %v6440_v29  ;;  %v2182_v12 = vand.u32 8388607, %v2175_v28 }
 0x19e   : > { %v1760_v51 = vsel %vm1758_vm6, %v1759_v42, %v4788_v60  ;;  %v2048_v4 = vor.u32 4788187, %v2047_v13  ;;  %v2051_v34 = vcvt.s32.f32 %v2044_v18  ;;  %v1927_v59 = vadd.s32 536870912, %v1926_v19  ;;  %v4851_v60 = vld [vmem:[%s7412_s1 + $0x60] sm:$0xff] }
 0x19f   : > { %v1757_v32 = vsel %vm1755_vm3, %v4786_v23, %v1756_v44  ;;  %v2190_v62 = vsub.s32 32, %v2189_v11  ;;  %v2192_v24 = vshll.u32 %v5126_v39, %v2189_v11  ;;  %v2195_v40 = vshll.u32 %v5127_v41, %v2189_v11 }
 0x1a0   : > { %v1761_v49 = vsel %vm1754_vm8, %v1757_v32, %v1760_v51  ;;  %v2049_v9 = vand.u32 2147483647, %v2048_v4  ;;  %v6510_v54 = vshrl.u32 %v1927_v59, 30  ;;  %v2198_v25 = vshll.u32 %v5128_v43, %v2189_v11 }
 0x1a1   : > { %v1762_v8 = vsel %vm1752_vm2, nan, %v1761_v49  ;;  %v2193_v29 = vshrl.u32 %v5127_v41, %v2190_v62  ;;  %v2196_v7 = vshrl.u32 %v5128_v43, %v2190_v62  ;;  %v2199_v1 = vshrl.u32 %v5129_v46, %v2190_v62 }
 0x1a2   : > { %v2492_v45 = vadd.f32 1.0, %v1762_v8  ;;  %v2052_v15 = vmul.f32 %v2051_v34, %v2049_v9  ;;  %vm6518_vm9 = vcmp.le.f32.partialorder %v1969_v63, 0.7853982  ;;  %v1929_v47 = vshll.u32 %v6510_v54, 30 }
 0x1a3   : > { %v2188_v2 = vshrl.u32 %v2187_v22, 5  ;;  %v2201_v58 = vshll.u32 %v5129_v46, %v2189_v11  ;;  %v2058_v6 = vsel %vm6518_vm9, 0, %v2056_v31  ;;  %v2183_v5 = vor.u32 8388608, %v2182_v12 }
 0x1a4   : > { %v2508_v3 = vmul.f32 0.5, %v2492_v45  ;;  %v2053_v27 = vxor.u32 2147483648, %v2052_v15  ;;  %v6526_v37 = vsub.s32 %v1926_v19, %v1929_v47  ;;  %v2194_v21 = vor.u32 %v2193_v29, %v2192_v24 }
 0x1a5   : > { %v2202_v55 = vshrl.u32 %v5130_v48, %v2190_v62  ;;  %v2204_v63 = vshll.u32 %v5130_v48, %v2189_v11  ;;  %v2197_v16 = vor.u32 %v2196_v7, %v2195_v40  ;;  %v2200_v57 = vor.u32 %v2199_v1, %v2198_v25 }
 0x1a6   : > { %2525 = vst.msk [vmem:[#allocation3 + $0x40] sm:$0xff] %vm7436_vm1, %v2508_v3  ;;  %v2054_v35 = vsel %vm1971_vm4, %v2053_v27, %v2052_v15  ;;  %v2205_v61 = vshrl.u32 %v5131_v56, %v2190_v62  ;;  %v1932_v14 = vsub.s32 0, %v6526_v37  ;;  %vm2207_vm10 = vcmp.lt.s32.totalorder %v2188_v2, 1 }
 0x1a7   : > { %v2057_v33 = vsel %vm6518_vm9, %v6282_v38, %v2054_v35  ;;  %v2203_v17 = vor.u32 %v2202_v55, %v2201_v58  ;;  %v6538_v36 = vand.u32 3, %v2058_v6  ;;  %v2191_v50 = vshrl.u32 %v5126_v39, %v2190_v62 }
 0x1a8   : > { %4789 = vcosq.f32 %v2057_v33  ;;  %v2206_v23 = vor.u32 %v2205_v61, %v2204_v63  ;;  %v4218_v22 = vmin.u32 %v1932_v14, %v6526_v37  ;;  %vm2209_vm11 = vcmp.lt.s32.totalorder %v2188_v2, 3 }
 0x1a9   : > { %4791 = vsinq.f32 %v2057_v33  ;;  %v6545_v42 = vmul.f32 0.6981317, %v4851_v60  ;;  %vm1868_vm12 = vcmp.lt.s32.totalorder %v6349_v10, 0  ;;  %vm2208_vm13 = vcmp.lt.s32.totalorder %v2188_v2, 2 }
 0x1aa   : > { %vm2210_vm14 = vcmp.lt.s32.totalorder %v2188_v2, 4  ;;  %v2215_v18 = vsel %vm2207_vm10, %v2194_v21, %v2197_v16  ;;  %v2223_v13 = vshll.u32 %v2183_v5, 8  ;;  %v1934_v26 = vclz %v4218_v22 }
 0x1ab   : > { %v2212_v44 = vsel %vm2210_vm14, %v2200_v57, 2102212464  ;;  %v2216_v19 = vsel %vm2210_vm14, %v2203_v17, 920167782  ;;  %v2219_v11 = vsel %vm2207_vm10, %v2197_v16, %v2200_v57  ;;  %v2211_v51 = vsel %vm2207_vm10, %v2191_v50, %v2194_v21 }
 0x1ac   : > { %v2213_v4 = vsel %vm2209_vm11, %v2197_v16, %v2212_v44  ;;  %v2217_v34 = vsel %vm2209_vm11, %v2200_v57, %v2216_v19  ;;  %v2220_v31 = vsel %vm2210_vm14, %v2206_v23, 1326507024  ;;  %vm2061_vm15 = vweird.f32 %v6282_v38 }
 0x1ad   : > { %v1922_v32 = vadd.s32 %v6478_v52, %v6485_v53  ;;  %v4219_v59 = vadd.s32 4294967294, %v1934_v26  ;;  %v2218_v12 = vsel %vm2208_vm13, %v2215_v18, %v2217_v34  ;;  %v2221_v62 = vsel %vm2209_vm11, %v2203_v17, %v2220_v31 }
 0x1ae   : > { %v1952_v49 = vsub.s32 4, %v6510_v54  ;;  %v2222_v9 = vsel %vm2208_vm13, %v2219_v11, %v2221_v62  ;;  %v6560_v24 = vmul.u32.u64.low %v2223_v13, %v2218_v12  ;;  %v6561_v40 = vmul.u32.u64.high %v2223_v13, %v2218_v12, %v6560_v24 }
 0x1af   : > { %vm4220_vm0 = vcmp.lt.s32.totalorder %v4219_v59, 0  ;;  %v2214_v8 = vsel %vm2208_vm13, %v2211_v51, %v2213_v4  ;;  %v6564_v29 = vmul.u32.u64.low %v2223_v13, %v2222_v9  ;;  %v6565_v25 = vmul.u32.u64.high %v2223_v13, %v2222_v9, %v6564_v29 }
 0x1b0   : > { %vm2063_vm2 = vcmp.lt.s32.totalorder %v6538_v36, 2  ;;  %v1937_v52 = vsel %vm4220_vm0, 0, %v4219_v59  ;;  %v2072_v53 = vand.u32 2147483647, %v6545_v42  ;;  %v2075_v45 = vand.u32 2139095040, %v6545_v42 }
 0x1b1   : > { %vm2064_vm3 = vcmp.eq.s32.totalorder %v6538_v36, 0  ;;  %v1938_v15 = vsub.s32 32, %v1937_v52  ;;  %v1939_v7 = vshll.u32 %v6526_v37, %v1937_v52  ;;  %v1942_v1 = vsub.s32 4294967266, %v1937_v52 }
 0x1b2   : > { %v4790_v30 = vpop.eup %4789  ;;  %vm2067_vm4 = vcmp.eq.s32.totalorder %v6538_v36, 2  ;;  %v2230_v47 = vmul.u32 %v2223_v13, %v2214_v8  ;;  %v2233_v2 = vadd.s32 1, %v6561_v40  ;;  %v2076_v58 = vshrl.u32 %v2075_v45, 23 }
 0x1b3   : > { %v4792_v3 = vpop.eup %4791  ;;  %v2068_v27 = vxor.u32 2147483648, %v4790_v30  ;;  %v1940_v6 = vshrl.u32 %v1922_v32, %v1938_v15  ;;  %v1943_v5 = vadd.s32 127, %v1942_v1  ;;  %v1953_v21 = vsel %vm1868_vm12, %v1952_v49, %v6510_v54  ;;  %v4852_v54 = vld [vmem:[%s7412_s1 + $0x78] sm:$0xff] }
 0x1b4   : > { %v2065_v55 = vxor.u32 2147483648, %v4792_v3  ;;  %vm2232_vm5 = vc.u32 %v6565_v25, %v6560_v24  ;;  %v4225_v37 = vadd.s32 4294967169, %v2076_v58  ;;  %v2079_v63 = vand.u32 8388607, %v2072_v53 }
 0x1b5   : > { %v2069_v35 = vsel %vm2067_vm4, %v2068_v27, %v4792_v3  ;;  %v1941_v16 = vor.u32 %v1940_v6, %v1939_v7  ;;  %v1944_v57 = vshll.u32 %v1943_v5, 23  ;;  %v2234_v61 = vsel %vm2232_vm5, %v2233_v2, %v6561_v40 }
 0x1b6   : > { %v2066_v33 = vsel %vm2064_vm3, %v4790_v30, %v2065_v55  ;;  %v2235_v14 = vadd.s32 %v2234_v61, %v2230_v47  ;;  %v2082_v17 = vadd.s32 1, %v4225_v37  ;;  %v6586_v50 = vmul.f32 0.6981317, %v4852_v54 }
 0x1b7   : > { %v2070_v23 = vsel %vm2063_vm2, %v2066_v33, %v2069_v35  ;;  %vm6592_vm6 = vcmp.le.f32.partialorder %v1866_v0, 0.7853982  ;;  %v1945_v60 = vor.u32 4788187, %v1944_v57  ;;  %v1948_v18 = vcvt.s32.f32 %v1941_v16 }
 0x1b8   : > { %v2071_v13 = vsel %vm2061_vm15, nan, %v2070_v23  ;;  %v1955_v26 = vsel %vm6592_vm6, 0, %v1953_v21  ;;  %v2236_v44 = vadd.s32 536870912, %v2235_v14  ;;  %vm2083_vm7 = vcmp.gt.s32.totalorder %v2082_v17, 0 }
 0x1b9   : > { %v2495_v19 = vadd.f32 1.0, %v2071_v13  ;;  %v1946_v11 = vand.u32 2147483647, %v1945_v60  ;;  %v2080_v36 = vor.u32 8388608, %v2079_v63  ;;  %v2084_v51 = vsel %vm2083_vm7, %v2082_v17, 0 }
 0x1ba   : > { %v6600_v4 = vshrl.u32 %v2236_v44, 30  ;;  %v2086_v0 = vand.u32 31, %v2084_v51  ;;  %v2384_v34 = vand.u32 2139095040, %v6586_v50  ;;  %v6603_v59 = vand.u32 3, %v1955_v26 }
 0x1bb   : > { %v2511_v31 = vmul.f32 0.5, %v2495_v19  ;;  %v1949_v32 = vmul.f32 %v1948_v18, %v1946_v11  ;;  %v6606_v38 = vadd.s32 %v6560_v24, %v6565_v25  ;;  %v2381_v49 = vand.u32 2147483647, %v6586_v50 }
 0x1bc   : > { %v2238_v12 = vshll.u32 %v6600_v4, 30  ;;  %v2087_v62 = vsub.s32 32, %v2086_v0  ;;  %v2089_v40 = vshll.u32 %v5126_v39, %v2086_v0  ;;  %v2092_v8 = vshll.u32 %v5127_v41, %v2086_v0 }
 0x1bd   : > { %2528 = vst.msk [vmem:[#allocation3 + $0x58] sm:$0xff] %vm7436_vm1, %v2511_v31  ;;  %v1950_v9 = vxor.u32 2147483648, %v1949_v32  ;;  %v6613_v29 = vshll.u32 %v2080_v36, 8  ;;  %v2095_v24 = vshll.u32 %v5128_v43, %v2086_v0  ;;  %v2385_v25 = vshrl.u32 %v2384_v34, 23 }
 0x1be   : > { %v6615_v52 = vsub.s32 %v2235_v14, %v2238_v12  ;;  %v2090_v45 = vshrl.u32 %v5127_v41, %v2087_v62  ;;  %v2093_v7 = vshrl.u32 %v5128_v43, %v2087_v62  ;;  %v2096_v1 = vshrl.u32 %v5129_v46, %v2087_v62 }
 0x1bf   : > { %v1951_v15 = vsel %vm1868_vm12, %v1950_v9, %v1949_v32  ;;  %v2098_v30 = vshll.u32 %v5129_v46, %v2086_v0  ;;  %v2085_v58 = vshrl.u32 %v2084_v51, 5  ;;  %v2088_v3 = vshrl.u32 %v5126_v39, %v2087_v62 }
 0x1c0   : > { %v1954_v47 = vsel %vm6592_vm6, %v6349_v10, %v1951_v15  ;;  %v2241_v2 = vsub.s32 0, %v6615_v52  ;;  %v2091_v27 = vor.u32 %v2090_v45, %v2089_v40  ;;  %v2094_v6 = vor.u32 %v2093_v7, %v2092_v8 }
 0x1c1   : > { %4793 = vcosq.f32 %v1954_v47  ;;  %v2099_v5 = vshrl.u32 %v5130_v48, %v2087_v62  ;;  %vm2177_vm8 = vcmp.lt.s32.totalorder %v6402_v20, 0  ;;  %v2097_v55 = vor.u32 %v2096_v1, %v2095_v24 }
 0x1c2   : > { %4795 = vsinq.f32 %v1954_v47  ;;  %v4230_v21 = vmin.u32 %v2241_v2, %v6615_v52  ;;  %v4237_v37 = vadd.s32 4294967169, %v2385_v25  ;;  %vm1964_vm9 = vcmp.eq.s32.totalorder %v6603_v59, 2 }
 0x1c3   : > { %v2261_v63 = vsub.s32 4, %v6600_v4  ;;  %v2100_v35 = vor.u32 %v2099_v5, %v2098_v30  ;;  %v2101_v16 = vshll.u32 %v5130_v48, %v2086_v0  ;;  %v2102_v57 = vshrl.u32 %v5131_v56, %v2087_v62 }
 0x1c4   : > { %vm1961_vm10 = vcmp.eq.s32.totalorder %v6603_v59, 0  ;;  %v2243_v61 = vclz %v4230_v21  ;;  %vm2104_vm11 = vcmp.lt.s32.totalorder %v2085_v58, 1  ;;  %vm2105_vm12 = vcmp.lt.s32.totalorder %v2085_v58, 2 }
 0x1c5   : > { %vm2106_vm13 = vcmp.lt.s32.totalorder %v2085_v58, 3  ;;  %vm1960_vm14 = vcmp.lt.s32.totalorder %v6603_v59, 2  ;;  %vm6640_vm15 = vcmp.le.f32.partialorder %v2175_v28, 0.7853982  ;;  %v2103_v14 = vor.u32 %v2102_v57, %v2101_v16 }
 0x1c6   : > { %vm2107_vm0 = vcmp.lt.s32.totalorder %v2085_v58, 4  ;;  %v2108_v17 = vsel %vm2104_vm11, %v2088_v3, %v2091_v27  ;;  %v2112_v54 = vsel %vm2104_vm11, %v2091_v27, %v2094_v6  ;;  %vm1958_vm2 = vweird.f32 %v6349_v10 }
 0x1c7   : > { %v4231_v23 = vadd.s32 4294967294, %v2243_v61  ;;  %v2109_v22 = vsel %vm2107_vm0, %v2097_v55, 2102212464  ;;  %v2113_v60 = vsel %vm2107_vm0, %v2100_v35, 920167782  ;;  %v2116_v18 = vsel %vm2104_vm11, %v2094_v6, %v2097_v55 }
 0x1c8   : > { %v2110_v13 = vsel %vm2106_vm13, %v2094_v6, %v2109_v22  ;;  %v2114_v26 = vsel %vm2106_vm13, %v2097_v55, %v2113_v60  ;;  %v2117_v44 = vsel %vm2107_vm0, %v2103_v14, 1326507024  ;;  %v2391_v19 = vadd.s32 1, %v4237_v37 }
 0x1c9   : > { %vm4232_vm3 = vcmp.lt.s32.totalorder %v4231_v23, 0  ;;  %v2115_v28 = vsel %vm2105_vm12, %v2112_v54, %v2114_v26  ;;  %v2118_v11 = vsel %vm2106_vm13, %v2100_v35, %v2117_v44  ;;  %v2388_v36 = vand.u32 8388607, %v2381_v49 }
 0x1ca   : > { %v2246_v51 = vsel %vm4232_vm3, 0, %v4231_v23  ;;  %v2119_v0 = vsel %vm2105_vm12, %v2116_v18, %v2118_v11  ;;  %v6653_v34 = vmul.u32.u64.low %v6613_v29, %v2115_v28  ;;  %v6654_v31 = vmul.u32.u64.high %v6613_v29, %v2115_v28, %v6653_v34 }
 0x1cb   : > { %v2247_v32 = vsub.s32 32, %v2246_v51  ;;  %v2248_v12 = vshll.u32 %v6615_v52, %v2246_v51  ;;  %v2251_v62 = vsub.s32 4294967266, %v2246_v51  ;;  %v2111_v9 = vsel %vm2105_vm12, %v2108_v17, %v2110_v13  ;;  %v4794_v40 = vpop.eup %4793 }
 0x1cc   : > { %v2262_v8 = vsel %vm2177_vm8, %v2261_v63, %v6600_v4  ;;  %v6663_v45 = vmul.u32.u64.low %v6613_v29, %v2119_v0  ;;  %v6664_v24 = vmul.u32.u64.high %v6613_v29, %v2119_v0, %v6663_v45  ;;  %vm2392_vm4 = vcmp.gt.s32.totalorder %v2391_v19, 0  ;;  %v4796_v25 = vpop.eup %4795 }
 0x1cd   : > { %v1965_v15 = vxor.u32 2147483648, %v4794_v40  ;;  %v2249_v7 = vshrl.u32 %v6606_v38, %v2247_v32  ;;  %v2252_v1 = vadd.s32 127, %v2251_v62  ;;  %v2393_v30 = vsel %vm2392_vm4, %v2391_v19, 0 }
 0x1ce   : > { %v1962_v52 = vxor.u32 2147483648, %v4796_v25  ;;  %v2127_v47 = vmul.u32 %v6613_v29, %v2111_v9  ;;  %v2130_v2 = vadd.s32 1, %v6654_v31  ;;  %v2395_v58 = vand.u32 31, %v2393_v30 }
 0x1cf   : > { %v1966_v4 = vsel %vm1964_vm9, %v1965_v15, %v4796_v25  ;;  %v2250_v3 = vor.u32 %v2249_v7, %v2248_v12  ;;  %v2253_v27 = vshll.u32 %v2252_v1, 23  ;;  %v2264_v6 = vsel %vm6640_vm15, 0, %v2262_v8 }
 0x1d0   : > { %v1963_v5 = vsel %vm1961_vm10, %v4794_v40, %v1962_v52  ;;  %vm2129_vm5 = vc.u32 %v6664_v24, %v6653_v34  ;;  %v2389_v38 = vor.u32 8388608, %v2388_v36  ;;  %v2396_v21 = vsub.s32 32, %v2395_v58  ;;  %v4853_v36 = vld [vmem:[%s7412_s1 + $0x70] sm:$0xff] }
 0x1d1   : > { %v1967_v29 = vsel %vm1960_vm14, %v1963_v5, %v1966_v4  ;;  %v2254_v55 = vor.u32 4788187, %v2253_v27  ;;  %v2257_v37 = vcvt.s32.f32 %v2250_v3  ;;  %v2131_v63 = vsel %vm2129_vm5, %v2130_v2, %v6654_v31  ;;  %v651_v2 = vpop.permute.xlu1 %650 }
 0x1d2   : > { %v1968_v35 = vsel %vm1958_vm2, nan, %v1967_v29  ;;  %v6682_v16 = vand.u32 3, %v2264_v6  ;;  %v2132_v57 = vadd.s32 %v2131_v63, %v2127_v47  ;;  %v2398_v61 = vshll.u32 %v5126_v39, %v2395_v58  ;;  %v6713_v47 = vld [vmem:[%s7486_s25] ss:$0 sm:$0xff] }
 0x1d3   : > { %v2494_v14 = vadd.f32 1.0, %v1968_v35  ;;  %v2255_v17 = vand.u32 2147483647, %v2254_v55  ;;  %v2399_v54 = vshrl.u32 %v5127_v41, %v2396_v21  ;;  %v2401_v23 = vshll.u32 %v5127_v41, %v2395_v58  ;;  %v641_v35 = vpop.permute.xlu0 %640 }
 0x1d4   : > { %v2133_v59 = vadd.s32 536870912, %v2132_v57  ;;  %v2402_v22 = vshrl.u32 %v5128_v43, %v2396_v21  ;;  %v2404_v60 = vshll.u32 %v5128_v43, %v2395_v58  ;;  %v2405_v18 = vshrl.u32 %v5129_v46, %v2396_v21 }
 0x1d5   : > { %v2510_v10 = vmul.f32 0.5, %v2494_v14  ;;  %v2258_v13 = vmul.f32 %v2257_v37, %v2255_v17  ;;  %v2394_v26 = vshrl.u32 %v2393_v30, 5  ;;  %v2407_v44 = vshll.u32 %v5129_v46, %v2395_v58 }
 0x1d6   : > { %v2134_v19 = vshrl.u32 %v2133_v59, 30  ;;  %v2408_v28 = vshrl.u32 %v5130_v48, %v2396_v21  ;;  %v6692_v11 = vshll.u32 %v2389_v38, 8  ;;  %v6697_v51 = vmul.f32 0.6981317, %v4853_v36 }
 0x1d7   : > { %2527 = vst.msk [vmem:[#allocation3 + $0x50] sm:$0xff] %vm7436_vm1, %v2510_v10  ;;  %v2259_v0 = vxor.u32 2147483648, %v2258_v13  ;;  %v2397_v31 = vshrl.u32 %v5126_v39, %v2396_v21  ;;  %v2410_v32 = vshll.u32 %v5130_v48, %v2395_v58  ;;  %v2411_v12 = vshrl.u32 %v5131_v56, %v2396_v21  ;;  %v656_v10 = vpop.permute.xlu1 %655 }
 0x1d8   : > { %v2135_v62 = vshll.u32 %v2134_v19, 30  ;;  %v2400_v9 = vor.u32 %v2399_v54, %v2398_v61  ;;  %v2403_v40 = vor.u32 %v2402_v22, %v2401_v23  ;;  %v2406_v8 = vor.u32 %v2405_v18, %v2404_v60 }
 0x1d9   : > { %v2260_v45 = vsel %vm2177_vm8, %v2259_v0, %v2258_v13  ;;  %v2409_v25 = vor.u32 %v2408_v28, %v2407_v44  ;;  %v2412_v15 = vor.u32 %v2411_v12, %v2410_v32  ;;  %vm2413_vm6 = vcmp.lt.s32.totalorder %v2394_v26, 1  ;;  %v646_v12 = vpop.permute.xlu0 %645 }
 0x1da   : > { %v2263_v7 = vsel %vm6640_vm15, %v6402_v20, %v2260_v45  ;;  %v6708_v1 = vsub.s32 %v2132_v57, %v2135_v62  ;;  %v2158_v30 = vsub.s32 4, %v2134_v19  ;;  %vm2416_vm7 = vcmp.lt.s32.totalorder %v2394_v26, 4 }
 0x1db   : > { %4797 = vcosq.f32 %v2263_v7  ;;  %vm2414_vm9 = vcmp.lt.s32.totalorder %v2394_v26, 2  ;;  %vm2415_vm10 = vcmp.lt.s32.totalorder %v2394_v26, 3  ;;  %v2418_v52 = vsel %vm2416_vm7, %v2406_v8, 2102212464 }
 0x1dc   : > { %4799 = vsinq.f32 %v2263_v7  ;;  %v2138_v58 = vsub.s32 0, %v6708_v1  ;;  %v2417_v33 = vsel %vm2413_vm6, %v2397_v31, %v2400_v9  ;;  %v2421_v4 = vsel %vm2413_vm6, %v2400_v9, %v2403_v40 }
 0x1dd   : > { %v2419_v3 = vsel %vm2415_vm10, %v2403_v40, %v2418_v52  ;;  %v2422_v27 = vsel %vm2416_vm7, %v2409_v25, 920167782  ;;  %v2425_v6 = vsel %vm2413_vm6, %v2403_v40, %v2406_v8  ;;  %v2426_v5 = vsel %vm2416_vm7, %v2412_v15, 1326507024 }
 0x1de   : > { %vm6722_vm8 = vcmp.le.f32.partialorder %v2072_v53, 0.7853982  ;;  %vm2074_vm11 = vcmp.lt.s32.totalorder %v6545_v42, 0  ;;  %v4226_v21 = vmin.u32 %v2138_v58, %v6708_v1  ;;  %v726_v29 = vsub.f32 %v651_v2, %v6713_v47 }
 0x1df   : > { %vm2269_vm12 = vcmp.lt.s32.totalorder %v6682_v16, 2  ;;  %v6732_v55 = vsel %vm2074_vm11, %v2158_v30, %v2134_v19  ;;  %v2423_v37 = vsel %vm2415_vm10, %v2406_v8, %v2422_v27  ;;  %v2427_v63 = vsel %vm2415_vm10, %v2409_v25, %v2426_v5 }
 0x1e0   : > { %v2278_v53 = vand.u32 2147483647, %v6697_v51  ;;  %vm2267_vm13 = vweird.f32 %v6402_v20  ;;  %v2140_v57 = vclz %v4226_v21  ;;  %v2420_v61 = vsel %vm2414_vm9, %v2417_v33, %v2419_v3 }
 0x1e1   : > { %v2424_v14 = vsel %vm2414_vm9, %v2421_v4, %v2423_v37  ;;  %v2428_v17 = vsel %vm2414_vm9, %v2425_v6, %v2427_v63  ;;  %vm2270_vm14 = vcmp.eq.s32.totalorder %v6682_v16, 0  ;;  %vm2273_vm15 = vcmp.eq.s32.totalorder %v6682_v16, 2 }
 0x1e2   : > { %v6742_v54 = vmul.u32.u64.low %v6692_v11, %v2428_v17  ;;  %v6743_v23 = vmul.u32.u64.high %v6692_v11, %v2428_v17, %v6742_v54  ;;  %v6746_v59 = vmul.u32.u64.low %v6692_v11, %v2424_v14  ;;  %v6747_v22 = vmul.u32.u64.high %v6692_v11, %v2424_v14, %v6746_v59 }
 0x1e3   : > { %v4227_v60 = vadd.s32 4294967294, %v2140_v57  ;;  %v2281_v18 = vand.u32 2139095040, %v6697_v51  ;;  %v2128_v13 = vadd.s32 %v6653_v34, %v6664_v24  ;;  %v2161_v26 = vsel %vm6722_vm8, 0, %v6732_v55  ;;  %v6785_v57 = vpop.permute.xlu0 %660 }
 0x1e4   : > { %v2436_v44 = vmul.u32 %v6692_v11, %v2420_v61  ;;  %v2285_v19 = vand.u32 8388607, %v2278_v53  ;;  %v742_v36 = vmul.f32 %v726_v29, %v726_v29  ;;  %v724_v0 = vsub.f32 %v641_v35, %v6713_v47  ;;  %v6775_v29 = vpop.permute.xlu1 %665 }
 0x1e5   : > { %vm4228_vm0 = vcmp.lt.s32.totalorder %v4227_v60, 0  ;;  %v2282_v28 = vshrl.u32 %v2281_v18, 23  ;;  %v4798_v31 = vpop.eup %4797  ;;  %vm2438_vm2 = vc.u32 %v6743_v23, %v6746_v59  ;;  %v2439_v34 = vadd.s32 1, %v6747_v22 }
 0x1e6   : > { %v2143_v32 = vsel %vm4228_vm0, 0, %v4227_v60  ;;  %v727_v24 = vsub.f32 %v656_v10, %v6713_v47  ;;  %v4800_v62 = vpop.eup %4799  ;;  %v2274_v11 = vxor.u32 2147483648, %v4798_v31  ;;  %v2286_v7 = vor.u32 8388608, %v2285_v19 }
 0x1e7   : > { %v2144_v9 = vsub.s32 32, %v2143_v32  ;;  %v2145_v40 = vshll.u32 %v6708_v1, %v2143_v32  ;;  %v2148_v8 = vsub.s32 4294967266, %v2143_v32  ;;  %v2271_v45 = vxor.u32 2147483648, %v4800_v62 }
 0x1e8   : > { %v2440_v25 = vsel %vm2438_vm2, %v2439_v34, %v6747_v22  ;;  %v4233_v15 = vadd.s32 4294967169, %v2282_v28  ;;  %v2275_v30 = vsel %vm2273_vm15, %v2274_v11, %v4800_v62  ;;  %vm2383_vm3 = vcmp.lt.s32.totalorder %v6586_v50, 0  ;;  %v6801_v32 = vpop.permute.xlu1 %675 }
 0x1e9   : > { %v2146_v52 = vshrl.u32 %v2128_v13, %v2144_v9  ;;  %v2149_v2 = vadd.s32 127, %v2148_v8  ;;  %v2441_v58 = vadd.s32 %v2440_v25, %v2436_v44  ;;  %v2272_v33 = vsel %vm2270_vm14, %v4798_v31, %v2271_v45 }
 0x1ea   : > { %v2288_v4 = vadd.s32 1, %v4233_v15  ;;  %v758_v3 = vmul.f32 -5.5555553, %v742_v36  ;;  %v740_v1 = vmul.f32 %v724_v0, %v724_v0  ;;  %v2276_v27 = vsel %vm2269_vm12, %v2272_v33, %v2275_v30 }
 0x1eb   : > { %v2147_v6 = vor.u32 %v2146_v52, %v2145_v40  ;;  %v2150_v5 = vshll.u32 %v2149_v2, 23  ;;  %v2442_v21 = vadd.s32 536870912, %v2441_v58  ;;  %v2277_v55 = vsel %vm2267_vm13, nan, %v2276_v27 }
 0x1ec   : > { %vm6781_vm4 = vcmp.le.f32.partialorder %v2381_v49, 0.7853982  ;;  %vm2289_vm5 = vcmp.gt.s32.totalorder %v2288_v4, 0  ;;  %v776_v63 = vmul.f32 1.442695, %v758_v3  ;;  %v2497_v16 = vadd.f32 1.0, %v2277_v55 }
 0x1ed   : > { %v756_v35 = vmul.f32 -5.5555553, %v740_v1  ;;  %v2151_v61 = vor.u32 4788187, %v2150_v5  ;;  %v2154_v14 = vcvt.s32.f32 %v2147_v6  ;;  %v2443_v17 = vshrl.u32 %v2442_v21, 30  ;;  %v6827_v1 = vpop.permute.xlu1 %685 }
 0x1ee   : > { %v6787_v54 = vand.u32 3, %v2161_v26  ;;  %v2290_v22 = vsel %vm2289_vm5, %v2288_v4, 0  ;;  %v725_v60 = vsub.f32 %v646_v12, %v6713_v47  ;;  %v2513_v18 = vmul.f32 0.5, %v2497_v16 }
 0x1ef   : > { %v772_v20 = vmul.f32 1.442695, %v756_v35  ;;  %v2152_v49 = vand.u32 2147483647, %v2151_v61  ;;  %v2444_v10 = vshll.u32 %v2443_v17, 30  ;;  %v2467_v13 = vsub.s32 4, %v2443_v17 }
 0x1f0   : > { %v6792_v44 = vadd.s32 %v6746_v59, %v6743_v23  ;;  %v2292_v19 = vand.u32 31, %v2290_v22  ;;  %v6794_v28 = vshll.u32 %v2286_v7, 8  ;;  %v743_v36 = vmul.f32 %v727_v24, %v727_v24  ;;  %2530 = vst.msk [vmem:[#allocation3 + $0x68] sm:$0xff] %vm7436_vm1, %v2513_v18  ;;  %v6809_v24 = vpop.permute.xlu0 %670 }
 0x1f1   : > { %v2155_v26 = vmul.f32 %v2154_v14, %v2152_v49  ;;  %v6797_v0 = vsub.s32 %v2441_v58, %v2444_v10  ;;  %v6799_v31 = vshrl.u32 %v2290_v22, 5  ;;  %4801 = vpow2.f32 %v776_v63  ;;  %v6851_v10 = vpop.permute.xlu1 %695 }
 0x1f2   : > { %v6805_v34 = vsel %vm2383_vm3, %v2467_v13, %v2443_v17  ;;  %v2293_v23 = vsub.s32 32, %v2292_v19  ;;  %v2295_v59 = vshll.u32 %v5126_v39, %v2292_v19  ;;  %v2298_v12 = vshll.u32 %v5127_v41, %v2292_v19 }
 0x1f3   : > { %v2156_v62 = vxor.u32 2147483648, %v2155_v26  ;;  %v2447_v11 = vsub.s32 0, %v6797_v0  ;;  %v2301_v9 = vshll.u32 %v5128_v43, %v2292_v19  ;;  %4803 = vpow2.f32 %v772_v20 }
 0x1f4   : > { %v2296_v40 = vshrl.u32 %v5127_v41, %v2293_v23  ;;  %v2299_v8 = vshrl.u32 %v5128_v43, %v2293_v23  ;;  %v2302_v45 = vshrl.u32 %v5129_v46, %v2293_v23  ;;  %v759_v25 = vmul.f32 -5.5555553, %v743_v36  ;;  %v6832_v38 = vpop.permute.xlu0 %680 }
 0x1f5   : > { %v2157_v15 = vsel %vm2074_vm11, %v2156_v62, %v2155_v26  ;;  %v4238_v7 = vmin.u32 %v2447_v11, %v6797_v0  ;;  %v2470_v30 = vsel %vm6781_vm4, 0, %v6805_v34  ;;  %v741_v52 = vmul.f32 %v725_v60, %v725_v60 }
 0x1f6   : > { %v2160_v2 = vsel %vm6722_vm8, %v6545_v42, %v2157_v15  ;;  %v2294_v41 = vshrl.u32 %v5126_v39, %v2293_v23  ;;  %v2297_v43 = vor.u32 %v2296_v40, %v2295_v59  ;;  %v2300_v58 = vor.u32 %v2299_v8, %v2298_v12 }
 0x1f7   : > { %4805 = vcosq.f32 %v2160_v2  ;;  %v2449_v33 = vclz %v4238_v7  ;;  %v2303_v4 = vor.u32 %v2302_v45, %v2301_v9  ;;  %v2304_v3 = vshll.u32 %v5129_v46, %v2292_v19 }
 0x1f8   : > { %4807 = vsinq.f32 %v2160_v2  ;;  %v2305_v27 = vshrl.u32 %v5130_v48, %v2293_v23  ;;  %v2307_v6 = vshll.u32 %v5130_v48, %v2292_v19  ;;  %v2308_v5 = vshrl.u32 %v5131_v56, %v2293_v23  ;;  %v6858_v23 = vpop.permute.xlu0 %690 }
 0x1f9   : > { %vm2170_vm6 = vcmp.eq.s32.totalorder %v6787_v54, 2  ;;  %v4239_v39 = vadd.s32 4294967294, %v2449_v33  ;;  %vm2310_vm7 = vcmp.lt.s32.totalorder %v6799_v31, 1  ;;  %vm2311_vm9 = vcmp.lt.s32.totalorder %v6799_v31, 2 }
 0x1fa   : > { %vm2312_vm10 = vcmp.lt.s32.totalorder %v6799_v31, 3  ;;  %vm2167_vm8 = vcmp.eq.s32.totalorder %v6787_v54, 0  ;;  %v2306_v46 = vor.u32 %v2305_v27, %v2304_v3  ;;  %v2309_v21 = vor.u32 %v2308_v5, %v2307_v6  ;;  %v6880_v3 = vpop.permute.xlu1 %705 }
 0x1fb   : > { %vm2313_vm11 = vcmp.lt.s32.totalorder %v6799_v31, 4  ;;  %v2314_v48 = vsel %vm2310_vm7, %v2294_v41, %v2297_v43  ;;  %v6840_v55 = vpop.eup %4801  ;;  %vm2166_vm12 = vcmp.lt.s32.totalorder %v6787_v54, 2  ;;  %vm4240_vm13 = vcmp.lt.s32.totalorder %v4239_v39, 0 }
 0x1fc   : > { %v2315_v56 = vsel %vm2313_vm11, %v2303_v4, 2102212464  ;;  %v2318_v63 = vsel %vm2310_vm7, %v2297_v43, %v2300_v58  ;;  %v2322_v35 = vsel %vm2310_vm7, %v2300_v58, %v2303_v4  ;;  %vm2164_vm14 = vweird.f32 %v6545_v42 }
 0x1fd   : > { %v2452_v16 = vsel %vm4240_vm13, 0, %v4239_v39  ;;  %v2316_v61 = vsel %vm2312_vm10, %v2300_v58, %v2315_v56  ;;  %v2319_v14 = vsel %vm2313_vm11, %v2306_v46, 920167782  ;;  %v2323_v17 = vsel %vm2313_vm11, %v2309_v21, 1326507024  ;;  %v6846_v22 = vpop.eup %4803 }
 0x1fe   : > { %v2453_v20 = vsub.s32 32, %v2452_v16  ;;  %v2454_v60 = vshll.u32 %v6797_v0, %v2452_v16  ;;  %v2457_v18 = vsub.s32 4294967266, %v2452_v16  ;;  %v2317_v49 = vsel %vm2311_vm9, %v2314_v48, %v2316_v61 }
 0x1ff   : > { %v2320_v13 = vsel %vm2312_vm10, %v2303_v4, %v2319_v14  ;;  %v2324_v19 = vsel %vm2312_vm10, %v2306_v46, %v2323_v17  ;;  %v2333_v36 = vmul.u32 %v6794_v28, %v2317_v49  ;;  %v778_v26 = vmul.f32 1.442695, %v759_v25 }
 0x200   : > { %v2455_v59 = vshrl.u32 %v6792_v44, %v2453_v20  ;;  %v2458_v0 = vadd.s32 127, %v2457_v18  ;;  %v2321_v12 = vsel %vm2311_vm9, %v2318_v63, %v2320_v13  ;;  %v2325_v62 = vsel %vm2311_vm9, %v2322_v35, %v2324_v19  ;;  %v716_v18 = vpop.permute.xlu1 %715 }
 0x201   : > { %v6866_v11 = vmul.u32.u64.low %v6794_v28, %v2325_v62  ;;  %v6867_v9 = vmul.u32.u64.high %v6794_v28, %v2325_v62, %v6866_v11  ;;  %v6870_v40 = vmul.u32.u64.low %v6794_v28, %v2321_v12  ;;  %v6871_v8 = vmul.u32.u64.high %v6794_v28, %v2321_v12, %v6870_v40  ;;  %v4806_v45 = vpop.eup %4805 }
 0x202   : > { %v2456_v25 = vor.u32 %v2455_v59, %v2454_v60  ;;  %v2459_v15 = vshll.u32 %v2458_v0, 23  ;;  %4809 = vpow2.f32 %v778_v26  ;;  %v757_v44 = vmul.f32 -5.5555553, %v741_v52  ;;  %v4808_v7 = vpop.eup %4807 }
 0x203   : > { %v2171_v2 = vxor.u32 2147483648, %v4806_v45  ;;  %v729_v31 = vsub.f32 %v6775_v29, %v6713_v47  ;;  %v728_v41 = vsub.f32 %v6785_v57, %v6713_v47  ;;  %v731_v43 = vsub.f32 %v6801_v32, %v6713_v47  ;;  %v6893_v32 = vpop.permute.xlu0 %700 }
 0x204   : > { %v2168_v58 = vxor.u32 2147483648, %v4808_v7  ;;  %v2460_v28 = vor.u32 4788187, %v2459_v15  ;;  %v2463_v33 = vcvt.s32.f32 %v2456_v25  ;;  %v774_v4 = vmul.f32 1.442695, %v757_v44 }
 0x205   : > { %v2172_v52 = vsel %vm2170_vm6, %v2171_v2, %v4808_v7  ;;  %v6888_v29 = vand.u32 3, %v2470_v30  ;;  %vm2335_vm15 = vc.u32 %v6867_v9, %v6870_v40  ;;  %v2336_v57 = vadd.s32 1, %v6871_v8 }
 0x206   : > { %v2169_v27 = vsel %vm2167_vm8, %v4806_v45, %v2168_v58  ;;  %v2461_v6 = vand.u32 2147483647, %v2460_v28  ;;  %4811 = vpow2.f32 %v774_v4  ;;  %v745_v5 = vmul.f32 %v729_v31, %v729_v31  ;;  %v6926_v31 = vpop.permute.xlu1 %2555 }
 0x207   : > { %v2173_v39 = vsel %vm2166_vm12, %v2169_v27, %v2172_v52  ;;  %v2337_v34 = vsel %vm2335_vm15, %v2336_v57, %v6871_v8  ;;  %v744_v30 = vmul.f32 %v728_v41, %v728_v41  ;;  %v747_v46 = vmul.f32 %v731_v43, %v731_v43  ;;  %v711_v26 = vpop.permute.xlu0 %710 }
 0x208   : > { %v2174_v21 = vsel %vm2164_vm14, nan, %v2173_v39  ;;  %v2464_v48 = vmul.f32 %v2463_v33, %v2461_v6  ;;  %vm2280_vm0 = vcmp.lt.s32.totalorder %v6697_v51, 0  ;;  %v2338_v56 = vadd.s32 %v2337_v34, %v2333_v36 }
 0x209   : > { %v761_v63 = vmul.f32 -5.5555553, %v745_v5  ;;  %v2496_v35 = vadd.f32 1.0, %v2174_v21  ;;  %v760_v16 = vmul.f32 -5.5555553, %v744_v30  ;;  %v730_v14 = vsub.f32 %v6809_v24, %v6713_v47 }
 0x20a   : > { %v763_v61 = vmul.f32 -5.5555553, %v747_v46  ;;  %v2465_v54 = vxor.u32 2147483648, %v2464_v48  ;;  %v2339_v17 = vadd.s32 536870912, %v2338_v56  ;;  %v733_v60 = vsub.f32 %v6827_v1, %v6713_v47  ;;  %v6954_v21 = vpop.permute.xlu1 %2561 }
 0x20b   : > { %v782_v20 = vmul.f32 1.442695, %v761_v63  ;;  %v2512_v42 = vmul.f32 0.5, %v2496_v35  ;;  %v780_v49 = vmul.f32 1.442695, %v760_v16  ;;  %v746_v19 = vmul.f32 %v730_v14, %v730_v14  ;;  %v6933_v43 = vpop.permute.xlu0 %2552 }
 0x20c   : > { %v786_v13 = vmul.f32 1.442695, %v763_v61  ;;  %v4810_v36 = vpop.eup %4809  ;;  %v2466_v59 = vsel %vm2383_vm3, %v2465_v54, %v2464_v48  ;;  %v2340_v0 = vshrl.u32 %v2339_v17, 30  ;;  %v749_v12 = vmul.f32 %v733_v60, %v733_v60 }
 0x20d   : > { %4813 = vpow2.f32 %v782_v20  ;;  %2529 = vst.msk [vmem:[#allocation3 + $0x60] sm:$0xff] %vm7436_vm1, %v2512_v42  ;;  %v2469_v24 = vsel %vm6781_vm4, %v6586_v50, %v2466_v59  ;;  %v805_v1 = vpack.c.bf16 %v4810_v36, %v6840_v55  ;;  %v762_v62 = vmul.f32 -5.5555553, %v746_v19 }
 0x20e   : > { %4815 = vpow2.f32 %v780_v49  ;;  %v2341_v11 = vshll.u32 %v2340_v0, 30  ;;  %v2364_v8 = vsub.s32 4, %v2340_v0  ;;  %v765_v45 = vmul.f32 -5.5555553, %v749_v12 }
 0x20f   : > { %4817 = vcosq.f32 %v2469_v24  ;;  %813 = vst [vmem:[#allocation2 + $0x8] sm:$0xff] %v805_v1  ;;  %v784_v25 = vmul.f32 1.442695, %v762_v62  ;;  %v732_v15 = vsub.f32 %v6832_v38, %v6713_v47  ;;  %v735_v44 = vsub.f32 %v6851_v10, %v6713_v47  ;;  %v6956_v63 = vpop.permute.xlu0 %2558  ;;  %v6963_v62 = vpop.permute.xlu1 %2567 }
 0x210   : > { %4819 = vsinq.f32 %v2469_v24  ;;  %v4812_v7 = vpop.eup %4811  ;;  %vm6920_vm2 = vcmp.le.f32.partialorder %v2278_v53, 0.7853982  ;;  %v6924_v55 = vsub.s32 %v2338_v56, %v2341_v11  ;;  %v790_v2 = vmul.f32 1.442695, %v765_v45 }
 0x211   : > { %4821 = vpow2.f32 %v786_v13  ;;  %v6930_v41 = vsel %vm2280_vm0, %v2364_v8, %v2340_v0  ;;  %v804_v38 = vpack.c.bf16 %v4812_v7, %v6846_v22  ;;  %v748_v10 = vmul.f32 %v732_v15, %v732_v15 }
 0x212   : > { %4823 = vpow2.f32 %v784_v25  ;;  %vm2475_vm3 = vcmp.lt.s32.totalorder %v6888_v29, 2  ;;  %vm2476_vm4 = vcmp.eq.s32.totalorder %v6888_v29, 0  ;;  %vm2479_vm5 = vcmp.eq.s32.totalorder %v6888_v29, 2 }
 0x213   : > { %v2344_v53 = vsub.s32 0, %v6924_v55  ;;  %v751_v58 = vmul.f32 %v735_v44, %v735_v44  ;;  %vm2473_vm6 = vweird.f32 %v6586_v50  ;;  %812 = vst [vmem:[#allocation2] sm:$0xff] %v804_v38  ;;  %v764_v28 = vmul.f32 -5.5555553, %v748_v10  ;;  %v6967_v25 = vpop.permute.xlu0 %2564 }
 0x214   : > { %v734_v22 = vsub.f32 %v6858_v23, %v6713_v47  ;;  %v737_v33 = vsub.f32 %v6880_v3, %v6713_v47  ;;  %v736_v4 = vsub.f32 %v6893_v32, %v6713_v47  ;;  %v2334_v52 = vadd.s32 %v6870_v40, %v6867_v9 }
 0x215   : > { %v4234_v57 = vmin.u32 %v2344_v53, %v6924_v55  ;;  %v2367_v27 = vsel %vm6920_vm2, 0, %v6930_v41  ;;  %4825 = vpow2.f32 %v790_v2  ;;  %v788_v6 = vmul.f32 1.442695, %v764_v28 }
 0x216   : > { %v767_v5 = vmul.f32 -5.5555553, %v751_v58  ;;  %v750_v39 = vmul.f32 %v734_v22, %v734_v22  ;;  %v753_v23 = vmul.f32 %v737_v33, %v737_v33  ;;  %v752_v3 = vmul.f32 %v736_v4, %v736_v4 }
 0x217   : > { %v4814_v34 = vpop.eup %4813  ;;  %v2346_v30 = vclz %v4234_v57  ;;  %v739_v46 = vsub.f32 %v716_v18, %v6713_v47  ;;  %v738_v32 = vsub.f32 %v711_v26, %v6713_v47  ;;  %4827 = vpow2.f32 %v788_v6  ;;  %v6993_v6 = vpop.permute.xlu1 %2573 }
 0x218   : > { %v4816_v9 = vpop.eup %4815  ;;  %v794_v40 = vmul.f32 1.442695, %v767_v5  ;;  %v766_v48 = vmul.f32 -5.5555553, %v750_v39  ;;  %v769_v56 = vmul.f32 -5.5555553, %v753_v23  ;;  %v2533_v38 = vlaneseq }
 0x219   : > { %v4818_v35 = vpop.eup %4817  ;;  %v4235_v16 = vadd.s32 4294967294, %v2346_v30  ;;  %v806_v61 = vpack.c.bf16 %v4814_v34, %v4816_v9  ;;  %v768_v14 = vmul.f32 -5.5555553, %v752_v3  ;;  %v755_v54 = vmul.f32 %v739_v46, %v739_v46  ;;  %v7002_v30 = vld [vmem:[%s7493_s16] ss:$0 sm:$0xff]  ;;  %v7004_v3 = vpop.permute.xlu0 %2570 }
 0x21a   : > { %v4820_v17 = vpop.eup %4819  ;;  %v2480_v20 = vxor.u32 2147483648, %v4818_v35  ;;  %4829 = vpow2.f32 %v794_v40  ;;  %v792_v60 = vmul.f32 1.442695, %v766_v48  ;;  %v798_v18 = vmul.f32 1.442695, %v769_v56 }
 0x21b   : > { %v4822_v47 = vpop.eup %4821  ;;  %v2477_v42 = vxor.u32 2147483648, %v4820_v17  ;;  %vm4236_vm7 = vcmp.lt.s32.totalorder %v4235_v16, 0  ;;  %814 = vst [vmem:[#allocation2 + $0x10] sm:$0xff] %v806_v61  ;;  %v796_v49 = vmul.f32 1.442695, %v768_v14  ;;  %v754_v59 = vmul.f32 %v738_v32, %v738_v32 }
 0x21c   : > { %v771_v13 = vmul.f32 -5.5555553, %v755_v54  ;;  %v4824_v19 = vpop.eup %4823  ;;  %v2481_v26 = vsel %vm2479_vm5, %v2480_v20, %v4820_v17  ;;  %v2349_v36 = vsel %vm4236_vm7, 0, %v4235_v16  ;;  %4831 = vpow2.f32 %v792_v60 }
 0x21d   : > { %v2478_v0 = vsel %vm2476_vm4, %v4818_v35, %v2477_v42  ;;  %v2350_v12 = vsub.s32 32, %v2349_v36  ;;  %v2351_v24 = vshll.u32 %v6924_v55, %v2349_v36  ;;  %v2354_v1 = vsub.s32 4294967266, %v2349_v36  ;;  %v7028_v36 = vpop.permute.xlu0 %2576 }
 0x21e   : > { %v2482_v11 = vsel %vm2475_vm3, %v2478_v0, %v2481_v26  ;;  %v807_v8 = vpack.c.bf16 %v4822_v47, %v4824_v19  ;;  %4833 = vpow2.f32 %v798_v18  ;;  %v802_v45 = vmul.f32 1.442695, %v771_v13  ;;  %v7023_v19 = vpop.permute.xlu1 %2579 }
 0x21f   : > { %v4826_v15 = vpop.eup %4825  ;;  %v2483_v44 = vsel %vm2473_vm6, nan, %v2482_v11  ;;  %v2352_v7 = vshrl.u32 %v2334_v52, %v2350_v12  ;;  %v2355_v2 = vadd.s32 127, %v2354_v1  ;;  %4835 = vpow2.f32 %v796_v49 }
 0x220   : > { %v2499_v41 = vadd.f32 1.0, %v2483_v44  ;;  %815 = vst [vmem:[#allocation2 + $0x18] sm:$0xff] %v807_v8  ;;  %v770_v55 = vmul.f32 -5.5555553, %v754_v59  ;;  %v6971_v29 = vand.u32 3, %v2367_v27  ;;  %4837 = vpow2.f32 %v802_v45 }
 0x221   : > { %v2353_v10 = vor.u32 %v2352_v7, %v2351_v24  ;;  %v2356_v53 = vshll.u32 %v2355_v2, 23  ;;  %v4828_v58 = vpop.eup %4827  ;;  %v6973_v33 = vshrl.u32 %v2533_v38, 7  ;;  %v5132_v4 = vmov 0.0  }
 0x222   : > { %v2515_v28 = vmul.f32 0.5, %v2499_v41  ;;  %v800_v22 = vmul.f32 1.442695, %v770_v55  ;;  %605 = vst [vmem:[#allocation12] sm:$0xff] %v5132_v4  ;;  %606 = vst [vmem:[#allocation12 + $0x8] sm:$0xff] %v5132_v4  ;;  %v808_v57 = vpack.c.bf16 %v4826_v15, %v4828_v58  ;;  %v6991_v27 = vand.u32 127, %v2533_v38  ;;  %v7061_v15 = vpop.permute.xlu1 %2585  ;;  %v7076_v55 = vpop.permute.xlu0 %2582 }
 0x223   : > { %607 = vst [vmem:[#allocation12 + $0x10] sm:$0xff] %v5132_v4  ;;  %608 = vst [vmem:[#allocation12 + $0x18] sm:$0xff] %v5132_v4  ;;  %v2357_v50 = vor.u32 4788187, %v2356_v53  ;;  %v2360_v52 = vcvt.s32.f32 %v2353_v10  ;;  %v2665_v39 = vadd.s32 8, %v6973_v33  ;;  %v2666_v23 = vadd.s32 16, %v6973_v33 }
 0x224   : > { %609 = vst [vmem:[#allocation12 + $0x20] sm:$0xff] %v5132_v4  ;;  %610 = vst [vmem:[#allocation12 + $0x28] sm:$0xff] %v5132_v4  ;;  %v4830_v5 = vpop.eup %4829  ;;  %4839 = vpow2.f32 %v800_v22  ;;  %v2667_v34 = vadd.s32 24, %v6973_v33  ;;  %v2668_v32 = vadd.s32 32, %v6973_v33  ;;  %v2669_v9 = vadd.s32 40, %v6973_v33 }
 0x225   : > { %611 = vst [vmem:[#allocation12 + $0x30] sm:$0xff] %v5132_v4  ;;  %612 = vst [vmem:[#allocation12 + $0x38] sm:$0xff] %v5132_v4  ;;  %v2358_v46 = vand.u32 2147483647, %v2357_v50  ;;  %v2670_v40 = vadd.s32 48, %v6973_v33  ;;  %v2671_v56 = vadd.s32 56, %v6973_v33  ;;  %vm2685_vm9 = vcmp.eq.s32.totalorder %v6973_v33, %v7002_v30 }
 0x226   : > { %613 = vst [vmem:[#allocation12 + $0x40] sm:$0xff] %v5132_v4  ;;  %614 = vst [vmem:[#allocation12 + $0x48] sm:$0xff] %v5132_v4  ;;  %v4832_v48 = vpop.eup %4831  ;;  %v2672_v35 = vadd.s32 64, %v6973_v33  ;;  %v2673_v16 = vadd.s32 72, %v6973_v33  ;;  %v2674_v61 = vadd.s32 80, %v6973_v33  ;;  %v2675_v17 = vadd.s32 88, %v6973_v33 }
 0x227   : > { %615 = vst [vmem:[#allocation12 + $0x50] sm:$0xff] %v5132_v4  ;;  %616 = vst [vmem:[#allocation12 + $0x58] sm:$0xff] %v5132_v4  ;;  %v2361_v14 = vmul.f32 %v2360_v52, %v2358_v46  ;;  %v809_v54 = vpack.c.bf16 %v4830_v5, %v4832_v48  ;;  %v2676_v20 = vadd.s32 96, %v6973_v33  ;;  %v2677_v18 = vadd.s32 104, %v6973_v33 }
 0x228   : > { %617 = vst [vmem:[#allocation12 + $0x60] sm:$0xff] %v5132_v4  ;;  %618 = vst [vmem:[#allocation12 + $0x68] sm:$0xff] %v5132_v4  ;;  %v4834_v60 = vpop.eup %4833  ;;  %v2678_v47 = vadd.s32 112, %v6973_v33  ;;  %v2679_v42 = vadd.s32 120, %v6973_v33  ;;  %vm2686_vm10 = vcmp.eq.s32.totalorder %v2665_v39, %v7002_v30  ;;  %vm2687_vm8 = vcmp.eq.s32.totalorder %v2666_v23, %v7002_v30 }
 0x229   : > { %619 = vst [vmem:[#allocation12 + $0x70] sm:$0xff] %v5132_v4  ;;  %620 = vst [vmem:[#allocation12 + $0x78] sm:$0xff] %v5132_v4  ;;  %v4836_v49 = vpop.eup %4835  ;;  %v2362_v13 = vxor.u32 2147483648, %v2361_v14  ;;  %vm2688_vm11 = vcmp.eq.s32.totalorder %v2667_v34, %v7002_v30  ;;  %vm2689_vm12 = vcmp.eq.s32.totalorder %v2668_v32, %v7002_v30  ;;  %vm2690_vm13 = vcmp.eq.s32.totalorder %v2669_v9, %v7002_v30 }
 0x22a   : > { %2532 = vst.msk [vmem:[#allocation3 + $0x78] sm:$0xff] %vm7436_vm1, %v2515_v28  ;;  %816 = vst [vmem:[#allocation2 + $0x20] sm:$0xff] %v808_v57  ;;  %v810_v26 = vpack.c.bf16 %v4834_v60, %v4836_v49  ;;  %vm2691_vm14 = vcmp.eq.s32.totalorder %v2670_v40, %v7002_v30  ;;  %vm2692_vm15 = vcmp.eq.s32.totalorder %v2671_v56, %v7002_v30  ;;  %v4838_v0 = vpop.eup %4837  ;;  %v4258_v37 = vsel %vm2685_vm9, 1.0, %v5132_v4 }
 0x22b   : > { %817 = vst [vmem:[#allocation2 + $0x28] sm:$0xff] %v809_v54  ;;  %v2363_v59 = vsel %vm2280_vm0, %v2362_v13, %v2361_v14  ;;  %vm2695_vm5 = vcmp.eq.s32.totalorder %v2674_v61, %v7002_v30  ;;  %vm2696_vm6 = vcmp.eq.s32.totalorder %v2675_v17, %v7002_v30  ;;  %vm2697_vm7 = vcmp.eq.s32.totalorder %v2676_v20, %v7002_v30 }
 0x22c   : > { %v2366_v12 = vsel %vm6920_vm2, %v6697_v51, %v2363_v59  ;;  %818 = vst [vmem:[#allocation2 + $0x30] sm:$0xff] %v810_v26  ;;  %vm2698_vm0 = vcmp.eq.s32.totalorder %v2677_v18, %v7002_v30  ;;  %vm2699_vm1 = vcmp.eq.s32.totalorder %v2678_v47, %v7002_v30  ;;  %vm2700_vm3 = vcmp.eq.s32.totalorder %v2679_v42, %v7002_v30 }
 0x22d   : > { %4841 = vcosq.f32 %v2366_v12  ;;  %vm2600_vm4 = vcmp.eq.s32.totalorder %v6991_v27, %v6926_v31  ;;  %v4259_v1 = vsel %vm2686_vm10, 1.0, %v5132_v4  ;;  %vm2376_vm2 = vcmp.eq.s32.totalorder %v6971_v29, 2 }
 0x22e   : > { %v4840_v24 = vpop.eup %4839  ;;  %4843 = vsinq.f32 %v2366_v12  ;;  %v4242_v8 = vsel %vm2600_vm4, 1.0, %v5132_v4  ;;  %v4260_v45 = vsel %vm2687_vm8, 1.0, %v5132_v4  ;;  %v4261_v31 = vsel %vm2688_vm11, 1.0, %v5132_v4 }
 0x22f   : > { %v811_v11 = vpack.c.bf16 %v4838_v0, %v4840_v24  ;;  %vm2373_vm9 = vcmp.eq.s32.totalorder %v6971_v29, 0  ;;  %v4262_v44 = vsel %vm2689_vm12, 1.0, %v5132_v4  ;;  %v4263_v7 = vsel %vm2690_vm13, 1.0, %v5132_v4 }
 0x230   : > { %v4264_v2 = vsel %vm2691_vm14, 1.0, %v5132_v4  ;;  %v4265_v41 = vsel %vm2692_vm15, 1.0, %v5132_v4  ;;  %vm2372_vm10 = vcmp.lt.s32.totalorder %v6971_v29, 2  ;;  %vm7494_vm8 = vcmp.eq.s32.totalorder %v2672_v35, %v7002_v30 }
 0x231   : > { %819 = vst [vmem:[#allocation2 + $0x38] sm:$0xff] %v811_v11  ;;  %v4266_v38 = vsel %vm7494_vm8, 1.0, %v5132_v4  ;;  %vm7495_vm11 = vcmp.eq.s32.totalorder %v2673_v16, %v7002_v30  ;;  %v4268_v53 = vsel %vm2695_vm5, 1.0, %v5132_v4  ;;  %v4269_v58 = vsel %vm2696_vm6, 1.0, %v5132_v4  ;;  %v2592_v30 = vpop.permute.xlu1 %2591 }
 0x232   : > { %v4267_v10 = vsel %vm7495_vm11, 1.0, %v5132_v4  ;;  %vm2370_vm12 = vweird.f32 %v6697_v51  ;;  %v4270_v28 = vsel %vm2697_vm7, 1.0, %v5132_v4  ;;  %v4271_v22 = vsel %vm2698_vm0, 1.0, %v5132_v4 }
 0x233   : > { %v4272_v33 = vsel %vm2699_vm1, 1.0, %v5132_v4  ;;  %v4273_v50 = vsel %vm2700_vm3, 1.0, %v5132_v4  ;;  %v2733_v52 = vpack.c.bf16 %v4259_v1, %v4258_v37  ;;  %v2734_v57 = vpack.c.bf16 %v4261_v31, %v4260_v45 }
 0x234   : > { %v2735_v5 = vpack.c.bf16 %v4263_v7, %v4262_v44  ;;  %v2736_v39 = vpack.c.bf16 %v4265_v41, %v4264_v2  ;;  %v2737_v23 = vpack.c.bf16 %v4267_v10, %v4266_v38  ;;  %v2738_v34 = vpack.c.bf16 %v4269_v58, %v4268_v53 }
 0x235   : > { %v2739_v46 = vpack.c.bf16 %v4271_v22, %v4270_v28  ;;  %v2740_v32 = vpack.c.bf16 %v4273_v50, %v4272_v33  ;;  %2741 = vst [vmem:[#allocation5] sm:$0xff] %v2733_v52  ;;  %2742 = vst [vmem:[#allocation5 + $0x8] sm:$0xff] %v2734_v57  ;;  %vm2599_vm13 = vcmp.eq.s32.totalorder %v6991_v27, %v6933_v43  ;;  %v2598_v47 = vpop.permute.xlu1 %2597 }
 0x236   : > { %2743 = vst [vmem:[#allocation5 + $0x10] sm:$0xff] %v2735_v5  ;;  %2744 = vst [vmem:[#allocation5 + $0x18] sm:$0xff] %v2736_v39  ;;  %vm2602_vm1 = vcmp.eq.s32.totalorder %v6991_v27, %v6954_v21  ;;  %vm2601_vm14 = vcmp.eq.s32.totalorder %v6991_v27, %v6956_v63  ;;  %vm2604_vm15 = vcmp.eq.s32.totalorder %v6991_v27, %v6963_v62  ;;  %v4241_v9 = vsel %vm2599_vm13, 1.0, %v5132_v4  ;;  %v2589_v21 = vpop.permute.xlu0 %2588 }
 0x237   : > { %2745 = vst [vmem:[#allocation5 + $0x20] sm:$0xff] %v2737_v23  ;;  %2746 = vst [vmem:[#allocation5 + $0x28] sm:$0xff] %v2738_v34  ;;  %v4244_v40 = vsel %vm2602_vm1, 1.0, %v5132_v4  ;;  %v4243_v43 = vsel %vm2601_vm14, 1.0, %v5132_v4  ;;  %v4246_v48 = vsel %vm2604_vm15, 1.0, %v5132_v4  ;;  %v4842_v56 = vpop.eup %4841  ;;  %v2647_v35 = vpack.c.bf16 %v4242_v8, %v4241_v9 }
 0x238   : > { %2747 = vst [vmem:[#allocation5 + $0x30] sm:$0xff] %v2739_v46  ;;  %2748 = vst [vmem:[#allocation5 + $0x38] sm:$0xff] %v2740_v32  ;;  %v2648_v63 = vpack.c.bf16 %v4244_v40, %v4243_v43  ;;  %vm2603_vm3 = vcmp.eq.s32.totalorder %v6991_v27, %v6967_v25  ;;  %vm2606_vm4 = vcmp.eq.s32.totalorder %v6991_v27, %v6993_v6  ;;  %v4844_v62 = vpop.eup %4843  ;;  %v2377_v16 = vxor.u32 2147483648, %v4842_v56 }
 0x239   : > { %v4245_v61 = vsel %vm2603_vm3, 1.0, %v5132_v4  ;;  %v4248_v14 = vsel %vm2606_vm4, 1.0, %v5132_v4  ;;  %vm2605_vm5 = vcmp.eq.s32.totalorder %v6991_v27, %v7004_v3  ;;  %v2374_v54 = vxor.u32 2147483648, %v4844_v62  ;;  %2655 = vst [vmem:[#allocation4] sm:$0xff] %v2647_v35 }
 0x23a   : > { %2656 = vst [vmem:[#allocation4 + $0x8] sm:$0xff] %v2648_v63  ;;  %v2649_v17 = vpack.c.bf16 %v4246_v48, %v4245_v61  ;;  %v4247_v20 = vsel %vm2605_vm5, 1.0, %v5132_v4  ;;  %vm2608_vm6 = vcmp.eq.s32.totalorder %v6991_v27, %v7023_v19  ;;  %v2378_v25 = vsel %vm2376_vm2, %v2377_v16, %v4844_v62  ;;  %v2595_v26 = vpop.permute.xlu0 %2594 }
 0x23b   : > { %v2650_v6 = vpack.c.bf16 %v4248_v14, %v4247_v20  ;;  %v4250_v60 = vsel %vm2608_vm6, 1.0, %v5132_v4  ;;  %vm2607_vm7 = vcmp.eq.s32.totalorder %v6991_v27, %v7028_v36  ;;  %v2375_v3 = vsel %vm2373_vm9, %v4842_v56, %v2374_v54 }
 0x23c   : > { %2657 = vst [vmem:[#allocation4 + $0x10] sm:$0xff] %v2649_v17  ;;  %v4249_v18 = vsel %vm2607_vm7, 1.0, %v5132_v4  ;;  %vm2610_vm0 = vcmp.eq.s32.totalorder %v6991_v27, %v7061_v15  ;;  %vm2609_vm8 = vcmp.eq.s32.totalorder %v6991_v27, %v7076_v55  ;;  %v2379_v42 = vsel %vm2372_vm10, %v2375_v3, %v2378_v25 }
 0x23d   : > { %2658 = vst [vmem:[#allocation4 + $0x18] sm:$0xff] %v2650_v6  ;;  %v2651_v49 = vpack.c.bf16 %v4250_v60, %v4249_v18  ;;  %v4252_v13 = vsel %vm2610_vm0, 1.0, %v5132_v4  ;;  %v4251_v19 = vsel %vm2609_vm8, 1.0, %v5132_v4  ;;  %v2380_v36 = vsel %vm2370_vm12, nan, %v2379_v42 }
 0x23e   : > { %v2652_v59 = vpack.c.bf16 %v4252_v13, %v4251_v19  ;;  %vm2612_vm2 = vcmp.eq.s32.totalorder %v6991_v27, %v2592_v30  ;;  %vm2611_vm9 = vcmp.eq.s32.totalorder %v6991_v27, %v2589_v21  ;;  %v2498_v0 = vadd.f32 1.0, %v2380_v36 }
 0x23f   : > { %2659 = vst [vmem:[#allocation4 + $0x20] sm:$0xff] %v2651_v49  ;;  %v4254_v29 = vsel %vm2612_vm2, 1.0, %v5132_v4  ;;  %v4253_v12 = vsel %vm2611_vm9, 1.0, %v5132_v4  ;;  %vm2614_vm10 = vcmp.eq.s32.totalorder %v6991_v27, %v2598_v47  ;;  %vm2613_vm11 = vcmp.eq.s32.totalorder %v6991_v27, %v2595_v26 }
 0x240   : > { %2660 = vst [vmem:[#allocation4 + $0x28] sm:$0xff] %v2652_v59  ;;  %v2653_v24 = vpack.c.bf16 %v4254_v29, %v4253_v12  ;;  %v4256_v37 = vsel %vm2614_vm10, 1.0, %v5132_v4  ;;  %v2514_v51 = vmul.f32 0.5, %v2498_v0  ;;  %v4255_v1 = vsel %vm2613_vm11, 1.0, %v5132_v4 }
 0x241   : > { %v2654_v11 = vpack.c.bf16 %v4256_v37, %v4255_v1  ;;  %vm7496_vm12 = vcmask 7168  }
 0x242   : > { %2661 = vst [vmem:[#allocation4 + $0x30] sm:$0xff] %v2653_v24  ;;  %2531 = vst.msk [vmem:[#allocation3 + $0x70] sm:$0xff] %vm7496_vm12, %v2514_v51 }
 0x243   : > { %2662 = vst [vmem:[#allocation4 + $0x38] sm:$0xff] %v2654_v11 }
 0x244 PF: > { %v4856_v8 = vld [vmem:[%s5387_s0] sm:$0xff]   ;;  %v4857_v45 = vld [vmem:[%s5387_s0 + $0x8] sm:$0xff]   ;;  %v4858_v4 = vld [vmem:[%s5387_s0 + $0x10] sm:$0xff]   ;;  %s7497_s21 = sld [smem:[#allocation18_spill]]  ;;  %v5133_v63 = vmov 0   ;;  %s5134_s14 = smov [#allocation12]  }
 0x245   : > { %4454 = vmatprep.subr.bf16.mxu1 %v4856_v8  ;;  %v4859_v27 = vld [vmem:[%s5387_s0 + $0x18] sm:$0xff]   ;;  %v4860_v15 = vld [vmem:[%s5387_s0 + $0x20] sm:$0xff]   ;;  %v4861_v44 = vld [vmem:[%s5387_s0 + $0x28] sm:$0xff]   ;;  %4855 = vset.pattern.permute.xlu1 %v5133_v63  ;;  %p4699_p7 = scmp.eq.s32.totalorder %s5226_s29, 2 }
 0x246   : > { %4455 = vmatpush3.bf16.msra.mxu1 %v4856_v8  ;;  %v4872_v7 = vld [vmem:[%s5412_s17] sm:$0xff]   ;;  %v4873_v2 = vld [vmem:[%s5412_s17 + $0x8] sm:$0xff]   ;;  %v4862_v41 = vld [vmem:[%s5387_s0 + $0x30] sm:$0xff]   ;;  %4854 = vset.pattern.permute.xlu0 %v5133_v63 }
 0x247   : > { %4456 = vmatprep.subr.bf16.mxu1 %v4857_v45  ;;  %4422 = vmatprep.subr.bf16.mxu0 %v4872_v7  ;;  %v4874_v55 = vld [vmem:[%s5412_s17 + $0x10] sm:$0xff]   ;;  %v4863_v38 = vld [vmem:[%s5387_s0 + $0x38] sm:$0xff]   ;;  %v4876_v53 = vld [vmem:[%s5412_s17 + $0x20] sm:$0xff]  }
 0x248   : > { %4423 = vmatpush3.bf16.msra.mxu0 %v4872_v7  ;;  %v4875_v10 = vld [vmem:[%s5412_s17 + $0x18] sm:$0xff]   ;;  %v4877_v22 = vld [vmem:[%s5412_s17 + $0x28] sm:$0xff]   ;;  %v4878_v33 = vld [vmem:[%s5412_s17 + $0x30] sm:$0xff]  }
 0x249   : > { %4424 = vmatprep.subr.bf16.mxu0 %v4873_v2  ;;  %v4879_v23 = vld [vmem:[%s5412_s17 + $0x38] sm:$0xff]   ;;  %v2749_v34 = vld [vmem:[#allocation2] sm:$0xff]  ;;  %v2750_v46 = vld [vmem:[#allocation2 + $0x8] sm:$0xff] }
 0x24a   : > { %4457 = vmatpush3.bf16.msra.mxu1 %v4857_v45  ;;  %v4864_v31 = vld [vmem:[%s7497_s21] sm:$0xff]   ;;  %v4865_v58 = vld [vmem:[%s7497_s21 + $0x8] sm:$0xff]   ;;  %v4866_v28 = vld [vmem:[%s7497_s21 + $0x10] sm:$0xff]   ;;  %4438 = vmatprep.mubr.bf16.mxu0 %v2749_v34 }
 0x24b   : > { %4458 = vmatprep.subr.bf16.mxu1 %v4858_v4  ;;  %4470 = vmatprep.mubr.bf16.mxu1 %v4864_v31  ;;  %v4867_v50 = vld [vmem:[%s7497_s21 + $0x18] sm:$0xff]   ;;  %v4868_v52 = vld [vmem:[%s7497_s21 + $0x20] sm:$0xff]   ;;  %v4869_v57 = vld [vmem:[%s7497_s21 + $0x28] sm:$0xff]  }
 0x24c   : > { %4425 = vmatpush3.bf16.msra.mxu0 %v4873_v2  ;;  %v4870_v5 = vld [vmem:[%s7497_s21 + $0x30] sm:$0xff]   ;;  %v4871_v39 = vld [vmem:[%s7497_s21 + $0x38] sm:$0xff]   ;;  %v2753_v9 = vld [vmem:[#allocation2 + $0x20] sm:$0xff] }
 0x24d   : > { %4426 = vmatprep.subr.bf16.mxu0 %v4874_v55  ;;  %v2751_v32 = vld [vmem:[#allocation2 + $0x10] sm:$0xff]  ;;  %v2752_v30 = vld [vmem:[#allocation2 + $0x18] sm:$0xff]  ;;  %v2754_v40 = vld [vmem:[#allocation2 + $0x28] sm:$0xff] }
 0x24e   : > { %4459 = vmatpush3.bf16.msra.mxu1 %v4858_v4  ;;  %v2755_v43 = vld [vmem:[#allocation2 + $0x30] sm:$0xff]  ;;  %v2756_v48 = vld [vmem:[#allocation2 + $0x38] sm:$0xff]  ;;  %v3269_v21 = vld [vmem:[#allocation4] sm:$0xff] }
 0x24f   : > { %4460 = vmatprep.subr.bf16.mxu1 %v4859_v27  ;;  %v2927_v56 = vld [vmem:[#allocation3 + $0x10] sm:$0xff]  ;;  %v2925_v35 = vld [vmem:[#allocation3] sm:$0xff]  ;;  %v2928_v62 = vld [vmem:[#allocation3 + $0x18] sm:$0xff] }
 0x250   : > { %4427 = vmatpush3.bf16.msra.mxu0 %v4874_v55  ;;  %2953 = vperm.xlu1 %4855, %v2927_v56   ;;  %v2926_v16 = vld [vmem:[#allocation3 + $0x8] sm:$0xff]  ;;  %v2929_v14 = vld [vmem:[#allocation3 + $0x20] sm:$0xff]  ;;  %v2932_v54 = vld [vmem:[#allocation3 + $0x38] sm:$0xff] }
 0x251   : > { %4428 = vmatprep.subr.bf16.mxu0 %v4875_v10  ;;  %2943 = vperm.xlu0 %4854, %v2925_v35   ;;  %v2930_v61 = vld [vmem:[#allocation3 + $0x28] sm:$0xff]  ;;  %v2931_v17 = vld [vmem:[#allocation3 + $0x30] sm:$0xff]  ;;  %v2933_v25 = vld [vmem:[#allocation3 + $0x40] sm:$0xff] }
 0x252   : > { %4461 = vmatpush3.bf16.msra.mxu1 %v4859_v27  ;;  %v2934_v20 = vld [vmem:[#allocation3 + $0x48] sm:$0xff]  ;;  %v2936_v6 = vld [vmem:[#allocation3 + $0x58] sm:$0xff]  ;;  %v2935_v60 = vld [vmem:[#allocation3 + $0x50] sm:$0xff] }
 0x253   : > { %4462 = vmatprep.subr.bf16.mxu1 %v4860_v15  ;;  %v2938_v3 = vld [vmem:[#allocation3 + $0x68] sm:$0xff]  ;;  %v2937_v18 = vld [vmem:[#allocation3 + $0x60] sm:$0xff]  ;;  %v2940_v47 = vld [vmem:[#allocation3 + $0x78] sm:$0xff] }
 0x254   : > { %4429 = vmatpush3.bf16.msra.mxu0 %v4875_v10  ;;  %2958 = vperm.xlu1 %4855, %v2928_v62   ;;  %v2939_v42 = vld [vmem:[#allocation3 + $0x70] sm:$0xff]  ;;  %v4283_v13 = vld [vmem:[%s593_s19] ss:$0 sm:$0xff]  ;;  %v3276_v56 = vld [vmem:[#allocation4 + $0x38] sm:$0xff] }
 0x255   : > { %4430 = vmatprep.subr.bf16.mxu0 %v4876_v53  ;;  %2948 = vperm.xlu0 %4854, %v2926_v16  }
 0x256   : > { %4463 = vmatpush3.bf16.msra.mxu1 %v4860_v15 }
 0x257   : > { %4464 = vmatprep.subr.bf16.mxu1 %v4861_v44 }
 0x258   : > { %4431 = vmatpush3.bf16.msra.mxu0 %v4876_v53  ;;  %2968 = vperm.xlu1 %4855, %v2930_v61  }
 0x259   : > { %4432 = vmatprep.subr.bf16.mxu0 %v4877_v22  ;;  %2963 = vperm.xlu0 %4854, %v2929_v14  }
 0x25a   : > { %4465 = vmatpush3.bf16.msra.mxu1 %v4861_v44 }
 0x25b   : > { %4466 = vmatprep.subr.bf16.mxu1 %v4862_v41 }
 0x25c   : > { %4433 = vmatpush3.bf16.msra.mxu0 %v4877_v22  ;;  %2978 = vperm.xlu1 %4855, %v2932_v54  }
 0x25d   : > { %4434 = vmatprep.subr.bf16.mxu0 %v4878_v33  ;;  %2973 = vperm.xlu0 %4854, %v2931_v17  }
 0x25e   : > { %4467 = vmatpush3.bf16.msra.mxu1 %v4862_v41 }
 0x25f   : > { %4468 = vmatprep.subr.bf16.mxu1 %v4863_v38 }
 0x260   : > { %4435 = vmatpush3.bf16.msra.mxu0 %v4878_v33  ;;  %2988 = vperm.xlu1 %4855, %v2934_v20  }
 0x261   : > { %4436 = vmatprep.subr.bf16.mxu0 %v4879_v23  ;;  %2983 = vperm.xlu0 %4854, %v2933_v25  }
 0x262   : > { %4469 = vmatpush3.bf16.msra.mxu1 %v4863_v38 }
 0x264   : > { %4437 = vmatpush3.bf16.msra.mxu0 %v4879_v23  ;;  %2998 = vperm.xlu1 %4855, %v2936_v6  }
 0x265   : > { %4471 = vmatmul.mubr.bf16.vlgmr.msra.gmra.mrb[0].mxu1 %v4865_v58  ;;  %2993 = vperm.xlu0 %4854, %v2935_v60  }
 0x266   : > { %4474 = vmatprep.mubr.bf16.mxu1 %v4866_v28 }
 0x267   : > { %4439 = vmatmul.mubr.bf16.vlgmr.msra.gmra.mrb[0].mxu0 %v2750_v46 }
 0x268   : > { %4442 = vmatprep.mubr.bf16.mxu0 %v2751_v32  ;;  %3008 = vperm.xlu1 %4855, %v2938_v3  }
 0x269   : > { %3003 = vperm.xlu0 %4854, %v2937_v18  }
 0x26c   : > { %3018 = vperm.xlu1 %4855, %v2940_v47  }
 0x26d   : > { %4475 = vmatmul.mubr.bf16.gmra.mrb[4].mxu1 %v4867_v50  ;;  %3013 = vperm.xlu0 %4854, %v2939_v42  }
 0x26e   : > { %4478 = vmatprep.mubr.bf16.mxu1 %v4868_v52 }
 0x26f   : > { %4443 = vmatmul.mubr.bf16.gmra.mrb[4].mxu0 %v2752_v30  ;;  %v3270_v30 = vld [vmem:[#allocation4 + $0x8] sm:$0xff] }
 0x270   : > { %4446 = vmatprep.mubr.bf16.mxu0 %v2753_v9  ;;  %v3271_v9 = vld [vmem:[#allocation4 + $0x10] sm:$0xff] }
 0x275   : > { %4479 = vmatmul.mubr.bf16.gmra.mrb[8].mxu1 %v4869_v57 }
 0x276   : > { %4482 = vmatprep.mubr.bf16.mxu1 %v4870_v5 }
 0x277   : > { %4447 = vmatmul.mubr.bf16.gmra.mrb[8].mxu0 %v2754_v40  ;;  %v3272_v40 = vld [vmem:[#allocation4 + $0x18] sm:$0xff] }
 0x278   : > { %4450 = vmatprep.mubr.bf16.mxu0 %v2755_v43  ;;  %v3273_v43 = vld [vmem:[#allocation4 + $0x20] sm:$0xff] }
 0x27d   : > { %4483 = vmatmul.mubr.bf16.gmra.mrb[12].mxu1 %v4871_v39 }
 0x27f   : > { %4451 = vmatmul.mubr.bf16.gmra.mrb[12].mxu0 %v2756_v48  ;;  %v3274_v48 = vld [vmem:[#allocation4 + $0x28] sm:$0xff] }
 0x280   : > { %4502 = vmatprep.mubr.bf16.mxu0 %v3269_v21  ;;  %v3275_v21 = vld [vmem:[#allocation4 + $0x30] sm:$0xff] }
 0x338   : > { %v4472_v49 = vpop.f32.mrb[0].mxu1 }
 0x339   : > { %v3206_v19 = vpop.f32.mrb[1].mxu1  ;;  %v3215_v36 = vadd.f32 %v4472_v49, %v4283_v13  ;;  %v3398_v49 = vld [vmem:[#allocation5] sm:$0xff] }
 0x33a   : > { %v4473_v26 = vpop.f32.mrb[2].mxu1  ;;  %v3207_v29 = vadd.f32 %v4283_v13, %v3206_v19  ;;  %v4440_v35 = vpop.f32.mrb[0].mxu0  ;;  %4534 = vmatprep.mubr.bf16.mxu1 %v3398_v49  ;;  %v4881_v19 = vld [vmem:[%s5394_s18 + $0x8] sm:$0xff]  }
 0x33b   : > { %v3218_v59 = vadd.f32 %v4473_v26, %v4283_v13  ;;  %v3209_v0 = vpop.f32.mrb[3].mxu1  ;;  %v2862_v63 = vpop.f32.mrb[1].mxu0  ;;  %v4882_v26 = vld [vmem:[%s5394_s18 + $0x10] sm:$0xff]  }
 0x33c   : > { %v3210_v12 = vadd.f32 %v4283_v13, %v3209_v0  ;;  %v4441_v62 = vpop.f32.mrb[2].mxu0  ;;  %v4885_v0 = vld [vmem:[%s5394_s18 + $0x28] sm:$0xff]  }
 0x33d   : > { %v3278_v24 = vpack.c.bf16 %v3218_v59, %v3215_v36  ;;  %v2865_v16 = vpop.f32.mrb[3].mxu0  ;;  %v4883_v36 = vld [vmem:[%s5394_s18 + $0x18] sm:$0xff]   ;;  %v4884_v59 = vld [vmem:[%s5394_s18 + $0x20] sm:$0xff]  }
 0x33e   : > { %v3277_v37 = vpack.c.bf16 %v3210_v12, %v3207_v29  ;;  %v4886_v29 = vld [vmem:[%s5394_s18 + $0x30] sm:$0xff]   ;;  %v2944_v12 = vpop.permute.xlu0 %2943 }
 0x340   : > { %v4476_v51 = vpop.f32.mrb[4].mxu1  ;;  %4486 = vmatprep.subr.bf16.mxu0 %v3277_v37 }
 0x341   : > { %v3222_v1 = vpop.f32.mrb[5].mxu1  ;;  %4487 = vmatpush3.bf16.msra.mxu0 %v3277_v37  ;;  %v3231_v8 = vadd.f32 %v4476_v51, %v4283_v13 }
 0x342   : > { %v4477_v11 = vpop.f32.mrb[6].mxu1  ;;  %4488 = vmatprep.subr.bf16.mxu0 %v3278_v24  ;;  %v3223_v27 = vadd.f32 %v4283_v13, %v3222_v1  ;;  %v4444_v61 = vpop.f32.mrb[4].mxu0 }
 0x343   : > { %v3234_v45 = vadd.f32 %v4477_v11, %v4283_v13  ;;  %v3225_v4 = vpop.f32.mrb[7].mxu1  ;;  %v2878_v14 = vpop.f32.mrb[5].mxu0  ;;  %v7229_v11 = vld [vmem:[%s590_s22] ss:$0 sm:$0xff] }
 0x344   : > { %v3226_v31 = vadd.f32 %v4283_v13, %v3225_v4  ;;  %v4445_v54 = vpop.f32.mrb[6].mxu0  ;;  %v2949_v37 = vpop.permute.xlu0 %2948  ;;  %v2863_v4 = vadd.f32 %v7229_v11, %v2862_v63 }
 0x345   : > { %v3280_v15 = vpack.c.bf16 %v3234_v45, %v3231_v8  ;;  %4489 = vmatpush3.bf16.msra.mxu0 %v3278_v24  ;;  %v7199_v17 = vpop.f32.mrb[7].mxu0  ;;  %v2954_v24 = vpop.permute.xlu1 %2953  ;;  %v2871_v45 = vadd.f32 %v4440_v35, %v7229_v11 }
 0x346   : > { %v3279_v44 = vpack.c.bf16 %v3226_v31, %v3223_v27  ;;  %v2874_v31 = vadd.f32 %v4441_v62, %v7229_v11 }
 0x348   : > { %v4480_v7 = vpop.f32.mrb[8].mxu1  ;;  %4490 = vmatprep.subr.bf16.mxu0 %v3279_v44  ;;  %v2964_v1 = vpop.permute.xlu0 %2963 }
 0x349   : > { %v3238_v2 = vpop.f32.mrb[9].mxu1  ;;  %4491 = vmatpush3.bf16.msra.mxu0 %v3279_v44  ;;  %v3247_v55 = vadd.f32 %v4480_v7, %v4283_v13  ;;  %v2959_v51 = vpop.permute.xlu1 %2958  ;;  %v3023_v7 = vmul.f32 %v2954_v24, %v2871_v45 }
 0x34a   : > { %v4481_v41 = vpop.f32.mrb[10].mxu1  ;;  %4492 = vmatprep.subr.bf16.mxu0 %v3280_v15  ;;  %v3239_v53 = vadd.f32 %v4283_v13, %v3238_v2  ;;  %v7201_v20 = vpop.f32.mrb[8].mxu0 }
 0x34b   : > { %v3250_v38 = vadd.f32 %v4481_v41, %v4283_v13  ;;  %v3241_v10 = vpop.f32.mrb[11].mxu1  ;;  %v7203_v25 = vpop.f32.mrb[9].mxu0  ;;  %v3021_v41 = vmul.f32 %v2944_v12, %v2863_v4 }
 0x34c   : > { %v3242_v58 = vadd.f32 %v4283_v13, %v3241_v10  ;;  %v7205_v6 = vpop.f32.mrb[10].mxu0  ;;  %v2974_v27 = vpop.permute.xlu0 %2973 }
 0x34d   : > { %v3282_v28 = vpack.c.bf16 %v3250_v38, %v3247_v55  ;;  %4493 = vmatpush3.bf16.msra.mxu0 %v3280_v15  ;;  %v7207_v60 = vpop.f32.mrb[11].mxu0  ;;  %v2969_v8 = vpop.permute.xlu1 %2968  ;;  %v2866_v15 = vadd.f32 %v7229_v11, %v2865_v16  ;;  %v3024_v55 = vmul.f32 %v2959_v51, %v2874_v31 }
 0x34e   : > { %v3281_v22 = vpack.c.bf16 %v3242_v58, %v3239_v53 }
 0x34f   : > { %v3022_v53 = vmul.f32 %v2949_v37, %v2866_v15 }
 0x350   : > { %v4484_v33 = vpop.f32.mrb[12].mxu1  ;;  %4494 = vmatprep.subr.bf16.mxu0 %v3281_v22  ;;  %v2984_v58 = vpop.permute.xlu0 %2983 }
 0x351   : > { %v3254_v50 = vpop.f32.mrb[13].mxu1  ;;  %4495 = vmatpush3.bf16.msra.mxu0 %v3281_v22  ;;  %v3263_v57 = vadd.f32 %v4484_v33, %v4283_v13  ;;  %v2979_v44 = vpop.permute.xlu1 %2978  ;;  %v2887_v33 = vadd.f32 %v4444_v61, %v7229_v11  ;;  %v2903_v61 = vadd.f32 %v7201_v20, %v7229_v11 }
 0x352   : > { %v4485_v52 = vpop.f32.mrb[14].mxu1  ;;  %4496 = vmatprep.subr.bf16.mxu0 %v3282_v28  ;;  %v3255_v23 = vadd.f32 %v4283_v13, %v3254_v50  ;;  %v7209_v3 = vpop.f32.mrb[12].mxu0 }
 0x353   : > { %v3266_v5 = vadd.f32 %v4485_v52, %v4283_v13  ;;  %v3257_v39 = vpop.f32.mrb[15].mxu1  ;;  %v7211_v18 = vpop.f32.mrb[13].mxu0 }
 0x354   : > { %v3258_v34 = vadd.f32 %v4283_v13, %v3257_v39  ;;  %v7213_v47 = vpop.f32.mrb[14].mxu0  ;;  %v4880_v13 = vld [vmem:[%s5394_s18] sm:$0xff]   ;;  %v2911_v4 = vadd.f32 %v7229_v11, %v7211_v18 }
 0x355   : > { %v3284_v46 = vpack.c.bf16 %v3266_v5, %v3263_v57  ;;  %4497 = vmatpush3.bf16.msra.mxu0 %v3282_v28  ;;  %v7215_v42 = vpop.f32.mrb[15].mxu0  ;;  %v2879_v57 = vadd.f32 %v7229_v11, %v2878_v14  ;;  %v2989_v5 = vpop.permute.xlu1 %2988  ;;  %v2922_v15 = vadd.f32 %v7213_v47, %v7229_v11 }
 0x356   : > { %v3283_v32 = vpack.c.bf16 %v3258_v34, %v3255_v23  ;;  %v2890_v23 = vadd.f32 %v4445_v54, %v7229_v11 }
 0x358   : > { %4498 = vmatprep.subr.bf16.mxu0 %v3283_v32 }
 0x359   : > { %4499 = vmatpush3.bf16.msra.mxu0 %v3283_v32  ;;  %v2999_v35 = vpop.permute.xlu1 %2998 }
 0x35a   : > { %4500 = vmatprep.subr.bf16.mxu0 %v3284_v46 }
 0x35d   : > { %4501 = vmatpush3.bf16.msra.mxu0 %v3284_v46  ;;  %v2882_v46 = vadd.f32 %v7229_v11, %v7199_v17  ;;  %v2895_v17 = vadd.f32 %v7229_v11, %v7203_v25 }
 0x35e   : > { %4550 = vmatprep.subr.bf16.mxu0 %v4880_v13 }
 0x35f   : > { %v3026_v16 = vmul.f32 %v2969_v8, %v2882_v46  ;;  %v3029_v20 = vmul.f32 %v2984_v58, %v2895_v17  ;;  %v2919_v8 = vadd.f32 %v7209_v3, %v7229_v11  ;;  %v3405_v46 = vld [vmem:[#allocation5 + $0x38] sm:$0xff] }
 0x360   : > { %4503 = vmatmul.mubr.bf16.vlgmr.msra.gmra.mrb[16].mxu0 %v3270_v30  ;;  %v3027_v30 = vmul.f32 %v2974_v27, %v2887_v33 }
 0x361   : > { %4506 = vmatprep.mubr.bf16.mxu0 %v3271_v9  ;;  %4551 = vmatpush3.bf16.msra.mxu0 %v4880_v13  ;;  %v2994_v9 = vpop.permute.xlu0 %2993  ;;  %v2906_v13 = vadd.f32 %v7205_v6, %v7229_v11 }
 0x362   : > { %4552 = vmatprep.subr.bf16.mxu0 %v4881_v19 }
 0x363   : > { %v3032_v24 = vmul.f32 %v2999_v35, %v2906_v13 }
 0x365   : > { %4553 = vmatpush3.bf16.msra.mxu0 %v4881_v19 }
 0x366   : > { %4554 = vmatprep.subr.bf16.mxu0 %v4882_v26 }
 0x368   : > { %4507 = vmatmul.mubr.bf16.gmra.mrb[20].mxu0 %v3272_v40 }
 0x369   : > { %4510 = vmatprep.mubr.bf16.mxu0 %v3273_v43  ;;  %4555 = vmatpush3.bf16.msra.mxu0 %v4882_v26  ;;  %v3025_v43 = vmul.f32 %v2964_v1, %v2879_v57  ;;  %v2898_v26 = vadd.f32 %v7229_v11, %v7207_v60  ;;  %v3400_v57 = vld [vmem:[#allocation5 + $0x10] sm:$0xff] }
 0x36a   : > { %4556 = vmatprep.subr.bf16.mxu0 %v4883_v36 }
 0x36b   : > { %v3030_v6 = vmul.f32 %v2989_v5, %v2898_v26  ;;  %v3401_v5 = vld [vmem:[#allocation5 + $0x18] sm:$0xff] }
 0x36d   : > { %4557 = vmatpush3.bf16.msra.mxu0 %v4883_v36  ;;  %v3004_v36 = vpop.permute.xlu0 %3003 }
 0x36e   : > { %4558 = vmatprep.subr.bf16.mxu0 %v4884_v59  ;;  %v3033_v3 = vmul.f32 %v3004_v36, %v2911_v4 }
 0x370   : > { %4511 = vmatmul.mubr.bf16.gmra.mrb[24].mxu0 %v3274_v48  ;;  %v3028_v48 = vmul.f32 %v2979_v44, %v2890_v23  ;;  %v3403_v23 = vld [vmem:[#allocation5 + $0x28] sm:$0xff] }
 0x371   : > { %4514 = vmatprep.mubr.bf16.mxu0 %v3275_v21  ;;  %4559 = vmatpush3.bf16.msra.mxu0 %v4884_v59  ;;  %v3014_v27 = vpop.permute.xlu0 %3013 }
 0x372   : > { %4560 = vmatprep.subr.bf16.mxu0 %v4885_v0 }
 0x375   : > { %4561 = vmatpush3.bf16.msra.mxu0 %v4885_v0  ;;  %v3031_v0 = vmul.f32 %v2994_v9, %v2903_v61 }
 0x376   : > { %4562 = vmatprep.subr.bf16.mxu0 %v4886_v29 }
 0x378   : > { %4515 = vmatmul.mubr.bf16.gmra.mrb[28].mxu0 %v3276_v56 }
 0x379   : > { %4563 = vmatpush3.bf16.msra.mxu0 %v4886_v29  ;;  %v3009_v29 = vpop.permute.xlu1 %3008 }
 0x433   : > { %v4504_v2 = vpop.f32.mrb[16].mxu0 }
 0x434   : > { %v3384_v38 = vmul.f32 %v4504_v2, %v3023_v7  ;;  %v3319_v10 = vpop.f32.mrb[17].mxu0  ;;  %v2914_v7 = vadd.f32 %v7229_v11, %v7215_v42  ;;  %v3019_v2 = vpop.permute.xlu1 %3018  ;;  %v3399_v11 = vld [vmem:[#allocation5 + $0x8] sm:$0xff] }
 0x435   : > { %v3382_v28 = vmul.f32 %v3319_v10, %v3021_v41  ;;  %v4505_v22 = vpop.f32.mrb[18].mxu0  ;;  %v3036_v10 = vmul.f32 %v3019_v2, %v2922_v15 }
 0x436   : > { %v3385_v50 = vmul.f32 %v4505_v22, %v3024_v55  ;;  %v3322_v52 = vpop.f32.mrb[19].mxu0  ;;  %v3035_v55 = vmul.f32 %v3014_v27, %v2919_v8  ;;  %v3034_v22 = vmul.f32 %v3009_v29, %v2914_v7  ;;  %v4895_v8 = vld [vmem:[%s5426_s7 + $0x38] sm:$0xff]  }
 0x437   : > { %v3383_v39 = vmul.f32 %v3322_v52, %v3022_v53 }
 0x438   : > { %v3407_v34 = vpack.c.bf16 %v3385_v50, %v3384_v38 }
 0x439   : > { %v3406_v32 = vpack.c.bf16 %v3383_v39, %v3382_v28  ;;  %v3402_v39 = vld [vmem:[#allocation5 + $0x20] sm:$0xff] }
 0x43b   : > { %v4508_v40 = vpop.f32.mrb[20].mxu0  ;;  %4518 = vmatprep.subr.bf16.mxu1 %v3406_v32 }
 0x43c   : > { %v3388_v21 = vmul.f32 %v4508_v40, %v3027_v30  ;;  %v3335_v56 = vpop.f32.mrb[21].mxu0  ;;  %4519 = vmatpush3.bf16.msra.mxu1 %v3406_v32  ;;  %v4887_v32 = vld [vmem:[%s5394_s18 + $0x38] sm:$0xff]  }
 0x43d   : > { %v3386_v63 = vmul.f32 %v3335_v56, %v3025_v43  ;;  %v4509_v62 = vpop.f32.mrb[22].mxu0  ;;  %4520 = vmatprep.subr.bf16.mxu1 %v3407_v34  ;;  %4564 = vmatprep.subr.bf16.mxu0 %v4887_v32 }
 0x43e   : > { %v3389_v14 = vmul.f32 %v4509_v62, %v3028_v48  ;;  %v3338_v54 = vpop.f32.mrb[23].mxu0  ;;  %4565 = vmatpush3.bf16.msra.mxu0 %v4887_v32 }
 0x43f   : > { %v3387_v49 = vmul.f32 %v3338_v54, %v3026_v16 }
 0x440   : > { %v3409_v19 = vpack.c.bf16 %v3389_v14, %v3388_v21  ;;  %4521 = vmatpush3.bf16.msra.mxu1 %v3407_v34  ;;  %v3404_v34 = vld [vmem:[#allocation5 + $0x30] sm:$0xff] }
 0x441   : > { %v3408_v59 = vpack.c.bf16 %v3387_v49, %v3386_v63 }
 0x443   : > { %v4512_v12 = vpop.f32.mrb[24].mxu0  ;;  %4522 = vmatprep.subr.bf16.mxu1 %v3408_v59 }
 0x444   : > { %v3392_v37 = vmul.f32 %v4512_v12, %v3031_v0  ;;  %v3351_v51 = vpop.f32.mrb[25].mxu0  ;;  %4523 = vmatpush3.bf16.msra.mxu1 %v3408_v59 }
 0x445   : > { %v3390_v25 = vmul.f32 %v3351_v51, %v3029_v20  ;;  %v4513_v1 = vpop.f32.mrb[26].mxu0  ;;  %4524 = vmatprep.subr.bf16.mxu1 %v3409_v19  ;;  %v4888_v20 = vld [vmem:[%s5426_s7] sm:$0xff]   ;;  %v4891_v51 = vld [vmem:[%s5426_s7 + $0x18] sm:$0xff]  }
 0x446   : > { %v3393_v45 = vmul.f32 %v4513_v1, %v3032_v24  ;;  %v3354_v60 = vpop.f32.mrb[27].mxu0  ;;  %v4889_v24 = vld [vmem:[%s5426_s7 + $0x8] sm:$0xff]  }
 0x447   : > { %v3391_v31 = vmul.f32 %v3354_v60, %v3030_v6  ;;  %v4893_v1 = vld [vmem:[%s5426_s7 + $0x28] sm:$0xff]   ;;  %v4894_v6 = vld [vmem:[%s5426_s7 + $0x30] sm:$0xff]  }
 0x448   : > { %v3411_v44 = vpack.c.bf16 %v3393_v45, %v3392_v37  ;;  %4525 = vmatpush3.bf16.msra.mxu1 %v3409_v19  ;;  %v4890_v37 = vld [vmem:[%s5426_s7 + $0x10] sm:$0xff]   ;;  %v7270_v45 = vld [vmem:[%s596_s30] ss:$0 sm:$0xff] }
 0x449   : > { %v3410_v41 = vpack.c.bf16 %v3391_v31, %v3390_v25  ;;  %v4892_v25 = vld [vmem:[%s5426_s7 + $0x20] sm:$0xff]  }
 0x44b   : > { %v4516_v38 = vpop.f32.mrb[28].mxu0  ;;  %4526 = vmatprep.subr.bf16.mxu1 %v3410_v41 }
 0x44c   : > { %v3396_v53 = vmul.f32 %v4516_v38, %v3035_v55  ;;  %v3367_v58 = vpop.f32.mrb[29].mxu0  ;;  %4527 = vmatpush3.bf16.msra.mxu1 %v3410_v41 }
 0x44d   : > { %v3394_v18 = vmul.f32 %v3367_v58, %v3033_v3  ;;  %v4517_v28 = vpop.f32.mrb[30].mxu0  ;;  %4528 = vmatprep.subr.bf16.mxu1 %v3411_v44 }
 0x44e   : > { %v3397_v47 = vmul.f32 %v4517_v28, %v3036_v10  ;;  %v3370_v33 = vpop.f32.mrb[31].mxu0 }
 0x44f   : > { %v3395_v50 = vmul.f32 %v3370_v33, %v3034_v22 }
 0x450   : > { %v3413_v52 = vpack.c.bf16 %v3397_v47, %v3396_v53  ;;  %4529 = vmatpush3.bf16.msra.mxu1 %v3411_v44 }
 0x451   : > { %v3412_v42 = vpack.c.bf16 %v3395_v50, %v3394_v18 }
 0x453   : > { %4530 = vmatprep.subr.bf16.mxu1 %v3412_v42 }
 0x454   : > { %4531 = vmatpush3.bf16.msra.mxu1 %v3412_v42 }
 0x455   : > { %4532 = vmatprep.subr.bf16.mxu1 %v3413_v52 }
 0x458   : > { %4533 = vmatpush3.bf16.msra.mxu1 %v3413_v52 }
 0x459   : > { %4582 = vmatprep.subr.bf16.mxu1 %v4888_v20 }
 0x45b   : > { %4535 = vmatmul.mubr.bf16.vlgmr.msra.gmra.mrb[16].mxu1 %v3399_v11 }
 0x45c   : > { %4538 = vmatprep.mubr.bf16.mxu1 %v3400_v57  ;;  %4583 = vmatpush3.bf16.msra.mxu1 %v4888_v20 }
 0x45d   : > { %4584 = vmatprep.subr.bf16.mxu1 %v4889_v24 }
 0x460   : > { %4585 = vmatpush3.bf16.msra.mxu1 %v4889_v24 }
 0x461   : > { %4586 = vmatprep.subr.bf16.mxu1 %v4890_v37 }
 0x463   : > { %4539 = vmatmul.mubr.bf16.gmra.mrb[20].mxu1 %v3401_v5 }
 0x464   : > { %4542 = vmatprep.mubr.bf16.mxu1 %v3402_v39  ;;  %4587 = vmatpush3.bf16.msra.mxu1 %v4890_v37 }
 0x465   : > { %4588 = vmatprep.subr.bf16.mxu1 %v4891_v51 }
 0x468   : > { %4589 = vmatpush3.bf16.msra.mxu1 %v4891_v51 }
 0x469   : > { %4590 = vmatprep.subr.bf16.mxu1 %v4892_v25 }
 0x46b   : > { %4543 = vmatmul.mubr.bf16.gmra.mrb[24].mxu1 %v3403_v23 }
 0x46c   : > { %4546 = vmatprep.mubr.bf16.mxu1 %v3404_v34  ;;  %4591 = vmatpush3.bf16.msra.mxu1 %v4892_v25 }
 0x46d   : > { %4592 = vmatprep.subr.bf16.mxu1 %v4893_v1 }
 0x470   : > { %4593 = vmatpush3.bf16.msra.mxu1 %v4893_v1 }
 0x471   : > { %4594 = vmatprep.subr.bf16.mxu1 %v4894_v6 }
 0x473   : > { %4547 = vmatmul.mubr.bf16.gmra.mrb[28].mxu1 %v3405_v46 }
 0x474   : > { %4595 = vmatpush3.bf16.msra.mxu1 %v4894_v6 }
 0x475   : > { %4596 = vmatprep.subr.bf16.mxu1 %v4895_v8 }
 0x478   : > { %4597 = vmatpush3.bf16.msra.mxu1 %v4895_v8 }
 0x52e   : > { %v4536_v30 = vpop.f32.mrb[16].mxu1 }
 0x52f   : > { %v3448_v9 = vpop.f32.mrb[17].mxu1 }
 0x530   : > { %v4537_v40 = vpop.f32.mrb[18].mxu1 }
 0x531   : > { %v3512_v43 = vpack.c.bf16 %v4537_v40, %v4536_v30  ;;  %v3451_v48 = vpop.f32.mrb[19].mxu1 }
 0x532   : > { %v3511_v21 = vpack.c.bf16 %v3451_v48, %v3448_v9 }
 0x534   : > { %4566 = vmatprep.mubr.bf16.mxu0 %v3511_v21 }
 0x535   : > { %4567 = vmatmul.mubr.bf16.vlgmr.msra.gmra.mrb[32].mxu0 %v3512_v43 }
 0x536   : > { %v4540_v56 = vpop.f32.mrb[20].mxu1 }
 0x537   : > { %v3464_v35 = vpop.f32.mrb[21].mxu1 }
 0x538   : > { %v4541_v63 = vpop.f32.mrb[22].mxu1 }
 0x539   : > { %v3514_v62 = vpack.c.bf16 %v4541_v63, %v4540_v56  ;;  %v3467_v16 = vpop.f32.mrb[23].mxu1 }
 0x53a   : > { %v3513_v61 = vpack.c.bf16 %v3467_v16, %v3464_v35 }
 0x53c   : > { %4570 = vmatprep.mubr.bf16.mxu0 %v3513_v61 }
 0x53d   : > { %4571 = vmatmul.mubr.bf16.gmra.mrb[36].mxu0 %v3514_v62 }
 0x53e   : > { %v4544_v14 = vpop.f32.mrb[24].mxu1 }
 0x53f   : > { %v3480_v54 = vpop.f32.mrb[25].mxu1 }
 0x540   : > { %v4545_v17 = vpop.f32.mrb[26].mxu1 }
 0x541   : > { %v3516_v49 = vpack.c.bf16 %v4545_v17, %v4544_v14  ;;  %v3483_v13 = vpop.f32.mrb[27].mxu1 }
 0x542   : > { %v3515_v19 = vpack.c.bf16 %v3483_v13, %v3480_v54 }
 0x544   : > { %4574 = vmatprep.mubr.bf16.mxu0 %v3515_v19 }
 0x545   : > { %4575 = vmatmul.mubr.bf16.gmra.mrb[40].mxu0 %v3516_v49 }
 0x546   : > { %v4548_v26 = vpop.f32.mrb[28].mxu1 }
 0x547   : > { %v3496_v36 = vpop.f32.mrb[29].mxu1 }
 0x548   : > { %v4549_v59 = vpop.f32.mrb[30].mxu1 }
 0x549   : > { %v3518_v0 = vpack.c.bf16 %v4549_v59, %v4548_v26  ;;  %v3499_v29 = vpop.f32.mrb[31].mxu1 }
 0x54a   : > { %v3517_v12 = vpack.c.bf16 %v3499_v29, %v3496_v36 }
 0x54c   : > { %4578 = vmatprep.mubr.bf16.mxu0 %v3517_v12 }
 0x54d   : > { %4579 = vmatmul.mubr.bf16.gmra.mrb[44].mxu0 %v3518_v0 }
 0x608   : > { %v4568_v60 = vpop.f32.mrb[32].mxu0 }
 0x609   : > { %v7273_v4 = vadd.f32 %v4568_v60, %v7270_v45  ;;  %v3624_v27 = vpop.f32.mrb[33].mxu0 }
 0x60a   : > { %v7276_v31 = vadd.f32 %v7270_v45, %v3624_v27  ;;  %v4569_v15 = vpop.f32.mrb[34].mxu0 }
 0x60b   : > { %v3689_v44 = vsub.f32 0.0, %v7273_v4  ;;  %v7280_v7 = vadd.f32 %v4569_v15, %v7270_v45  ;;  %v3627_v2 = vpop.f32.mrb[35].mxu0 }
 0x60c   : > { %v3687_v41 = vsub.f32 0.0, %v7276_v31  ;;  %v7284_v55 = vadd.f32 %v7270_v45, %v3627_v2 }
 0x60d   : > { %v3707_v38 = vmul.f32 1.442695, %v3689_v44  ;;  %v3690_v3 = vsub.f32 0.0, %v7280_v7 }
 0x60e   : > { %v3703_v10 = vmul.f32 1.442695, %v3687_v41  ;;  %v3688_v53 = vsub.f32 0.0, %v7284_v55 }
 0x60f   : > { %4896 = vpow2.f32 %v3707_v38  ;;  %v3709_v58 = vmul.f32 1.442695, %v3690_v3 }
 0x610   : > { %4898 = vpow2.f32 %v3703_v10  ;;  %v3705_v18 = vmul.f32 1.442695, %v3688_v53  ;;  %v4572_v28 = vpop.f32.mrb[36].mxu0 }
 0x611   : > { %4900 = vpow2.f32 %v3709_v58  ;;  %v7289_v22 = vadd.f32 %v4572_v28, %v7270_v45  ;;  %v3640_v47 = vpop.f32.mrb[37].mxu0 }
 0x612   : > { %4902 = vpow2.f32 %v3705_v18  ;;  %v7292_v33 = vadd.f32 %v7270_v45, %v3640_v47  ;;  %v4573_v50 = vpop.f32.mrb[38].mxu0 }
 0x613   : > { %v3693_v52 = vsub.f32 0.0, %v7289_v22  ;;  %v7296_v42 = vadd.f32 %v4573_v50, %v7270_v45  ;;  %v3643_v11 = vpop.f32.mrb[39].mxu0 }
 0x614   : > { %v3691_v57 = vsub.f32 0.0, %v7292_v33  ;;  %v7300_v5 = vadd.f32 %v7270_v45, %v3643_v11 }
 0x615   : > { %v3715_v39 = vmul.f32 1.442695, %v3693_v52  ;;  %v3694_v23 = vsub.f32 0.0, %v7296_v42 }
 0x616   : > { %v3711_v34 = vmul.f32 1.442695, %v3691_v57  ;;  %v3692_v46 = vsub.f32 0.0, %v7300_v5 }
 0x617   : > { %4904 = vpow2.f32 %v3715_v39  ;;  %v3717_v32 = vmul.f32 1.442695, %v3694_v23 }
 0x618   : > { %4906 = vpow2.f32 %v3711_v34  ;;  %v3713_v30 = vmul.f32 1.442695, %v3692_v46  ;;  %v4576_v9 = vpop.f32.mrb[40].mxu0 }
 0x619   : > { %v4897_v40 = vpop.eup %4896  ;;  %4908 = vpow2.f32 %v3717_v32  ;;  %v7305_v43 = vadd.f32 %v4576_v9, %v7270_v45  ;;  %v3656_v48 = vpop.f32.mrb[41].mxu0 }
 0x61a   : > { %v4899_v21 = vpop.eup %4898  ;;  %v3737_v56 = vadd.f32 1.0, %v4897_v40  ;;  %4910 = vpow2.f32 %v3713_v30  ;;  %v7308_v35 = vadd.f32 %v7270_v45, %v3656_v48  ;;  %v4577_v63 = vpop.f32.mrb[42].mxu0 }
 0x61b   : > { %v4901_v62 = vpop.eup %4900  ;;  %v3735_v16 = vadd.f32 1.0, %v4899_v21  ;;  %v3697_v61 = vsub.f32 0.0, %v7305_v43  ;;  %v7312_v14 = vadd.f32 %v4577_v63, %v7270_v45  ;;  %v3659_v54 = vpop.f32.mrb[43].mxu0 }
 0x61c   : > { %v4903_v17 = vpop.eup %4902  ;;  %4912 = vrcp.f32 %v3737_v56  ;;  %v3738_v49 = vadd.f32 1.0, %v4901_v62  ;;  %v3695_v13 = vsub.f32 0.0, %v7308_v35  ;;  %v7316_v19 = vadd.f32 %v7270_v45, %v3659_v54 }
 0x61d   : > { %4914 = vrcp.f32 %v3735_v16  ;;  %v3736_v26 = vadd.f32 1.0, %v4903_v17  ;;  %v3723_v36 = vmul.f32 1.442695, %v3697_v61  ;;  %v3698_v59 = vsub.f32 0.0, %v7312_v14 }
 0x61e   : > { %4916 = vrcp.f32 %v3738_v49  ;;  %v3719_v0 = vmul.f32 1.442695, %v3695_v13  ;;  %v3696_v29 = vsub.f32 0.0, %v7316_v19 }
 0x61f   : > { %4918 = vrcp.f32 %v3736_v26  ;;  %v3725_v12 = vmul.f32 1.442695, %v3698_v59 }
 0x620   : > { %4920 = vpow2.f32 %v3723_v36  ;;  %v3721_v20 = vmul.f32 1.442695, %v3696_v29  ;;  %v4580_v24 = vpop.f32.mrb[44].mxu0 }
 0x621   : > { %v4905_v37 = vpop.eup %4904  ;;  %4922 = vpow2.f32 %v3719_v0  ;;  %v7321_v51 = vadd.f32 %v4580_v24, %v7270_v45  ;;  %v3672_v25 = vpop.f32.mrb[45].mxu0 }
 0x622   : > { %v4907_v1 = vpop.eup %4906  ;;  %v3741_v6 = vadd.f32 1.0, %v4905_v37  ;;  %4924 = vpow2.f32 %v3725_v12  ;;  %v7324_v8 = vadd.f32 %v7270_v45, %v3672_v25  ;;  %v4581_v60 = vpop.f32.mrb[46].mxu0 }
 0x623   : > { %v4909_v27 = vpop.eup %4908  ;;  %v3739_v15 = vadd.f32 1.0, %v4907_v1  ;;  %4926 = vpow2.f32 %v3721_v20  ;;  %v3701_v44 = vsub.f32 0.0, %v7321_v51  ;;  %v7328_v2 = vadd.f32 %v4581_v60, %v7270_v45  ;;  %v3675_v41 = vpop.f32.mrb[47].mxu0 }
 0x624   : > { %v4911_v38 = vpop.eup %4910  ;;  %4928 = vrcp.f32 %v3741_v6  ;;  %v3742_v3 = vadd.f32 1.0, %v4909_v27  ;;  %v3699_v10 = vsub.f32 0.0, %v7324_v8  ;;  %v7332_v53 = vadd.f32 %v7270_v45, %v3675_v41 }
 0x625   : > { %4930 = vrcp.f32 %v3739_v15  ;;  %v3740_v58 = vadd.f32 1.0, %v4911_v38  ;;  %v3731_v18 = vmul.f32 1.442695, %v3701_v44  ;;  %v3702_v28 = vsub.f32 0.0, %v7328_v2 }
 0x626   : > { %v4913_v47 = vpop.eup %4912  ;;  %4932 = vrcp.f32 %v3742_v3  ;;  %v3727_v50 = vmul.f32 1.442695, %v3699_v10  ;;  %v3700_v52 = vsub.f32 0.0, %v7332_v53 }
 0x627   : > { %v4915_v11 = vpop.eup %4914  ;;  %4934 = vrcp.f32 %v3740_v58  ;;  %v3733_v57 = vmul.f32 1.442695, %v3702_v28  ;;  %v3769_v45 = vmul.f32 %v4913_v47, %v7273_v4 }
 0x628   : > { %v4917_v39 = vpop.eup %4916  ;;  %4936 = vpow2.f32 %v3731_v18  ;;  %v3729_v23 = vmul.f32 1.442695, %v3700_v52  ;;  %v3767_v30 = vmul.f32 %v4915_v11, %v7276_v31  ;;  %v3961_v52 = vld [vmem:[#allocation12 + $0x10] sm:$0xff] }
 0x629   : > { %v4919_v34 = vpop.eup %4918  ;;  %v3770_v46 = vmul.f32 %v4917_v39, %v7280_v7  ;;  %4938 = vpow2.f32 %v3727_v50 }
 0x62a   : > { %v4921_v32 = vpop.eup %4920  ;;  %v3768_v9 = vmul.f32 %v4919_v34, %v7284_v55  ;;  %4940 = vpow2.f32 %v3733_v57 }
 0x62b   : > { %v4923_v40 = vpop.eup %4922  ;;  %v3784_v48 = vpack.c.bf16 %v3770_v46, %v3769_v45  ;;  %v3745_v21 = vadd.f32 1.0, %v4921_v32  ;;  %4942 = vpow2.f32 %v3729_v23  ;;  %v3960_v45 = vld [vmem:[#allocation12 + $0x8] sm:$0xff] }
 0x62c   : > { %v4925_v56 = vpop.eup %4924  ;;  %v3743_v63 = vadd.f32 1.0, %v4923_v40  ;;  %v3783_v62 = vpack.c.bf16 %v3768_v9, %v3767_v30 }
 0x62d   : > { %v4927_v16 = vpop.eup %4926  ;;  %4944 = vrcp.f32 %v3745_v21  ;;  %v3746_v61 = vadd.f32 1.0, %v4925_v56 }
 0x62e   : > { %v4929_v4 = vpop.eup %4928  ;;  %4946 = vrcp.f32 %v3743_v63  ;;  %v3744_v7 = vadd.f32 1.0, %v4927_v16  ;;  %4598 = vmatprep.mubr.bf16.mxu1 %v3783_v62  ;;  %v3963_v63 = vld [vmem:[#allocation12 + $0x20] sm:$0xff] }
 0x62f   : > { %v4931_v54 = vpop.eup %4930  ;;  %4948 = vrcp.f32 %v3746_v61  ;;  %4599 = vmatmul.mubr.bf16.vlgmr.msra.gmra.mrb[32].mxu1 %v3784_v48  ;;  %v3773_v17 = vmul.f32 %v4929_v4, %v7289_v22  ;;  %v3965_v48 = vld [vmem:[#allocation12 + $0x30] sm:$0xff]  ;;  %v3966_v61 = vld [vmem:[#allocation12 + $0x38] sm:$0xff] }
 0x630   : > { %v4933_v31 = vpop.eup %4932  ;;  %4950 = vrcp.f32 %v3744_v7  ;;  %v3771_v26 = vmul.f32 %v4931_v54, %v7292_v33 }
 0x631   : > { %v4935_v55 = vpop.eup %4934  ;;  %v3774_v49 = vmul.f32 %v4933_v31, %v7296_v42  ;;  %v3964_v31 = vld [vmem:[#allocation12 + $0x28] sm:$0xff] }
 0x632   : > { %v4937_v13 = vpop.eup %4936  ;;  %v3772_v36 = vmul.f32 %v4935_v55, %v7300_v5 }
 0x633   : > { %v4939_v59 = vpop.eup %4938  ;;  %v3749_v0 = vadd.f32 1.0, %v4937_v13  ;;  %v3786_v29 = vpack.c.bf16 %v3774_v49, %v3773_v17 }
 0x634   : > { %v4941_v12 = vpop.eup %4940  ;;  %v3747_v20 = vadd.f32 1.0, %v4939_v59  ;;  %v3785_v24 = vpack.c.bf16 %v3772_v36, %v3771_v26  ;;  %v3969_v36 = vld [vmem:[#allocation12 + $0x50] sm:$0xff] }
 0x635   : > { %v4943_v37 = vpop.eup %4942  ;;  %4952 = vrcp.f32 %v3749_v0  ;;  %v3750_v25 = vadd.f32 1.0, %v4941_v12 }
 0x636   : > { %4954 = vrcp.f32 %v3747_v20  ;;  %v3748_v1 = vadd.f32 1.0, %v4943_v37  ;;  %4602 = vmatprep.mubr.bf16.mxu1 %v3785_v24  ;;  %v3970_v24 = vld [vmem:[#allocation12 + $0x58] sm:$0xff] }
 0x637   : > { %v4945_v22 = vpop.eup %4944  ;;  %4956 = vrcp.f32 %v3750_v25  ;;  %4603 = vmatmul.mubr.bf16.gmra.mrb[36].mxu1 %v3786_v29  ;;  %v3967_v29 = vld [vmem:[#allocation12 + $0x40] sm:$0xff] }
 0x638   : > { %v4947_v42 = vpop.eup %4946  ;;  %4958 = vrcp.f32 %v3748_v1  ;;  %v3777_v5 = vmul.f32 %v4945_v22, %v7305_v43  ;;  %v3968_v22 = vld [vmem:[#allocation12 + $0x48] sm:$0xff] }
 0x639   : > { %v4949_v33 = vpop.eup %4948  ;;  %v3775_v27 = vmul.f32 %v4947_v42, %v7308_v35 }
 0x63a   : > { %v4951_v6 = vpop.eup %4950  ;;  %v3778_v60 = vmul.f32 %v4949_v33, %v7312_v14 }
 0x63b   : > { %v3776_v15 = vmul.f32 %v4951_v6, %v7316_v19  ;;  %v7357_v19 = vld [vmem:[%s599_s20] ss:$0 sm:$0xff]  ;;  %s4013_s20 = sshll.u32 %s5134_s14, 4  ;;  %s4014_s20 = int_to_ptr.vmem [resolvable:$true] %s4013_s20 }
 0x63c   : > { %v3788_v44 = vpack.c.bf16 %v3778_v60, %v3777_v5  ;;  %s5050_s25 = scalar_lea.vmem %s4014_s20, 2048  ;;  %p5057_p5 = scmp.lt.s32.totalorder %s4014_s20, %s4014_s20 }
 0x63d   : > { %v3787_v41 = vpack.c.bf16 %v3776_v15, %v3775_v27  ;;  %v3973_v27 = vld [vmem:[#allocation12 + $0x70] sm:$0xff]  ;;  %p5051_p9 = scmp.ne.s32.totalorder %s4014_s20, %s5050_s25  ;;  %p5058_p6 = scmp.lt.s32.totalorder %s5050_s25, %s5050_s25 }
 0x63f   : > { %v4953_v38 = vpop.eup %4952  ;;  %4606 = vmatprep.mubr.bf16.mxu1 %v3787_v41  ;;  %v3971_v41 = vld [vmem:[#allocation12 + $0x60] sm:$0xff]  ;;  %p5052_p0 = pnand %p5051_p9, %p4699_p7  ;;  %p5059_p10 = por %p5058_p6, %p5057_p5 }
 0x640   : > { %v4955_v3 = vpop.eup %4954  ;;  %4607 = vmatmul.mubr.bf16.gmra.mrb[40].mxu1 %v3788_v44  ;;  %v3781_v18 = vmul.f32 %v4953_v38, %v7321_v51 }
 0x641   : > { %v4957_v10 = vpop.eup %4956  ;;  %v3779_v43 = vmul.f32 %v4955_v3, %v7324_v8  ;;  %p5053_p3 = pneg %p5052_p0 }
 0x642   : > { %v4959_v58 = vpop.eup %4958  ;;  %v3782_v28 = vmul.f32 %v4957_v10, %v7328_v2  ;;  %v3959_v2 = vld [vmem:[#allocation12] sm:$0xff]  ;;  %v3974_v10 = vld [vmem:[#allocation12 + $0x78] sm:$0xff] }
 0x643   : > { %v3780_v14 = vmul.f32 %v4959_v58, %v7332_v53  ;;  %v3962_v53 = vld [vmem:[#allocation12 + $0x18] sm:$0xff]  ;;  %p5060_p4 = pnand %p5059_p10, %p5053_p3 }
 0x644   : > { %v3790_v35 = vpack.c.bf16 %v3782_v28, %v3781_v18 }
 0x645   : > { %v3789_v47 = vpack.c.bf16 %v3780_v14, %v3779_v43  ;;  %v3972_v43 = vld [vmem:[#allocation12 + $0x68] sm:$0xff] }
 0x647   : > { %4610 = vmatprep.mubr.bf16.mxu1 %v3789_v47 }
 0x648   : > { %4611 = vmatmul.mubr.bf16.gmra.mrb[44].mxu1 %v3790_v35 }
 0x702   : > { %v4600_v50 = vpop.f32.mrb[32].mxu1 }
 0x703   : > { %v3905_v51 = vadd.f32 %v4600_v50, %v7357_v19  ;;  %v3896_v11 = vpop.f32.mrb[33].mxu1 }
 0x704   : > { %v3897_v8 = vadd.f32 %v7357_v19, %v3896_v11  ;;  %v4601_v57 = vpop.f32.mrb[34].mxu1 }
 0x705   : > { %v3977_v39 = vadd.f32 %v3961_v52, %v3905_v51  ;;  %v3908_v23 = vadd.f32 %v4601_v57, %v7357_v19  ;;  %v3899_v34 = vpop.f32.mrb[35].mxu1 }
 0x706   : > { %v3975_v46 = vadd.f32 %v3959_v2, %v3897_v8  ;;  %v3900_v32 = vadd.f32 %v7357_v19, %v3899_v34 }
 0x707   : > { %3993 = vst [vmem:[#allocation12 + $0x10] sm:$0xff] %v3977_v39  ;;  %v3978_v30 = vadd.f32 %v3962_v53, %v3908_v23 }
 0x708   : > { %3991 = vst [vmem:[#allocation12] sm:$0xff] %v3975_v46  ;;  %v3976_v9 = vadd.f32 %v3960_v45, %v3900_v32 }
 0x709   : > { %3994 = vst [vmem:[#allocation12 + $0x18] sm:$0xff] %v3978_v30 }
 0x70a   : > { %3992 = vst [vmem:[#allocation12 + $0x8] sm:$0xff] %v3976_v9  ;;  %v4604_v40 = vpop.f32.mrb[36].mxu1 }
 0x70b   : > { %v3921_v21 = vadd.f32 %v4604_v40, %v7357_v19  ;;  %v3912_v56 = vpop.f32.mrb[37].mxu1 }
 0x70c   : > { %v3913_v62 = vadd.f32 %v7357_v19, %v3912_v56  ;;  %v4605_v16 = vpop.f32.mrb[38].mxu1 }
 0x70d   : > { %v3981_v4 = vadd.f32 %v3965_v48, %v3921_v21  ;;  %v3924_v7 = vadd.f32 %v4605_v16, %v7357_v19  ;;  %v3915_v54 = vpop.f32.mrb[39].mxu1 }
 0x70e   : > { %v3979_v55 = vadd.f32 %v3963_v63, %v3913_v62  ;;  %v3916_v17 = vadd.f32 %v7357_v19, %v3915_v54 }
 0x70f   : > { %3997 = vst [vmem:[#allocation12 + $0x30] sm:$0xff] %v3981_v4  ;;  %v3982_v49 = vadd.f32 %v3966_v61, %v3924_v7 }
 0x710   : > { %3995 = vst [vmem:[#allocation12 + $0x20] sm:$0xff] %v3979_v55  ;;  %v3980_v13 = vadd.f32 %v3964_v31, %v3916_v17 }
 0x711   : > { %3998 = vst [vmem:[#allocation12 + $0x38] sm:$0xff] %v3982_v49 }
 0x712   : > { %3996 = vst [vmem:[#allocation12 + $0x28] sm:$0xff] %v3980_v13 }
 0x713   : > { %v4608_v26 = vpop.f32.mrb[40].mxu1 }
 0x714   : > { %v3937_v59 = vadd.f32 %v4608_v26, %v7357_v19  ;;  %v3928_v0 = vpop.f32.mrb[41].mxu1 }
 0x715   : > { %v3929_v12 = vadd.f32 %v7357_v19, %v3928_v0  ;;  %v4609_v20 = vpop.f32.mrb[42].mxu1 }
 0x716   : > { %v3985_v37 = vadd.f32 %v3969_v36, %v3937_v59  ;;  %v3940_v25 = vadd.f32 %v4609_v20, %v7357_v19  ;;  %v3931_v1 = vpop.f32.mrb[43].mxu1 }
 0x717   : > { %v3983_v42 = vadd.f32 %v3967_v29, %v3929_v12  ;;  %v3932_v33 = vadd.f32 %v7357_v19, %v3931_v1 }
 0x718   : > { %4001 = vst [vmem:[#allocation12 + $0x50] sm:$0xff] %v3985_v37  ;;  %v3986_v6 = vadd.f32 %v3970_v24, %v3940_v25 }
 0x719   : > { %3999 = vst [vmem:[#allocation12 + $0x40] sm:$0xff] %v3983_v42  ;;  %v3984_v5 = vadd.f32 %v3968_v22, %v3932_v33 }
 0x71a   : > { %4002 = vst [vmem:[#allocation12 + $0x58] sm:$0xff] %v3986_v6 }
 0x71b   : > { %4000 = vst [vmem:[#allocation12 + $0x48] sm:$0xff] %v3984_v5  ;;  %v4612_v60 = vpop.f32.mrb[44].mxu1 }
 0x71c   : > { %v3953_v15 = vadd.f32 %v4612_v60, %v7357_v19  ;;  %v3944_v44 = vpop.f32.mrb[45].mxu1 }
 0x71d   : > { %v3945_v38 = vadd.f32 %v7357_v19, %v3944_v44  ;;  %v4613_v3 = vpop.f32.mrb[46].mxu1 }
 0x71e   : > { %v3989_v58 = vadd.f32 %v3973_v27, %v3953_v15  ;;  %v3956_v18 = vadd.f32 %v4613_v3, %v7357_v19  ;;  %v3947_v28 = vpop.f32.mrb[47].mxu1 }
 0x71f   : > { %v3987_v14 = vadd.f32 %v3971_v41, %v3945_v38  ;;  %v3948_v35 = vadd.f32 %v7357_v19, %v3947_v28 }
 0x720   : > { %4005 = vst [vmem:[#allocation12 + $0x70] sm:$0xff] %v3989_v58  ;;  %v3990_v47 = vadd.f32 %v3974_v10, %v3956_v18 }
 0x721   : > { %4003 = vst [vmem:[#allocation12 + $0x60] sm:$0xff] %v3987_v14  ;;  %v3988_v50 = vadd.f32 %v3972_v43, %v3948_v35 }
 0x722   : > { %4006 = vst [vmem:[#allocation12 + $0x78] sm:$0xff] %v3990_v47 }
 0x723   : > { %4004 = vst [vmem:[#allocation12 + $0x68] sm:$0xff] %v3988_v50 }
 0x724   : > { %5063 = shalt.err (!%p5060_p4)
}
 0x725   : > { %s7498_s16 = sld [smem:[#allocation24_spill]] }
 0x72b   : > { %s5064_s24 = scalar_lea.hbm %s7498_s16, 2048 }
 0x72c   : > { %p5065_p13 = scmp.ne.s32.totalorder %s7498_s16, %s5064_s24  ;;  %p5070_p11 = scmp.lt.u32.totalorder %s5064_s24, %s7498_s16 }
 0x72e   : > { %p5066_p1 = pnand %p5065_p13, %p4699_p7 }
 0x730   : > { %p5067_p12 = pneg %p5066_p1 }
 0x732   : > { %p5072_p8 = pnand %p5070_p11, %p5067_p12 }
 0x734   : > { %5075 = shalt.err (!%p5072_p8)
}
 0x735   : > { %s5135_s17 = smov 128   ;;  %s5136_s15 = smov 8  }
 0x736   : > { %4685 = dma.vmem_to_hbm [thread:$0]  (%p4699_p7), %s4014_s20, 2048, %s7498_s16, [#allocation8], %s5135_s17, %s5135_s17, %s5136_s15  }
 0x737   : > { %5101 = dma.done.wait (%p4699_p7), [#allocation8], 2048  }
 0x738   : > { %5103 = vsyncadd (%p4699_p7), [#allocation8], 4294965248 }
 0x739 PF: > { %s7499_s28 = sld [smem:[#allocation16_spill]]  ;;  %s7500_s18 = sld [smem:[#allocation17_spill]] }
 0x73a   : > { %s7501_s25 = smov %s5110_s26  ;;  %s7502_s26 = smov %s5114_s27 }
 0x73f   : > { %p27_p2 = scmp.ge.s32.totalorder %s7499_s28, 5   ;;  %s7503_s27 = smov %s7500_s18 }
 0x741   :  { %29 = sbr.rel (!%p27_p2) target bundleno = 14 (0xe), region = 152 }
 0x748   :  { %4029 = vsyncpa [#allocation7], 1 }
 0x749   :  { %4031 = vsyncpa [#allocation7 + $0x1], 1 }
 0x74a   :  { %4032 = vsyncpa [#allocation10], 1 }
 0x74b   :  { %4034 = vsyncpa [#allocation10 + $0x1], 1 }
 0x74c   :  { %4035 = vsyncpa [#allocation8], 1 }
 0x74d   :  { %4037 = vsyncpa [#allocation8 + $0x1], 1 }

</bundles_post_ra>
